<compile_context>
chip_gen: v6e
topology: v6e:2x2x1
jax: 0.10.0
libtpu: 0.0.40
codegen_flags: <defaults>
</compile_context>

<pallas_src>
import functools

import numpy as np
import jax
import jax.numpy as jnp
from jax.experimental import pallas as pl
from jax.experimental.pallas import tpu as pltpu

# ----------------------------- small config ---------------------------------
INPUT_SIZE = 16          # image H = W
PATCH = 4                # patch size  -> Hp = Wp = 4, N_PATCH = 16
IN_CH = 3
DIM = 32                 # transformer width
EMB = 32                 # embedding_size
DEPTH = 2                # number of transformer blocks
HEADS = 4                # num attention heads (head_dim = 8)
MLP_RATIO = 4
N_PATCH = (INPUT_SIZE // PATCH) ** 2
LN_EPS = 1e-5
BN_EPS = 2e-5
SLAB_LANES = max(128, DIM * MLP_RATIO)   # lane width of the packed-param slab


# ------------------------------- kernel --------------------------------------
def _layernorm(x, w, b):
    mu = jnp.mean(x, axis=-1, keepdims=True)
    var = jnp.mean((x - mu) ** 2, axis=-1, keepdims=True)
    return (x - mu) * jax.lax.rsqrt(var + LN_EPS) * w + b


def _fused_vit_kernel(*refs, depth, num_heads, batch, n_patch, with_head):
    """Full ViT forward for the WHOLE batch in one invocation."""
    (tok_ref, pos_ref, pw_ref, wqkv_ref, wproj_ref, wfc1_ref, wfc2_ref,
     slab_ref) = refs[:8]
    if with_head:
        fw1_ref, fw2_ref, o_ref, flat_ref = refs[8:]
    else:
        (o_ref,) = refs[8:]
        flat_ref = o_ref            # the lane-dense (B, Np*D) output block

    D = pw_ref.shape[1]
    DH = wfc1_ref.shape[2]
    hd = D // num_heads
    Np = n_patch

    slab = slab_ref[...]            # (rows, 128) packed small parameters

    def srow(r, width=D):
        # static sublane-row + lane slice of the packed parameter slab
        return slab[r:r + 1, :width]                        # (1, width)

    # --- patch embedding (Conv2d k=s=patch as ONE matmul) + pos embed -------
    # patch_b is pre-added into pos in the wrapper.
    x = jnp.dot(tok_ref[...], pw_ref[...],
                preferred_element_type=jnp.float32) + pos_ref[...]   # (B*Np, D)

    # --- transformer blocks (statically unrolled; weights VMEM resident) ----
    for blk in range(depth):
        base = 2 + 7 * blk
        wqkv = wqkv_ref[blk]        # (D, 3D); q columns pre-scaled by hd**-0.5
        wproj = wproj_ref[blk]      # (D, D)

        # attention branch:  x + proj(concat_h softmax(q_h k_h^T) v_h) + b_proj
        xn = _layernorm(x, srow(base), srow(base + 1))
        qkv = jnp.dot(xn, wqkv, preferred_element_type=jnp.float32)  # (B*Np,3D)

        attn = jnp.zeros_like(x)
        for h in range(num_heads):
            c0 = h * hd
            oh_parts = []
            for b in range(batch):                 # scores are per-image only
                r0 = b * Np
                qh = qkv[r0:r0 + Np, c0:c0 + hd]
                kh = qkv[r0:r0 + Np, D + c0:D + c0 + hd]
                vh = qkv[r0:r0 + Np, 2 * D + c0:2 * D + c0 + hd]
                s = jax.lax.dot_general(qh, kh, (((1,), (1,)), ((), ())),
                                        preferred_element_type=jnp.float32)
                s = s - jnp.max(s, axis=-1, keepdims=True)
                e = jnp.exp(s)
                p = e * pl.reciprocal(jnp.sum(e, axis=-1, keepdims=True),
                                      approx=True)
                oh_parts.append(jnp.dot(p, vh,
                                        preferred_element_type=jnp.float32))
            oh = (jnp.concatenate(oh_parts, axis=0)
                  if batch > 1 else oh_parts[0])             # (B*Np, hd)
            # fold the per-head concat into the output projection via
            # sublane-aligned row slices of wproj (no 8-wide lane concat)
            attn = attn + jnp.dot(oh, wproj[c0:c0 + hd, :],
                                  preferred_element_type=jnp.float32)
        x = x + attn + srow(base + 2)

        # MLP branch:  x + fc2(relu6(fc1(LN2(x))))
        xn2 = _layernorm(x, srow(base + 3), srow(base + 4))
        h1 = jnp.dot(xn2, wfc1_ref[blk],
                     preferred_element_type=jnp.float32) + srow(base + 5, DH)
        h1 = jnp.clip(h1, 0.0, 6.0)                          # ReLU6
        x = x + jnp.dot(h1, wfc2_ref[blk],
                        preferred_element_type=jnp.float32) + srow(base + 6)

    # --- final LayerNorm -----------------------------------------------------
    x = _layernorm(x, srow(0), srow(1))                      # (B*Np, D)

    # --- per-image N-major flatten into a lane-dense (B, Np*D) buffer -------
    # (the output block itself when head=False).  Static, independent stores;
    # replaces the old chain of 16 serialized M=1 matmuls in the head.
    # TODO(synk): flatten order is N-major (torch x.view(B, N*dim)); porting
    # real unicom weights may require permuting feat_w1's input dimension.
    for b in range(batch):
        for n in range(Np):
            r = b * Np + n
            flat_ref[pl.ds(b, 1), pl.ds(n * D, D)] = x[r:r + 1, :]

    if not with_head:
        return

    # --- feature head: flatten @ W1 -> BN -> @ W2 -> BN (BN pre-folded) -----
    # TODO(synk): BatchNorm1d implemented in eval mode (running stats); a
    # fresh torch module defaults to training mode (batch statistics).
    hb = 2 + 7 * depth
    emb = fw2_ref.shape[1]
    flat = flat_ref[...]                                     # (B, Np*D)
    f1 = jnp.dot(flat, fw1_ref[...], preferred_element_type=jnp.float32)
    f1 = f1 * srow(hb) + srow(hb + 1)
    f2 = jnp.dot(f1, fw2_ref[...], preferred_element_type=jnp.float32)
    f2 = f2 * srow(hb + 2, emb) + srow(hb + 3, emb)
    o_ref[...] = f2.astype(o_ref.dtype)


# ------------------------------- parameters ----------------------------------
def init_params(key):
    def nrm(k, shape, std=0.02):
        return jax.random.normal(k, shape, jnp.float32) * std

    kit = iter(jax.random.split(key, 4 + 4 * DEPTH + 4))
    DH = DIM * MLP_RATIO
    params = {
        # Conv2d(kernel=stride=patch) as a matmul: weight (D, C, ph, pw) -> (K, D)
        'patch_w': nrm(next(kit), (IN_CH * PATCH * PATCH, DIM)),
        'patch_b': jnp.zeros((1, DIM), jnp.float32),
        'pos_embed': nrm(next(kit), (1, N_PATCH, DIM)),
        'norm_w': jnp.ones((1, DIM), jnp.float32),
        'norm_b': jnp.zeros((1, DIM), jnp.float32),
        'feat_w1': nrm(next(kit), (N_PATCH * DIM, DIM)),
        'bn1_g': jnp.ones((1, DIM), jnp.float32),
        'bn1_b': jnp.zeros((1, DIM), jnp.float32),
        'bn1_m': jnp.zeros((1, DIM), jnp.float32),
        'bn1_v': jnp.ones((1, DIM), jnp.float32),
        'feat_w2': nrm(next(kit), (DIM, EMB)),
        'bn2_g': jnp.ones((1, EMB), jnp.float32),
        'bn2_b': jnp.zeros((1, EMB), jnp.float32),
        'bn2_m': jnp.zeros((1, EMB), jnp.float32),
        'bn2_v': jnp.ones((1, EMB), jnp.float32),
    }
    blocks = []
    for _ in range(DEPTH):
        blocks.append(dict(
            ln1_w=jnp.ones((1, DIM), jnp.float32),
            ln1_b=jnp.zeros((1, DIM), jnp.float32),
            wqkv=nrm(next(kit), (DIM, 3 * DIM)),      # columns ordered [q | k | v]
            wproj=nrm(next(kit), (DIM, DIM)),
            bproj=jnp.zeros((1, DIM), jnp.float32),
            ln2_w=jnp.ones((1, DIM), jnp.float32),
            ln2_b=jnp.zeros((1, DIM), jnp.float32),
            wfc1=nrm(next(kit), (DIM, DH)),
            bfc1=jnp.zeros((1, DH), jnp.float32),
            wfc2=nrm(next(kit), (DH, DIM)),
            bfc2=jnp.zeros((1, DIM), jnp.float32),
        ))
    params['blocks'] = blocks
    return params


def prepare_weights(params, head=True):
    """One-time packing/folding of parameters into the kernel input layout."""
    hd = DIM // HEADS
    scale = float(hd) ** -0.5

    # packed-param slab rows (order MUST match kernel srow() indices):
    #   0: norm_w, 1: norm_b, then 7 rows per block, then 4 head BN rows.
    rows = [params['norm_w'], params['norm_b']]
    wqkv_l, wproj_l, wfc1_l, wfc2_l = [], [], [], []
    for bp in params['blocks']:
        wqkv_l.append(bp['wqkv'].at[:, :DIM].multiply(scale))  # fold SDPA scale
        wproj_l.append(bp['wproj'])
        wfc1_l.append(bp['wfc1'])
        wfc2_l.append(bp['wfc2'])
        rows += [bp['ln1_w'], bp['ln1_b'], bp['bproj'],
                 bp['ln2_w'], bp['ln2_b'], bp['bfc1'], bp['bfc2']]

    packed = {
        # conv bias pre-added into the pos-embed table (both token-constant)
        'pos': params['pos_embed'].reshape(N_PATCH, DIM) + params['patch_b'],
        'patch_w': params['patch_w'],
        'wqkv': jnp.stack(wqkv_l),      # (depth, D, 3D)
        'wproj': jnp.stack(wproj_l),    # (depth, D, D)
        'wfc1': jnp.stack(wfc1_l),      # (depth, D, DH)
        'wfc2': jnp.stack(wfc2_l),      # (depth, DH, D)
    }
    if head:
        # BatchNorm1d (eval mode) folded to scale/shift.
        bn1_s = params['bn1_g'] * jax.lax.rsqrt(params['bn1_v'] + BN_EPS)
        bn1_o = params['bn1_b'] - params['bn1_m'] * bn1_s
        bn2_s = params['bn2_g'] * jax.lax.rsqrt(params['bn2_v'] + BN_EPS)
        bn2_o = params['bn2_b'] - params['bn2_m'] * bn2_s
        rows += [bn1_s, bn1_o, bn2_s, bn2_o]
        packed['feat_w1'] = params['feat_w1']
        packed['feat_w2'] = params['feat_w2']

    slab = np.zeros((len(rows), SLAB_LANES), np.float32)
    for r, v in enumerate(rows):
        v = np.asarray(v).reshape(-1)
        slab[r, :v.shape[0]] = v
    packed['slab'] = jnp.asarray(slab)
    return packed


# ------------------------------- forward -------------------------------------
@functools.partial(jax.jit, static_argnames=('head',))
def vit_forward(x_nchw, packed, head=True):
    B, C, Himg, Wimg = x_nchw.shape
    Hp, Wp = Himg // PATCH, Wimg // PATCH
    Np = Hp * Wp
    K = C * PATCH * PATCH
    depth = packed['wqkv'].shape[0]

    # Patch extraction is pure layout glue; the conv-as-matmul runs in-kernel.
    patches = x_nchw.reshape(B, C, Hp, PATCH, Wp, PATCH)
    patches = patches.transpose(0, 2, 4, 1, 3, 5).reshape(B * Np, K)

    # F.interpolate(pos_emb, size=(Hp, Wp), mode='bicubic') is the identity map
    # when the stored grid already equals (Hp, Wp) (true here).  Tiled over the
    # batch so the in-kernel add is a plain elementwise add.
    pos = jnp.tile(packed['pos'], (B, 1))                     # (B*Np, D)

    inputs = [patches, pos, packed['patch_w'], packed['wqkv'], packed['wproj'],
              packed['wfc1'], packed['wfc2'], packed['slab']]
    if head:
        inputs += [packed['feat_w1'], packed['feat_w2']]
        out_shape = jax.ShapeDtypeStruct((B, EMB), jnp.float32)
        scratch = [pltpu.VMEM((B, Np * DIM), jnp.float32)]    # flatten buffer
    else:
        # lane-dense (B, Np*DIM) output; head params not passed at all
        out_shape = jax.ShapeDtypeStruct((B, Np * DIM), jnp.float32)
        scratch = []

    kernel = functools.partial(_fused_vit_kernel, depth=depth, num_heads=HEADS,
                               batch=B, n_patch=Np, with_head=head)

    # Single pipeline step (no grid): whole batch at once, every array is a
    # full-block VMEM resident => <=10 DMA descriptors vs 38 previously.
    out = pl.pallas_call(
        kernel,
        out_shape=out_shape,
        scratch_shapes=scratch,
    )(*inputs)

    if head:
        return out                                            # (B, EMB)
    # head=False: torch returns x.transpose(1, 2).unsqueeze(-1) -> (B, D, N, 1)
    return jnp.transpose(out.reshape(B, Np, DIM), (0, 2, 1))[..., None]


# --------------------------------- main ---------------------------------------
if __name__ == "__main__":
    key = jax.random.PRNGKey(0)
    kx, kp = jax.random.split(key)
    x = jax.random.normal(kx, (2, IN_CH, INPUT_SIZE, INPUT_SIZE), jnp.float32)
    params = init_params(kp)
    packed = prepare_weights(params, head=True)

    feats = jax.block_until_ready(vit_forward(x, packed, head=True))
    assert feats.shape == (2, EMB), feats.shape
    assert bool(jnp.all(jnp.isfinite(feats)))

    toks = jax.block_until_ready(vit_forward(x, packed, head=False))
    assert toks.shape == (2, DIM, N_PATCH, 1), toks.shape
    assert bool(jnp.all(jnp.isfinite(toks)))

    print("KERNEL_OK")
</pallas_src>

<mosaic_0001>
module attributes {stable_mosaic.version = 11 : i64} {
  func.func @_fused_vit_kernel(%arg0: memref<32x48xf32, #tpu.memory_space<vmem>>, %arg1: memref<32x32xf32, #tpu.memory_space<vmem>>, %arg2: memref<48x32xf32, #tpu.memory_space<vmem>>, %arg3: memref<2x32x96xf32, #tpu.memory_space<vmem>>, %arg4: memref<2x32x32xf32, #tpu.memory_space<vmem>>, %arg5: memref<2x32x128xf32, #tpu.memory_space<vmem>>, %arg6: memref<2x128x32xf32, #tpu.memory_space<vmem>>, %arg7: memref<20x128xf32, #tpu.memory_space<vmem>>, %arg8: memref<512x32xf32, #tpu.memory_space<vmem>>, %arg9: memref<32x32xf32, #tpu.memory_space<vmem>>, %arg10: memref<2x32xf32, #tpu.memory_space<vmem>>, %arg11: memref<2x512xf32, #tpu.memory_space<vmem>>) attributes {dimension_semantics = [], scalar_prefetch = 0 : i64, scratch_operands = 1 : i64, tpu.core_type = #tpu.core_type<tc>} {
    %c0 = arith.constant 0 : index
    %c0_0 = arith.constant 0 : index
    %0 = vector.load %arg7[%c0, %c0_0] : memref<20x128xf32, #tpu.memory_space<vmem>>, vector<20x128xf32>
    %c0_1 = arith.constant 0 : index
    %c0_2 = arith.constant 0 : index
    %1 = vector.load %arg0[%c0_1, %c0_2] : memref<32x48xf32, #tpu.memory_space<vmem>>, vector<32x48xf32>
    %c0_3 = arith.constant 0 : index
    %c0_4 = arith.constant 0 : index
    %2 = vector.load %arg2[%c0_3, %c0_4] : memref<48x32xf32, #tpu.memory_space<vmem>>, vector<48x32xf32>
    %cst = arith.constant dense<0.000000e+00> : vector<32x32xf32>
    %3 = tpu.matmul %1, %2, %cst {dimension_numbers = #tpu.dot_dimension_numbers<[1], [0], [0], [1], [0, 0, 1, 1], [], []>} : vector<32x48xf32>, vector<48x32xf32>, vector<32x32xf32> -> vector<32x32xf32>
    %c0_5 = arith.constant 0 : index
    %c0_6 = arith.constant 0 : index
    %4 = vector.load %arg1[%c0_5, %c0_6] : memref<32x32xf32, #tpu.memory_space<vmem>>, vector<32x32xf32>
    %5 = arith.addf %3, %4 : vector<32x32xf32>
    %c0_7 = arith.constant 0 : index
    %c0_8 = arith.constant 0 : index
    %c0_9 = arith.constant 0 : index
    %6 = vector.load %arg3[%c0_7, %c0_8, %c0_9] : memref<2x32x96xf32, #tpu.memory_space<vmem>>, vector<1x32x96xf32>
    %7 = vector.shape_cast %6 : vector<1x32x96xf32> to vector<32x96xf32>
    %c0_10 = arith.constant 0 : index
    %c0_11 = arith.constant 0 : index
    %c0_12 = arith.constant 0 : index
    %8 = vector.load %arg4[%c0_10, %c0_11, %c0_12] : memref<2x32x32xf32, #tpu.memory_space<vmem>>, vector<1x32x32xf32>
    %9 = vector.shape_cast %8 : vector<1x32x32xf32> to vector<32x32xf32>
    %10 = vector.extract_strided_slice %0 {offsets = [2, 0], sizes = [1, 32], strides = [1, 1]} : vector<20x128xf32> to vector<1x32xf32>
    %11 = vector.extract_strided_slice %0 {offsets = [3, 0], sizes = [1, 32], strides = [1, 1]} : vector<20x128xf32> to vector<1x32xf32>
    %cst_13 = arith.constant dense<0.000000e+00> : vector<32xf32>
    %12 = vector.multi_reduction <add>, %5, %cst_13 [1] : vector<32x32xf32> to vector<32xf32>
    %13 = vector.shape_cast %12 : vector<32xf32> to vector<32x1xf32>
    %cst_14 = arith.constant 3.200000e+01 : f32
    %14 = vector.broadcast %cst_14 : f32 to vector<32x1xf32>
    %15 = arith.divf %13, %14 : vector<32x1xf32>
    %16 = vector.broadcast %15 : vector<32x1xf32> to vector<32x32xf32>
    %17 = arith.subf %5, %16 : vector<32x32xf32>
    %18 = arith.mulf %17, %17 : vector<32x32xf32>
    %cst_15 = arith.constant dense<0.000000e+00> : vector<32xf32>
    %19 = vector.multi_reduction <add>, %18, %cst_15 [1] : vector<32x32xf32> to vector<32xf32>
    %20 = vector.shape_cast %19 : vector<32xf32> to vector<32x1xf32>
    %cst_16 = arith.constant 3.200000e+01 : f32
    %21 = vector.broadcast %cst_16 : f32 to vector<32x1xf32>
    %22 = arith.divf %20, %21 : vector<32x1xf32>
    %23 = vector.broadcast %15 : vector<32x1xf32> to vector<32x32xf32>
    %24 = arith.subf %5, %23 : vector<32x32xf32>
    %cst_17 = arith.constant 9.99999974E-6 : f32
    %25 = vector.broadcast %cst_17 : f32 to vector<32x1xf32>
    %26 = arith.addf %22, %25 : vector<32x1xf32>
    %27 = math.rsqrt %26 : vector<32x1xf32>
    %28 = vector.broadcast %27 : vector<32x1xf32> to vector<32x32xf32>
    %29 = arith.mulf %24, %28 : vector<32x32xf32>
    %30 = vector.broadcast %10 : vector<1x32xf32> to vector<32x32xf32>
    %31 = arith.mulf %29, %30 : vector<32x32xf32>
    %32 = vector.broadcast %11 : vector<1x32xf32> to vector<32x32xf32>
    %33 = arith.addf %31, %32 : vector<32x32xf32>
    %cst_18 = arith.constant dense<0.000000e+00> : vector<32x96xf32>
    %34 = tpu.matmul %33, %7, %cst_18 {dimension_numbers = #tpu.dot_dimension_numbers<[1], [0], [0], [1], [0, 0, 1, 1], [], []>} : vector<32x32xf32>, vector<32x96xf32>, vector<32x96xf32> -> vector<32x96xf32>
    %cst_19 = arith.constant 0.000000e+00 : f32
    %35 = vector.broadcast %cst_19 : f32 to vector<32x32xf32>
    %36 = vector.extract_strided_slice %34 {offsets = [0, 0], sizes = [16, 8], strides = [1, 1]} : vector<32x96xf32> to vector<16x8xf32>
    %37 = vector.extract_strided_slice %34 {offsets = [0, 32], sizes = [16, 8], strides = [1, 1]} : vector<32x96xf32> to vector<16x8xf32>
    %38 = vector.extract_strided_slice %34 {offsets = [0, 64], sizes = [16, 8], strides = [1, 1]} : vector<32x96xf32> to vector<16x8xf32>
    %cst_20 = arith.constant dense<0.000000e+00> : vector<16x16xf32>
    %39 = tpu.matmul %36, %37, %cst_20 {dimension_numbers = #tpu.dot_dimension_numbers<[1], [1], [0], [0], [0, 0, 1, 0], [], []>} : vector<16x8xf32>, vector<16x8xf32>, vector<16x16xf32> -> vector<16x16xf32>
    %cst_21 = arith.constant dense<0xFF800000> : vector<16xf32>
    %40 = vector.multi_reduction <maximumf>, %39, %cst_21 [1] : vector<16x16xf32> to vector<16xf32>
    %41 = vector.shape_cast %40 : vector<16xf32> to vector<16x1xf32>
    %42 = vector.broadcast %41 : vector<16x1xf32> to vector<16x16xf32>
    %43 = arith.subf %39, %42 : vector<16x16xf32>
    %44 = math.exp %43 : vector<16x16xf32>
    %cst_22 = arith.constant dense<0.000000e+00> : vector<16xf32>
    %45 = vector.multi_reduction <add>, %44, %cst_22 [1] : vector<16x16xf32> to vector<16xf32>
    %46 = vector.shape_cast %45 : vector<16xf32> to vector<16x1xf32>
    %47 = tpu.reciprocal %46 {approx = true} : vector<16x1xf32> -> vector<16x1xf32>
    %48 = vector.broadcast %47 : vector<16x1xf32> to vector<16x16xf32>
    %49 = arith.mulf %44, %48 : vector<16x16xf32>
    %cst_23 = arith.constant dense<0.000000e+00> : vector<16x8xf32>
    %50 = tpu.matmul %49, %38, %cst_23 {dimension_numbers = #tpu.dot_dimension_numbers<[1], [0], [0], [1], [0, 0, 1, 1], [], []>} : vector<16x16xf32>, vector<16x8xf32>, vector<16x8xf32> -> vector<16x8xf32>
    %51 = vector.extract_strided_slice %34 {offsets = [16, 0], sizes = [16, 8], strides = [1, 1]} : vector<32x96xf32> to vector<16x8xf32>
    %52 = vector.extract_strided_slice %34 {offsets = [16, 32], sizes = [16, 8], strides = [1, 1]} : vector<32x96xf32> to vector<16x8xf32>
    %53 = vector.extract_strided_slice %34 {offsets = [16, 64], sizes = [16, 8], strides = [1, 1]} : vector<32x96xf32> to vector<16x8xf32>
    %cst_24 = arith.constant dense<0.000000e+00> : vector<16x16xf32>
    %54 = tpu.matmul %51, %52, %cst_24 {dimension_numbers = #tpu.dot_dimension_numbers<[1], [1], [0], [0], [0, 0, 1, 0], [], []>} : vector<16x8xf32>, vector<16x8xf32>, vector<16x16xf32> -> vector<16x16xf32>
    %cst_25 = arith.constant dense<0xFF800000> : vector<16xf32>
    %55 = vector.multi_reduction <maximumf>, %54, %cst_25 [1] : vector<16x16xf32> to vector<16xf32>
    %56 = vector.shape_cast %55 : vector<16xf32> to vector<16x1xf32>
    %57 = vector.broadcast %56 : vector<16x1xf32> to vector<16x16xf32>
    %58 = arith.subf %54, %57 : vector<16x16xf32>
    %59 = math.exp %58 : vector<16x16xf32>
    %cst_26 = arith.constant dense<0.000000e+00> : vector<16xf32>
    %60 = vector.multi_reduction <add>, %59, %cst_26 [1] : vector<16x16xf32> to vector<16xf32>
    %61 = vector.shape_cast %60 : vector<16xf32> to vector<16x1xf32>
    %62 = tpu.reciprocal %61 {approx = true} : vector<16x1xf32> -> vector<16x1xf32>
    %63 = vector.broadcast %62 : vector<16x1xf32> to vector<16x16xf32>
    %64 = arith.mulf %59, %63 : vector<16x16xf32>
    %cst_27 = arith.constant dense<0.000000e+00> : vector<16x8xf32>
    %65 = tpu.matmul %64, %53, %cst_27 {dimension_numbers = #tpu.dot_dimension_numbers<[1], [0], [0], [1], [0, 0, 1, 1], [], []>} : vector<16x16xf32>, vector<16x8xf32>, vector<16x8xf32> -> vector<16x8xf32>
    %66 = tpu.concatenate %50, %65 in 0 : vector<16x8xf32>, vector<16x8xf32> -> vector<32x8xf32>
    %67 = vector.extract_strided_slice %9 {offsets = [0, 0], sizes = [8, 32], strides = [1, 1]} : vector<32x32xf32> to vector<8x32xf32>
    %cst_28 = arith.constant dense<0.000000e+00> : vector<32x32xf32>
    %68 = tpu.matmul %66, %67, %cst_28 {dimension_numbers = #tpu.dot_dimension_numbers<[1], [0], [0], [1], [0, 0, 1, 1], [], []>} : vector<32x8xf32>, vector<8x32xf32>, vector<32x32xf32> -> vector<32x32xf32>
    %69 = arith.addf %35, %68 : vector<32x32xf32>
    %70 = vector.extract_strided_slice %34 {offsets = [0, 8], sizes = [16, 8], strides = [1, 1]} : vector<32x96xf32> to vector<16x8xf32>
    %71 = vector.extract_strided_slice %34 {offsets = [0, 40], sizes = [16, 8], strides = [1, 1]} : vector<32x96xf32> to vector<16x8xf32>
    %72 = vector.extract_strided_slice %34 {offsets = [0, 72], sizes = [16, 8], strides = [1, 1]} : vector<32x96xf32> to vector<16x8xf32>
    %cst_29 = arith.constant dense<0.000000e+00> : vector<16x16xf32>
    %73 = tpu.matmul %70, %71, %cst_29 {dimension_numbers = #tpu.dot_dimension_numbers<[1], [1], [0], [0], [0, 0, 1, 0], [], []>} : vector<16x8xf32>, vector<16x8xf32>, vector<16x16xf32> -> vector<16x16xf32>
    %cst_30 = arith.constant dense<0xFF800000> : vector<16xf32>
    %74 = vector.multi_reduction <maximumf>, %73, %cst_30 [1] : vector<16x16xf32> to vector<16xf32>
    %75 = vector.shape_cast %74 : vector<16xf32> to vector<16x1xf32>
    %76 = vector.broadcast %75 : vector<16x1xf32> to vector<16x16xf32>
    %77 = arith.subf %73, %76 : vector<16x16xf32>
    %78 = math.exp %77 : vector<16x16xf32>
    %cst_31 = arith.constant dense<0.000000e+00> : vector<16xf32>
    %79 = vector.multi_reduction <add>, %78, %cst_31 [1] : vector<16x16xf32> to vector<16xf32>
    %80 = vector.shape_cast %79 : vector<16xf32> to vector<16x1xf32>
    %81 = tpu.reciprocal %80 {approx = true} : vector<16x1xf32> -> vector<16x1xf32>
    %82 = vector.broadcast %81 : vector<16x1xf32> to vector<16x16xf32>
    %83 = arith.mulf %78, %82 : vector<16x16xf32>
    %cst_32 = arith.constant dense<0.000000e+00> : vector<16x8xf32>
    %84 = tpu.matmul %83, %72, %cst_32 {dimension_numbers = #tpu.dot_dimension_numbers<[1], [0], [0], [1], [0, 0, 1, 1], [], []>} : vector<16x16xf32>, vector<16x8xf32>, vector<16x8xf32> -> vector<16x8xf32>
    %85 = vector.extract_strided_slice %34 {offsets = [16, 8], sizes = [16, 8], strides = [1, 1]} : vector<32x96xf32> to vector<16x8xf32>
    %86 = vector.extract_strided_slice %34 {offsets = [16, 40], sizes = [16, 8], strides = [1, 1]} : vector<32x96xf32> to vector<16x8xf32>
    %87 = vector.extract_strided_slice %34 {offsets = [16, 72], sizes = [16, 8], strides = [1, 1]} : vector<32x96xf32> to vector<16x8xf32>
    %cst_33 = arith.constant dense<0.000000e+00> : vector<16x16xf32>
    %88 = tpu.matmul %85, %86, %cst_33 {dimension_numbers = #tpu.dot_dimension_numbers<[1], [1], [0], [0], [0, 0, 1, 0], [], []>} : vector<16x8xf32>, vector<16x8xf32>, vector<16x16xf32> -> vector<16x16xf32>
    %cst_34 = arith.constant dense<0xFF800000> : vector<16xf32>
    %89 = vector.multi_reduction <maximumf>, %88, %cst_34 [1] : vector<16x16xf32> to vector<16xf32>
    %90 = vector.shape_cast %89 : vector<16xf32> to vector<16x1xf32>
    %91 = vector.broadcast %90 : vector<16x1xf32> to vector<16x16xf32>
    %92 = arith.subf %88, %91 : vector<16x16xf32>
    %93 = math.exp %92 : vector<16x16xf32>
    %cst_35 = arith.constant dense<0.000000e+00> : vector<16xf32>
    %94 = vector.multi_reduction <add>, %93, %cst_35 [1] : vector<16x16xf32> to vector<16xf32>
    %95 = vector.shape_cast %94 : vector<16xf32> to vector<16x1xf32>
    %96 = tpu.reciprocal %95 {approx = true} : vector<16x1xf32> -> vector<16x1xf32>
    %97 = vector.broadcast %96 : vector<16x1xf32> to vector<16x16xf32>
    %98 = arith.mulf %93, %97 : vector<16x16xf32>
    %cst_36 = arith.constant dense<0.000000e+00> : vector<16x8xf32>
    %99 = tpu.matmul %98, %87, %cst_36 {dimension_numbers = #tpu.dot_dimension_numbers<[1], [0], [0], [1], [0, 0, 1, 1], [], []>} : vector<16x16xf32>, vector<16x8xf32>, vector<16x8xf32> -> vector<16x8xf32>
    %100 = tpu.concatenate %84, %99 in 0 : vector<16x8xf32>, vector<16x8xf32> -> vector<32x8xf32>
    %101 = vector.extract_strided_slice %9 {offsets = [8, 0], sizes = [8, 32], strides = [1, 1]} : vector<32x32xf32> to vector<8x32xf32>
    %cst_37 = arith.constant dense<0.000000e+00> : vector<32x32xf32>
    %102 = tpu.matmul %100, %101, %cst_37 {dimension_numbers = #tpu.dot_dimension_numbers<[1], [0], [0], [1], [0, 0, 1, 1], [], []>} : vector<32x8xf32>, vector<8x32xf32>, vector<32x32xf32> -> vector<32x32xf32>
    %103 = arith.addf %69, %102 : vector<32x32xf32>
    %104 = vector.extract_strided_slice %34 {offsets = [0, 16], sizes = [16, 8], strides = [1, 1]} : vector<32x96xf32> to vector<16x8xf32>
    %105 = vector.extract_strided_slice %34 {offsets = [0, 48], sizes = [16, 8], strides = [1, 1]} : vector<32x96xf32> to vector<16x8xf32>
    %106 = vector.extract_strided_slice %34 {offsets = [0, 80], sizes = [16, 8], strides = [1, 1]} : vector<32x96xf32> to vector<16x8xf32>
    %cst_38 = arith.constant dense<0.000000e+00> : vector<16x16xf32>
    %107 = tpu.matmul %104, %105, %cst_38 {dimension_numbers = #tpu.dot_dimension_numbers<[1], [1], [0], [0], [0, 0, 1, 0], [], []>} : vector<16x8xf32>, vector<16x8xf32>, vector<16x16xf32> -> vector<16x16xf32>
    %cst_39 = arith.constant dense<0xFF800000> : vector<16xf32>
    %108 = vector.multi_reduction <maximumf>, %107, %cst_39 [1] : vector<16x16xf32> to vector<16xf32>
    %109 = vector.shape_cast %108 : vector<16xf32> to vector<16x1xf32>
    %110 = vector.broadcast %109 : vector<16x1xf32> to vector<16x16xf32>
    %111 = arith.subf %107, %110 : vector<16x16xf32>
    %112 = math.exp %111 : vector<16x16xf32>
    %cst_40 = arith.constant dense<0.000000e+00> : vector<16xf32>
    %113 = vector.multi_reduction <add>, %112, %cst_40 [1] : vector<16x16xf32> to vector<16xf32>
    %114 = vector.shape_cast %113 : vector<16xf32> to vector<16x1xf32>
    %115 = tpu.reciprocal %114 {approx = true} : vector<16x1xf32> -> vector<16x1xf32>
    %116 = vector.broadcast %115 : vector<16x1xf32> to vector<16x16xf32>
    %117 = arith.mulf %112, %116 : vector<16x16xf32>
    %cst_41 = arith.constant dense<0.000000e+00> : vector<16x8xf32>
    %118 = tpu.matmul %117, %106, %cst_41 {dimension_numbers = #tpu.dot_dimension_numbers<[1], [0], [0], [1], [0, 0, 1, 1], [], []>} : vector<16x16xf32>, vector<16x8xf32>, vector<16x8xf32> -> vector<16x8xf32>
    %119 = vector.extract_strided_slice %34 {offsets = [16, 16], sizes = [16, 8], strides = [1, 1]} : vector<32x96xf32> to vector<16x8xf32>
    %120 = vector.extract_strided_slice %34 {offsets = [16, 48], sizes = [16, 8], strides = [1, 1]} : vector<32x96xf32> to vector<16x8xf32>
    %121 = vector.extract_strided_slice %34 {offsets = [16, 80], sizes = [16, 8], strides = [1, 1]} : vector<32x96xf32> to vector<16x8xf32>
    %cst_42 = arith.constant dense<0.000000e+00> : vector<16x16xf32>
    %122 = tpu.matmul %119, %120, %cst_42 {dimension_numbers = #tpu.dot_dimension_numbers<[1], [1], [0], [0], [0, 0, 1, 0], [], []>} : vector<16x8xf32>, vector<16x8xf32>, vector<16x16xf32> -> vector<16x16xf32>
    %cst_43 = arith.constant dense<0xFF800000> : vector<16xf32>
    %123 = vector.multi_reduction <maximumf>, %122, %cst_43 [1] : vector<16x16xf32> to vector<16xf32>
    %124 = vector.shape_cast %123 : vector<16xf32> to vector<16x1xf32>
    %125 = vector.broadcast %124 : vector<16x1xf32> to vector<16x16xf32>
    %126 = arith.subf %122, %125 : vector<16x16xf32>
    %127 = math.exp %126 : vector<16x16xf32>
    %cst_44 = arith.constant dense<0.000000e+00> : vector<16xf32>
    %128 = vector.multi_reduction <add>, %127, %cst_44 [1] : vector<16x16xf32> to vector<16xf32>
    %129 = vector.shape_cast %128 : vector<16xf32> to vector<16x1xf32>
    %130 = tpu.reciprocal %129 {approx = true} : vector<16x1xf32> -> vector<16x1xf32>
    %131 = vector.broadcast %130 : vector<16x1xf32> to vector<16x16xf32>
    %132 = arith.mulf %127, %131 : vector<16x16xf32>
    %cst_45 = arith.constant dense<0.000000e+00> : vector<16x8xf32>
    %133 = tpu.matmul %132, %121, %cst_45 {dimension_numbers = #tpu.dot_dimension_numbers<[1], [0], [0], [1], [0, 0, 1, 1], [], []>} : vector<16x16xf32>, vector<16x8xf32>, vector<16x8xf32> -> vector<16x8xf32>
    %134 = tpu.concatenate %118, %133 in 0 : vector<16x8xf32>, vector<16x8xf32> -> vector<32x8xf32>
    %135 = vector.extract_strided_slice %9 {offsets = [16, 0], sizes = [8, 32], strides = [1, 1]} : vector<32x32xf32> to vector<8x32xf32>
    %cst_46 = arith.constant dense<0.000000e+00> : vector<32x32xf32>
    %136 = tpu.matmul %134, %135, %cst_46 {dimension_numbers = #tpu.dot_dimension_numbers<[1], [0], [0], [1], [0, 0, 1, 1], [], []>} : vector<32x8xf32>, vector<8x32xf32>, vector<32x32xf32> -> vector<32x32xf32>
    %137 = arith.addf %103, %136 : vector<32x32xf32>
    %138 = vector.extract_strided_slice %34 {offsets = [0, 24], sizes = [16, 8], strides = [1, 1]} : vector<32x96xf32> to vector<16x8xf32>
    %139 = vector.extract_strided_slice %34 {offsets = [0, 56], sizes = [16, 8], strides = [1, 1]} : vector<32x96xf32> to vector<16x8xf32>
    %140 = vector.extract_strided_slice %34 {offsets = [0, 88], sizes = [16, 8], strides = [1, 1]} : vector<32x96xf32> to vector<16x8xf32>
    %cst_47 = arith.constant dense<0.000000e+00> : vector<16x16xf32>
    %141 = tpu.matmul %138, %139, %cst_47 {dimension_numbers = #tpu.dot_dimension_numbers<[1], [1], [0], [0], [0, 0, 1, 0], [], []>} : vector<16x8xf32>, vector<16x8xf32>, vector<16x16xf32> -> vector<16x16xf32>
    %cst_48 = arith.constant dense<0xFF800000> : vector<16xf32>
    %142 = vector.multi_reduction <maximumf>, %141, %cst_48 [1] : vector<16x16xf32> to vector<16xf32>
    %143 = vector.shape_cast %142 : vector<16xf32> to vector<16x1xf32>
    %144 = vector.broadcast %143 : vector<16x1xf32> to vector<16x16xf32>
    %145 = arith.subf %141, %144 : vector<16x16xf32>
    %146 = math.exp %145 : vector<16x16xf32>
    %cst_49 = arith.constant dense<0.000000e+00> : vector<16xf32>
    %147 = vector.multi_reduction <add>, %146, %cst_49 [1] : vector<16x16xf32> to vector<16xf32>
    %148 = vector.shape_cast %147 : vector<16xf32> to vector<16x1xf32>
    %149 = tpu.reciprocal %148 {approx = true} : vector<16x1xf32> -> vector<16x1xf32>
    %150 = vector.broadcast %149 : vector<16x1xf32> to vector<16x16xf32>
    %151 = arith.mulf %146, %150 : vector<16x16xf32>
    %cst_50 = arith.constant dense<0.000000e+00> : vector<16x8xf32>
    %152 = tpu.matmul %151, %140, %cst_50 {dimension_numbers = #tpu.dot_dimension_numbers<[1], [0], [0], [1], [0, 0, 1, 1], [], []>} : vector<16x16xf32>, vector<16x8xf32>, vector<16x8xf32> -> vector<16x8xf32>
    %153 = vector.extract_strided_slice %34 {offsets = [16, 24], sizes = [16, 8], strides = [1, 1]} : vector<32x96xf32> to vector<16x8xf32>
    %154 = vector.extract_strided_slice %34 {offsets = [16, 56], sizes = [16, 8], strides = [1, 1]} : vector<32x96xf32> to vector<16x8xf32>
    %155 = vector.extract_strided_slice %34 {offsets = [16, 88], sizes = [16, 8], strides = [1, 1]} : vector<32x96xf32> to vector<16x8xf32>
    %cst_51 = arith.constant dense<0.000000e+00> : vector<16x16xf32>
    %156 = tpu.matmul %153, %154, %cst_51 {dimension_numbers = #tpu.dot_dimension_numbers<[1], [1], [0], [0], [0, 0, 1, 0], [], []>} : vector<16x8xf32>, vector<16x8xf32>, vector<16x16xf32> -> vector<16x16xf32>
    %cst_52 = arith.constant dense<0xFF800000> : vector<16xf32>
    %157 = vector.multi_reduction <maximumf>, %156, %cst_52 [1] : vector<16x16xf32> to vector<16xf32>
    %158 = vector.shape_cast %157 : vector<16xf32> to vector<16x1xf32>
    %159 = vector.broadcast %158 : vector<16x1xf32> to vector<16x16xf32>
    %160 = arith.subf %156, %159 : vector<16x16xf32>
    %161 = math.exp %160 : vector<16x16xf32>
    %cst_53 = arith.constant dense<0.000000e+00> : vector<16xf32>
    %162 = vector.multi_reduction <add>, %161, %cst_53 [1] : vector<16x16xf32> to vector<16xf32>
    %163 = vector.shape_cast %162 : vector<16xf32> to vector<16x1xf32>
    %164 = tpu.reciprocal %163 {approx = true} : vector<16x1xf32> -> vector<16x1xf32>
    %165 = vector.broadcast %164 : vector<16x1xf32> to vector<16x16xf32>
    %166 = arith.mulf %161, %165 : vector<16x16xf32>
    %cst_54 = arith.constant dense<0.000000e+00> : vector<16x8xf32>
    %167 = tpu.matmul %166, %155, %cst_54 {dimension_numbers = #tpu.dot_dimension_numbers<[1], [0], [0], [1], [0, 0, 1, 1], [], []>} : vector<16x16xf32>, vector<16x8xf32>, vector<16x8xf32> -> vector<16x8xf32>
    %168 = tpu.concatenate %152, %167 in 0 : vector<16x8xf32>, vector<16x8xf32> -> vector<32x8xf32>
    %169 = vector.extract_strided_slice %9 {offsets = [24, 0], sizes = [8, 32], strides = [1, 1]} : vector<32x32xf32> to vector<8x32xf32>
    %cst_55 = arith.constant dense<0.000000e+00> : vector<32x32xf32>
    %170 = tpu.matmul %168, %169, %cst_55 {dimension_numbers = #tpu.dot_dimension_numbers<[1], [0], [0], [1], [0, 0, 1, 1], [], []>} : vector<32x8xf32>, vector<8x32xf32>, vector<32x32xf32> -> vector<32x32xf32>
    %171 = arith.addf %137, %170 : vector<32x32xf32>
    %172 = arith.addf %5, %171 : vector<32x32xf32>
    %173 = vector.extract_strided_slice %0 {offsets = [4, 0], sizes = [1, 32], strides = [1, 1]} : vector<20x128xf32> to vector<1x32xf32>
    %174 = vector.broadcast %173 : vector<1x32xf32> to vector<32x32xf32>
    %175 = arith.addf %172, %174 : vector<32x32xf32>
    %176 = vector.extract_strided_slice %0 {offsets = [5, 0], sizes = [1, 32], strides = [1, 1]} : vector<20x128xf32> to vector<1x32xf32>
    %177 = vector.extract_strided_slice %0 {offsets = [6, 0], sizes = [1, 32], strides = [1, 1]} : vector<20x128xf32> to vector<1x32xf32>
    %cst_56 = arith.constant dense<0.000000e+00> : vector<32xf32>
    %178 = vector.multi_reduction <add>, %175, %cst_56 [1] : vector<32x32xf32> to vector<32xf32>
    %179 = vector.shape_cast %178 : vector<32xf32> to vector<32x1xf32>
    %cst_57 = arith.constant 3.200000e+01 : f32
    %180 = vector.broadcast %cst_57 : f32 to vector<32x1xf32>
    %181 = arith.divf %179, %180 : vector<32x1xf32>
    %182 = vector.broadcast %181 : vector<32x1xf32> to vector<32x32xf32>
    %183 = arith.subf %175, %182 : vector<32x32xf32>
    %184 = arith.mulf %183, %183 : vector<32x32xf32>
    %cst_58 = arith.constant dense<0.000000e+00> : vector<32xf32>
    %185 = vector.multi_reduction <add>, %184, %cst_58 [1] : vector<32x32xf32> to vector<32xf32>
    %186 = vector.shape_cast %185 : vector<32xf32> to vector<32x1xf32>
    %cst_59 = arith.constant 3.200000e+01 : f32
    %187 = vector.broadcast %cst_59 : f32 to vector<32x1xf32>
    %188 = arith.divf %186, %187 : vector<32x1xf32>
    %189 = vector.broadcast %181 : vector<32x1xf32> to vector<32x32xf32>
    %190 = arith.subf %175, %189 : vector<32x32xf32>
    %cst_60 = arith.constant 9.99999974E-6 : f32
    %191 = vector.broadcast %cst_60 : f32 to vector<32x1xf32>
    %192 = arith.addf %188, %191 : vector<32x1xf32>
    %193 = math.rsqrt %192 : vector<32x1xf32>
    %194 = vector.broadcast %193 : vector<32x1xf32> to vector<32x32xf32>
    %195 = arith.mulf %190, %194 : vector<32x32xf32>
    %196 = vector.broadcast %176 : vector<1x32xf32> to vector<32x32xf32>
    %197 = arith.mulf %195, %196 : vector<32x32xf32>
    %198 = vector.broadcast %177 : vector<1x32xf32> to vector<32x32xf32>
    %199 = arith.addf %197, %198 : vector<32x32xf32>
    %c0_61 = arith.constant 0 : index
    %c0_62 = arith.constant 0 : index
    %c0_63 = arith.constant 0 : index
    %200 = vector.load %arg5[%c0_61, %c0_62, %c0_63] : memref<2x32x128xf32, #tpu.memory_space<vmem>>, vector<1x32x128xf32>
    %201 = vector.shape_cast %200 : vector<1x32x128xf32> to vector<32x128xf32>
    %cst_64 = arith.constant dense<0.000000e+00> : vector<32x128xf32>
    %202 = tpu.matmul %199, %201, %cst_64 {dimension_numbers = #tpu.dot_dimension_numbers<[1], [0], [0], [1], [0, 0, 1, 1], [], []>} : vector<32x32xf32>, vector<32x128xf32>, vector<32x128xf32> -> vector<32x128xf32>
    %203 = vector.extract_strided_slice %0 {offsets = [7, 0], sizes = [1, 128], strides = [1, 1]} : vector<20x128xf32> to vector<1x128xf32>
    %204 = vector.broadcast %203 : vector<1x128xf32> to vector<32x128xf32>
    %205 = arith.addf %202, %204 : vector<32x128xf32>
    %cst_65 = arith.constant 0.000000e+00 : f32
    %cst_66 = arith.constant 6.000000e+00 : f32
    %206 = vector.broadcast %cst_65 : f32 to vector<32x128xf32>
    %207 = arith.maximumf %206, %205 : vector<32x128xf32>
    %208 = vector.broadcast %cst_66 : f32 to vector<32x128xf32>
    %209 = arith.minimumf %208, %207 : vector<32x128xf32>
    %c0_67 = arith.constant 0 : index
    %c0_68 = arith.constant 0 : index
    %c0_69 = arith.constant 0 : index
    %210 = vector.load %arg6[%c0_67, %c0_68, %c0_69] : memref<2x128x32xf32, #tpu.memory_space<vmem>>, vector<1x128x32xf32>
    %211 = vector.shape_cast %210 : vector<1x128x32xf32> to vector<128x32xf32>
    %cst_70 = arith.constant dense<0.000000e+00> : vector<32x32xf32>
    %212 = tpu.matmul %209, %211, %cst_70 {dimension_numbers = #tpu.dot_dimension_numbers<[1], [0], [0], [1], [0, 0, 1, 1], [], []>} : vector<32x128xf32>, vector<128x32xf32>, vector<32x32xf32> -> vector<32x32xf32>
    %213 = arith.addf %175, %212 : vector<32x32xf32>
    %214 = vector.extract_strided_slice %0 {offsets = [8, 0], sizes = [1, 32], strides = [1, 1]} : vector<20x128xf32> to vector<1x32xf32>
    %215 = vector.broadcast %214 : vector<1x32xf32> to vector<32x32xf32>
    %216 = arith.addf %213, %215 : vector<32x32xf32>
    %c1 = arith.constant 1 : index
    %c0_71 = arith.constant 0 : index
    %c0_72 = arith.constant 0 : index
    %217 = vector.load %arg3[%c1, %c0_71, %c0_72] : memref<2x32x96xf32, #tpu.memory_space<vmem>>, vector<1x32x96xf32>
    %218 = vector.shape_cast %217 : vector<1x32x96xf32> to vector<32x96xf32>
    %c1_73 = arith.constant 1 : index
    %c0_74 = arith.constant 0 : index
    %c0_75 = arith.constant 0 : index
    %219 = vector.load %arg4[%c1_73, %c0_74, %c0_75] : memref<2x32x32xf32, #tpu.memory_space<vmem>>, vector<1x32x32xf32>
    %220 = vector.shape_cast %219 : vector<1x32x32xf32> to vector<32x32xf32>
    %221 = vector.extract_strided_slice %0 {offsets = [9, 0], sizes = [1, 32], strides = [1, 1]} : vector<20x128xf32> to vector<1x32xf32>
    %222 = vector.extract_strided_slice %0 {offsets = [10, 0], sizes = [1, 32], strides = [1, 1]} : vector<20x128xf32> to vector<1x32xf32>
    %cst_76 = arith.constant dense<0.000000e+00> : vector<32xf32>
    %223 = vector.multi_reduction <add>, %216, %cst_76 [1] : vector<32x32xf32> to vector<32xf32>
    %224 = vector.shape_cast %223 : vector<32xf32> to vector<32x1xf32>
    %cst_77 = arith.constant 3.200000e+01 : f32
    %225 = vector.broadcast %cst_77 : f32 to vector<32x1xf32>
    %226 = arith.divf %224, %225 : vector<32x1xf32>
    %227 = vector.broadcast %226 : vector<32x1xf32> to vector<32x32xf32>
    %228 = arith.subf %216, %227 : vector<32x32xf32>
    %229 = arith.mulf %228, %228 : vector<32x32xf32>
    %cst_78 = arith.constant dense<0.000000e+00> : vector<32xf32>
    %230 = vector.multi_reduction <add>, %229, %cst_78 [1] : vector<32x32xf32> to vector<32xf32>
    %231 = vector.shape_cast %230 : vector<32xf32> to vector<32x1xf32>
    %cst_79 = arith.constant 3.200000e+01 : f32
    %232 = vector.broadcast %cst_79 : f32 to vector<32x1xf32>
    %233 = arith.divf %231, %232 : vector<32x1xf32>
    %234 = vector.broadcast %226 : vector<32x1xf32> to vector<32x32xf32>
    %235 = arith.subf %216, %234 : vector<32x32xf32>
    %cst_80 = arith.constant 9.99999974E-6 : f32
    %236 = vector.broadcast %cst_80 : f32 to vector<32x1xf32>
    %237 = arith.addf %233, %236 : vector<32x1xf32>
    %238 = math.rsqrt %237 : vector<32x1xf32>
    %239 = vector.broadcast %238 : vector<32x1xf32> to vector<32x32xf32>
    %240 = arith.mulf %235, %239 : vector<32x32xf32>
    %241 = vector.broadcast %221 : vector<1x32xf32> to vector<32x32xf32>
    %242 = arith.mulf %240, %241 : vector<32x32xf32>
    %243 = vector.broadcast %222 : vector<1x32xf32> to vector<32x32xf32>
    %244 = arith.addf %242, %243 : vector<32x32xf32>
    %cst_81 = arith.constant dense<0.000000e+00> : vector<32x96xf32>
    %245 = tpu.matmul %244, %218, %cst_81 {dimension_numbers = #tpu.dot_dimension_numbers<[1], [0], [0], [1], [0, 0, 1, 1], [], []>} : vector<32x32xf32>, vector<32x96xf32>, vector<32x96xf32> -> vector<32x96xf32>
    %cst_82 = arith.constant 0.000000e+00 : f32
    %246 = vector.broadcast %cst_82 : f32 to vector<32x32xf32>
    %247 = vector.extract_strided_slice %245 {offsets = [0, 0], sizes = [16, 8], strides = [1, 1]} : vector<32x96xf32> to vector<16x8xf32>
    %248 = vector.extract_strided_slice %245 {offsets = [0, 32], sizes = [16, 8], strides = [1, 1]} : vector<32x96xf32> to vector<16x8xf32>
    %249 = vector.extract_strided_slice %245 {offsets = [0, 64], sizes = [16, 8], strides = [1, 1]} : vector<32x96xf32> to vector<16x8xf32>
    %cst_83 = arith.constant dense<0.000000e+00> : vector<16x16xf32>
    %250 = tpu.matmul %247, %248, %cst_83 {dimension_numbers = #tpu.dot_dimension_numbers<[1], [1], [0], [0], [0, 0, 1, 0], [], []>} : vector<16x8xf32>, vector<16x8xf32>, vector<16x16xf32> -> vector<16x16xf32>
    %cst_84 = arith.constant dense<0xFF800000> : vector<16xf32>
    %251 = vector.multi_reduction <maximumf>, %250, %cst_84 [1] : vector<16x16xf32> to vector<16xf32>
    %252 = vector.shape_cast %251 : vector<16xf32> to vector<16x1xf32>
    %253 = vector.broadcast %252 : vector<16x1xf32> to vector<16x16xf32>
    %254 = arith.subf %250, %253 : vector<16x16xf32>
    %255 = math.exp %254 : vector<16x16xf32>
    %cst_85 = arith.constant dense<0.000000e+00> : vector<16xf32>
    %256 = vector.multi_reduction <add>, %255, %cst_85 [1] : vector<16x16xf32> to vector<16xf32>
    %257 = vector.shape_cast %256 : vector<16xf32> to vector<16x1xf32>
    %258 = tpu.reciprocal %257 {approx = true} : vector<16x1xf32> -> vector<16x1xf32>
    %259 = vector.broadcast %258 : vector<16x1xf32> to vector<16x16xf32>
    %260 = arith.mulf %255, %259 : vector<16x16xf32>
    %cst_86 = arith.constant dense<0.000000e+00> : vector<16x8xf32>
    %261 = tpu.matmul %260, %249, %cst_86 {dimension_numbers = #tpu.dot_dimension_numbers<[1], [0], [0], [1], [0, 0, 1, 1], [], []>} : vector<16x16xf32>, vector<16x8xf32>, vector<16x8xf32> -> vector<16x8xf32>
    %262 = vector.extract_strided_slice %245 {offsets = [16, 0], sizes = [16, 8], strides = [1, 1]} : vector<32x96xf32> to vector<16x8xf32>
    %263 = vector.extract_strided_slice %245 {offsets = [16, 32], sizes = [16, 8], strides = [1, 1]} : vector<32x96xf32> to vector<16x8xf32>
    %264 = vector.extract_strided_slice %245 {offsets = [16, 64], sizes = [16, 8], strides = [1, 1]} : vector<32x96xf32> to vector<16x8xf32>
    %cst_87 = arith.constant dense<0.000000e+00> : vector<16x16xf32>
    %265 = tpu.matmul %262, %263, %cst_87 {dimension_numbers = #tpu.dot_dimension_numbers<[1], [1], [0], [0], [0, 0, 1, 0], [], []>} : vector<16x8xf32>, vector<16x8xf32>, vector<16x16xf32> -> vector<16x16xf32>
    %cst_88 = arith.constant dense<0xFF800000> : vector<16xf32>
    %266 = vector.multi_reduction <maximumf>, %265, %cst_88 [1] : vector<16x16xf32> to vector<16xf32>
    %267 = vector.shape_cast %266 : vector<16xf32> to vector<16x1xf32>
    %268 = vector.broadcast %267 : vector<16x1xf32> to vector<16x16xf32>
    %269 = arith.subf %265, %268 : vector<16x16xf32>
    %270 = math.exp %269 : vector<16x16xf32>
    %cst_89 = arith.constant dense<0.000000e+00> : vector<16xf32>
    %271 = vector.multi_reduction <add>, %270, %cst_89 [1] : vector<16x16xf32> to vector<16xf32>
    %272 = vector.shape_cast %271 : vector<16xf32> to vector<16x1xf32>
    %273 = tpu.reciprocal %272 {approx = true} : vector<16x1xf32> -> vector<16x1xf32>
    %274 = vector.broadcast %273 : vector<16x1xf32> to vector<16x16xf32>
    %275 = arith.mulf %270, %274 : vector<16x16xf32>
    %cst_90 = arith.constant dense<0.000000e+00> : vector<16x8xf32>
    %276 = tpu.matmul %275, %264, %cst_90 {dimension_numbers = #tpu.dot_dimension_numbers<[1], [0], [0], [1], [0, 0, 1, 1], [], []>} : vector<16x16xf32>, vector<16x8xf32>, vector<16x8xf32> -> vector<16x8xf32>
    %277 = tpu.concatenate %261, %276 in 0 : vector<16x8xf32>, vector<16x8xf32> -> vector<32x8xf32>
    %278 = vector.extract_strided_slice %220 {offsets = [0, 0], sizes = [8, 32], strides = [1, 1]} : vector<32x32xf32> to vector<8x32xf32>
    %cst_91 = arith.constant dense<0.000000e+00> : vector<32x32xf32>
    %279 = tpu.matmul %277, %278, %cst_91 {dimension_numbers = #tpu.dot_dimension_numbers<[1], [0], [0], [1], [0, 0, 1, 1], [], []>} : vector<32x8xf32>, vector<8x32xf32>, vector<32x32xf32> -> vector<32x32xf32>
    %280 = arith.addf %246, %279 : vector<32x32xf32>
    %281 = vector.extract_strided_slice %245 {offsets = [0, 8], sizes = [16, 8], strides = [1, 1]} : vector<32x96xf32> to vector<16x8xf32>
    %282 = vector.extract_strided_slice %245 {offsets = [0, 40], sizes = [16, 8], strides = [1, 1]} : vector<32x96xf32> to vector<16x8xf32>
    %283 = vector.extract_strided_slice %245 {offsets = [0, 72], sizes = [16, 8], strides = [1, 1]} : vector<32x96xf32> to vector<16x8xf32>
    %cst_92 = arith.constant dense<0.000000e+00> : vector<16x16xf32>
    %284 = tpu.matmul %281, %282, %cst_92 {dimension_numbers = #tpu.dot_dimension_numbers<[1], [1], [0], [0], [0, 0, 1, 0], [], []>} : vector<16x8xf32>, vector<16x8xf32>, vector<16x16xf32> -> vector<16x16xf32>
    %cst_93 = arith.constant dense<0xFF800000> : vector<16xf32>
    %285 = vector.multi_reduction <maximumf>, %284, %cst_93 [1] : vector<16x16xf32> to vector<16xf32>
    %286 = vector.shape_cast %285 : vector<16xf32> to vector<16x1xf32>
    %287 = vector.broadcast %286 : vector<16x1xf32> to vector<16x16xf32>
    %288 = arith.subf %284, %287 : vector<16x16xf32>
    %289 = math.exp %288 : vector<16x16xf32>
    %cst_94 = arith.constant dense<0.000000e+00> : vector<16xf32>
    %290 = vector.multi_reduction <add>, %289, %cst_94 [1] : vector<16x16xf32> to vector<16xf32>
    %291 = vector.shape_cast %290 : vector<16xf32> to vector<16x1xf32>
    %292 = tpu.reciprocal %291 {approx = true} : vector<16x1xf32> -> vector<16x1xf32>
    %293 = vector.broadcast %292 : vector<16x1xf32> to vector<16x16xf32>
    %294 = arith.mulf %289, %293 : vector<16x16xf32>
    %cst_95 = arith.constant dense<0.000000e+00> : vector<16x8xf32>
    %295 = tpu.matmul %294, %283, %cst_95 {dimension_numbers = #tpu.dot_dimension_numbers<[1], [0], [0], [1], [0, 0, 1, 1], [], []>} : vector<16x16xf32>, vector<16x8xf32>, vector<16x8xf32> -> vector<16x8xf32>
    %296 = vector.extract_strided_slice %245 {offsets = [16, 8], sizes = [16, 8], strides = [1, 1]} : vector<32x96xf32> to vector<16x8xf32>
    %297 = vector.extract_strided_slice %245 {offsets = [16, 40], sizes = [16, 8], strides = [1, 1]} : vector<32x96xf32> to vector<16x8xf32>
    %298 = vector.extract_strided_slice %245 {offsets = [16, 72], sizes = [16, 8], strides = [1, 1]} : vector<32x96xf32> to vector<16x8xf32>
    %cst_96 = arith.constant dense<0.000000e+00> : vector<16x16xf32>
    %299 = tpu.matmul %296, %297, %cst_96 {dimension_numbers = #tpu.dot_dimension_numbers<[1], [1], [0], [0], [0, 0, 1, 0], [], []>} : vector<16x8xf32>, vector<16x8xf32>, vector<16x16xf32> -> vector<16x16xf32>
    %cst_97 = arith.constant dense<0xFF800000> : vector<16xf32>
    %300 = vector.multi_reduction <maximumf>, %299, %cst_97 [1] : vector<16x16xf32> to vector<16xf32>
    %301 = vector.shape_cast %300 : vector<16xf32> to vector<16x1xf32>
    %302 = vector.broadcast %301 : vector<16x1xf32> to vector<16x16xf32>
    %303 = arith.subf %299, %302 : vector<16x16xf32>
    %304 = math.exp %303 : vector<16x16xf32>
    %cst_98 = arith.constant dense<0.000000e+00> : vector<16xf32>
    %305 = vector.multi_reduction <add>, %304, %cst_98 [1] : vector<16x16xf32> to vector<16xf32>
    %306 = vector.shape_cast %305 : vector<16xf32> to vector<16x1xf32>
    %307 = tpu.reciprocal %306 {approx = true} : vector<16x1xf32> -> vector<16x1xf32>
    %308 = vector.broadcast %307 : vector<16x1xf32> to vector<16x16xf32>
    %309 = arith.mulf %304, %308 : vector<16x16xf32>
    %cst_99 = arith.constant dense<0.000000e+00> : vector<16x8xf32>
    %310 = tpu.matmul %309, %298, %cst_99 {dimension_numbers = #tpu.dot_dimension_numbers<[1], [0], [0], [1], [0, 0, 1, 1], [], []>} : vector<16x16xf32>, vector<16x8xf32>, vector<16x8xf32> -> vector<16x8xf32>
    %311 = tpu.concatenate %295, %310 in 0 : vector<16x8xf32>, vector<16x8xf32> -> vector<32x8xf32>
    %312 = vector.extract_strided_slice %220 {offsets = [8, 0], sizes = [8, 32], strides = [1, 1]} : vector<32x32xf32> to vector<8x32xf32>
    %cst_100 = arith.constant dense<0.000000e+00> : vector<32x32xf32>
    %313 = tpu.matmul %311, %312, %cst_100 {dimension_numbers = #tpu.dot_dimension_numbers<[1], [0], [0], [1], [0, 0, 1, 1], [], []>} : vector<32x8xf32>, vector<8x32xf32>, vector<32x32xf32> -> vector<32x32xf32>
    %314 = arith.addf %280, %313 : vector<32x32xf32>
    %315 = vector.extract_strided_slice %245 {offsets = [0, 16], sizes = [16, 8], strides = [1, 1]} : vector<32x96xf32> to vector<16x8xf32>
    %316 = vector.extract_strided_slice %245 {offsets = [0, 48], sizes = [16, 8], strides = [1, 1]} : vector<32x96xf32> to vector<16x8xf32>
    %317 = vector.extract_strided_slice %245 {offsets = [0, 80], sizes = [16, 8], strides = [1, 1]} : vector<32x96xf32> to vector<16x8xf32>
    %cst_101 = arith.constant dense<0.000000e+00> : vector<16x16xf32>
    %318 = tpu.matmul %315, %316, %cst_101 {dimension_numbers = #tpu.dot_dimension_numbers<[1], [1], [0], [0], [0, 0, 1, 0], [], []>} : vector<16x8xf32>, vector<16x8xf32>, vector<16x16xf32> -> vector<16x16xf32>
    %cst_102 = arith.constant dense<0xFF800000> : vector<16xf32>
    %319 = vector.multi_reduction <maximumf>, %318, %cst_102 [1] : vector<16x16xf32> to vector<16xf32>
    %320 = vector.shape_cast %319 : vector<16xf32> to vector<16x1xf32>
    %321 = vector.broadcast %320 : vector<16x1xf32> to vector<16x16xf32>
    %322 = arith.subf %318, %321 : vector<16x16xf32>
    %323 = math.exp %322 : vector<16x16xf32>
    %cst_103 = arith.constant dense<0.000000e+00> : vector<16xf32>
    %324 = vector.multi_reduction <add>, %323, %cst_103 [1] : vector<16x16xf32> to vector<16xf32>
    %325 = vector.shape_cast %324 : vector<16xf32> to vector<16x1xf32>
    %326 = tpu.reciprocal %325 {approx = true} : vector<16x1xf32> -> vector<16x1xf32>
    %327 = vector.broadcast %326 : vector<16x1xf32> to vector<16x16xf32>
    %328 = arith.mulf %323, %327 : vector<16x16xf32>
    %cst_104 = arith.constant dense<0.000000e+00> : vector<16x8xf32>
    %329 = tpu.matmul %328, %317, %cst_104 {dimension_numbers = #tpu.dot_dimension_numbers<[1], [0], [0], [1], [0, 0, 1, 1], [], []>} : vector<16x16xf32>, vector<16x8xf32>, vector<16x8xf32> -> vector<16x8xf32>
    %330 = vector.extract_strided_slice %245 {offsets = [16, 16], sizes = [16, 8], strides = [1, 1]} : vector<32x96xf32> to vector<16x8xf32>
    %331 = vector.extract_strided_slice %245 {offsets = [16, 48], sizes = [16, 8], strides = [1, 1]} : vector<32x96xf32> to vector<16x8xf32>
    %332 = vector.extract_strided_slice %245 {offsets = [16, 80], sizes = [16, 8], strides = [1, 1]} : vector<32x96xf32> to vector<16x8xf32>
    %cst_105 = arith.constant dense<0.000000e+00> : vector<16x16xf32>
    %333 = tpu.matmul %330, %331, %cst_105 {dimension_numbers = #tpu.dot_dimension_numbers<[1], [1], [0], [0], [0, 0, 1, 0], [], []>} : vector<16x8xf32>, vector<16x8xf32>, vector<16x16xf32> -> vector<16x16xf32>
    %cst_106 = arith.constant dense<0xFF800000> : vector<16xf32>
    %334 = vector.multi_reduction <maximumf>, %333, %cst_106 [1] : vector<16x16xf32> to vector<16xf32>
    %335 = vector.shape_cast %334 : vector<16xf32> to vector<16x1xf32>
    %336 = vector.broadcast %335 : vector<16x1xf32> to vector<16x16xf32>
    %337 = arith.subf %333, %336 : vector<16x16xf32>
    %338 = math.exp %337 : vector<16x16xf32>
    %cst_107 = arith.constant dense<0.000000e+00> : vector<16xf32>
    %339 = vector.multi_reduction <add>, %338, %cst_107 [1] : vector<16x16xf32> to vector<16xf32>
    %340 = vector.shape_cast %339 : vector<16xf32> to vector<16x1xf32>
    %341 = tpu.reciprocal %340 {approx = true} : vector<16x1xf32> -> vector<16x1xf32>
    %342 = vector.broadcast %341 : vector<16x1xf32> to vector<16x16xf32>
    %343 = arith.mulf %338, %342 : vector<16x16xf32>
    %cst_108 = arith.constant dense<0.000000e+00> : vector<16x8xf32>
    %344 = tpu.matmul %343, %332, %cst_108 {dimension_numbers = #tpu.dot_dimension_numbers<[1], [0], [0], [1], [0, 0, 1, 1], [], []>} : vector<16x16xf32>, vector<16x8xf32>, vector<16x8xf32> -> vector<16x8xf32>
    %345 = tpu.concatenate %329, %344 in 0 : vector<16x8xf32>, vector<16x8xf32> -> vector<32x8xf32>
    %346 = vector.extract_strided_slice %220 {offsets = [16, 0], sizes = [8, 32], strides = [1, 1]} : vector<32x32xf32> to vector<8x32xf32>
    %cst_109 = arith.constant dense<0.000000e+00> : vector<32x32xf32>
    %347 = tpu.matmul %345, %346, %cst_109 {dimension_numbers = #tpu.dot_dimension_numbers<[1], [0], [0], [1], [0, 0, 1, 1], [], []>} : vector<32x8xf32>, vector<8x32xf32>, vector<32x32xf32> -> vector<32x32xf32>
    %348 = arith.addf %314, %347 : vector<32x32xf32>
    %349 = vector.extract_strided_slice %245 {offsets = [0, 24], sizes = [16, 8], strides = [1, 1]} : vector<32x96xf32> to vector<16x8xf32>
    %350 = vector.extract_strided_slice %245 {offsets = [0, 56], sizes = [16, 8], strides = [1, 1]} : vector<32x96xf32> to vector<16x8xf32>
    %351 = vector.extract_strided_slice %245 {offsets = [0, 88], sizes = [16, 8], strides = [1, 1]} : vector<32x96xf32> to vector<16x8xf32>
    %cst_110 = arith.constant dense<0.000000e+00> : vector<16x16xf32>
    %352 = tpu.matmul %349, %350, %cst_110 {dimension_numbers = #tpu.dot_dimension_numbers<[1], [1], [0], [0], [0, 0, 1, 0], [], []>} : vector<16x8xf32>, vector<16x8xf32>, vector<16x16xf32> -> vector<16x16xf32>
    %cst_111 = arith.constant dense<0xFF800000> : vector<16xf32>
    %353 = vector.multi_reduction <maximumf>, %352, %cst_111 [1] : vector<16x16xf32> to vector<16xf32>
    %354 = vector.shape_cast %353 : vector<16xf32> to vector<16x1xf32>
    %355 = vector.broadcast %354 : vector<16x1xf32> to vector<16x16xf32>
    %356 = arith.subf %352, %355 : vector<16x16xf32>
    %357 = math.exp %356 : vector<16x16xf32>
    %cst_112 = arith.constant dense<0.000000e+00> : vector<16xf32>
    %358 = vector.multi_reduction <add>, %357, %cst_112 [1] : vector<16x16xf32> to vector<16xf32>
    %359 = vector.shape_cast %358 : vector<16xf32> to vector<16x1xf32>
    %360 = tpu.reciprocal %359 {approx = true} : vector<16x1xf32> -> vector<16x1xf32>
    %361 = vector.broadcast %360 : vector<16x1xf32> to vector<16x16xf32>
    %362 = arith.mulf %357, %361 : vector<16x16xf32>
    %cst_113 = arith.constant dense<0.000000e+00> : vector<16x8xf32>
    %363 = tpu.matmul %362, %351, %cst_113 {dimension_numbers = #tpu.dot_dimension_numbers<[1], [0], [0], [1], [0, 0, 1, 1], [], []>} : vector<16x16xf32>, vector<16x8xf32>, vector<16x8xf32> -> vector<16x8xf32>
    %364 = vector.extract_strided_slice %245 {offsets = [16, 24], sizes = [16, 8], strides = [1, 1]} : vector<32x96xf32> to vector<16x8xf32>
    %365 = vector.extract_strided_slice %245 {offsets = [16, 56], sizes = [16, 8], strides = [1, 1]} : vector<32x96xf32> to vector<16x8xf32>
    %366 = vector.extract_strided_slice %245 {offsets = [16, 88], sizes = [16, 8], strides = [1, 1]} : vector<32x96xf32> to vector<16x8xf32>
    %cst_114 = arith.constant dense<0.000000e+00> : vector<16x16xf32>
    %367 = tpu.matmul %364, %365, %cst_114 {dimension_numbers = #tpu.dot_dimension_numbers<[1], [1], [0], [0], [0, 0, 1, 0], [], []>} : vector<16x8xf32>, vector<16x8xf32>, vector<16x16xf32> -> vector<16x16xf32>
    %cst_115 = arith.constant dense<0xFF800000> : vector<16xf32>
    %368 = vector.multi_reduction <maximumf>, %367, %cst_115 [1] : vector<16x16xf32> to vector<16xf32>
    %369 = vector.shape_cast %368 : vector<16xf32> to vector<16x1xf32>
    %370 = vector.broadcast %369 : vector<16x1xf32> to vector<16x16xf32>
    %371 = arith.subf %367, %370 : vector<16x16xf32>
    %372 = math.exp %371 : vector<16x16xf32>
    %cst_116 = arith.constant dense<0.000000e+00> : vector<16xf32>
    %373 = vector.multi_reduction <add>, %372, %cst_116 [1] : vector<16x16xf32> to vector<16xf32>
    %374 = vector.shape_cast %373 : vector<16xf32> to vector<16x1xf32>
    %375 = tpu.reciprocal %374 {approx = true} : vector<16x1xf32> -> vector<16x1xf32>
    %376 = vector.broadcast %375 : vector<16x1xf32> to vector<16x16xf32>
    %377 = arith.mulf %372, %376 : vector<16x16xf32>
    %cst_117 = arith.constant dense<0.000000e+00> : vector<16x8xf32>
    %378 = tpu.matmul %377, %366, %cst_117 {dimension_numbers = #tpu.dot_dimension_numbers<[1], [0], [0], [1], [0, 0, 1, 1], [], []>} : vector<16x16xf32>, vector<16x8xf32>, vector<16x8xf32> -> vector<16x8xf32>
    %379 = tpu.concatenate %363, %378 in 0 : vector<16x8xf32>, vector<16x8xf32> -> vector<32x8xf32>
    %380 = vector.extract_strided_slice %220 {offsets = [24, 0], sizes = [8, 32], strides = [1, 1]} : vector<32x32xf32> to vector<8x32xf32>
    %cst_118 = arith.constant dense<0.000000e+00> : vector<32x32xf32>
    %381 = tpu.matmul %379, %380, %cst_118 {dimension_numbers = #tpu.dot_dimension_numbers<[1], [0], [0], [1], [0, 0, 1, 1], [], []>} : vector<32x8xf32>, vector<8x32xf32>, vector<32x32xf32> -> vector<32x32xf32>
    %382 = arith.addf %348, %381 : vector<32x32xf32>
    %383 = arith.addf %216, %382 : vector<32x32xf32>
    %384 = vector.extract_strided_slice %0 {offsets = [11, 0], sizes = [1, 32], strides = [1, 1]} : vector<20x128xf32> to vector<1x32xf32>
    %385 = vector.broadcast %384 : vector<1x32xf32> to vector<32x32xf32>
    %386 = arith.addf %383, %385 : vector<32x32xf32>
    %387 = vector.extract_strided_slice %0 {offsets = [12, 0], sizes = [1, 32], strides = [1, 1]} : vector<20x128xf32> to vector<1x32xf32>
    %388 = vector.extract_strided_slice %0 {offsets = [13, 0], sizes = [1, 32], strides = [1, 1]} : vector<20x128xf32> to vector<1x32xf32>
    %cst_119 = arith.constant dense<0.000000e+00> : vector<32xf32>
    %389 = vector.multi_reduction <add>, %386, %cst_119 [1] : vector<32x32xf32> to vector<32xf32>
    %390 = vector.shape_cast %389 : vector<32xf32> to vector<32x1xf32>
    %cst_120 = arith.constant 3.200000e+01 : f32
    %391 = vector.broadcast %cst_120 : f32 to vector<32x1xf32>
    %392 = arith.divf %390, %391 : vector<32x1xf32>
    %393 = vector.broadcast %392 : vector<32x1xf32> to vector<32x32xf32>
    %394 = arith.subf %386, %393 : vector<32x32xf32>
    %395 = arith.mulf %394, %394 : vector<32x32xf32>
    %cst_121 = arith.constant dense<0.000000e+00> : vector<32xf32>
    %396 = vector.multi_reduction <add>, %395, %cst_121 [1] : vector<32x32xf32> to vector<32xf32>
    %397 = vector.shape_cast %396 : vector<32xf32> to vector<32x1xf32>
    %cst_122 = arith.constant 3.200000e+01 : f32
    %398 = vector.broadcast %cst_122 : f32 to vector<32x1xf32>
    %399 = arith.divf %397, %398 : vector<32x1xf32>
    %400 = vector.broadcast %392 : vector<32x1xf32> to vector<32x32xf32>
    %401 = arith.subf %386, %400 : vector<32x32xf32>
    %cst_123 = arith.constant 9.99999974E-6 : f32
    %402 = vector.broadcast %cst_123 : f32 to vector<32x1xf32>
    %403 = arith.addf %399, %402 : vector<32x1xf32>
    %404 = math.rsqrt %403 : vector<32x1xf32>
    %405 = vector.broadcast %404 : vector<32x1xf32> to vector<32x32xf32>
    %406 = arith.mulf %401, %405 : vector<32x32xf32>
    %407 = vector.broadcast %387 : vector<1x32xf32> to vector<32x32xf32>
    %408 = arith.mulf %406, %407 : vector<32x32xf32>
    %409 = vector.broadcast %388 : vector<1x32xf32> to vector<32x32xf32>
    %410 = arith.addf %408, %409 : vector<32x32xf32>
    %c1_124 = arith.constant 1 : index
    %c0_125 = arith.constant 0 : index
    %c0_126 = arith.constant 0 : index
    %411 = vector.load %arg5[%c1_124, %c0_125, %c0_126] : memref<2x32x128xf32, #tpu.memory_space<vmem>>, vector<1x32x128xf32>
    %412 = vector.shape_cast %411 : vector<1x32x128xf32> to vector<32x128xf32>
    %cst_127 = arith.constant dense<0.000000e+00> : vector<32x128xf32>
    %413 = tpu.matmul %410, %412, %cst_127 {dimension_numbers = #tpu.dot_dimension_numbers<[1], [0], [0], [1], [0, 0, 1, 1], [], []>} : vector<32x32xf32>, vector<32x128xf32>, vector<32x128xf32> -> vector<32x128xf32>
    %414 = vector.extract_strided_slice %0 {offsets = [14, 0], sizes = [1, 128], strides = [1, 1]} : vector<20x128xf32> to vector<1x128xf32>
    %415 = vector.broadcast %414 : vector<1x128xf32> to vector<32x128xf32>
    %416 = arith.addf %413, %415 : vector<32x128xf32>
    %cst_128 = arith.constant 0.000000e+00 : f32
    %cst_129 = arith.constant 6.000000e+00 : f32
    %417 = vector.broadcast %cst_128 : f32 to vector<32x128xf32>
    %418 = arith.maximumf %417, %416 : vector<32x128xf32>
    %419 = vector.broadcast %cst_129 : f32 to vector<32x128xf32>
    %420 = arith.minimumf %419, %418 : vector<32x128xf32>
    %c1_130 = arith.constant 1 : index
    %c0_131 = arith.constant 0 : index
    %c0_132 = arith.constant 0 : index
    %421 = vector.load %arg6[%c1_130, %c0_131, %c0_132] : memref<2x128x32xf32, #tpu.memory_space<vmem>>, vector<1x128x32xf32>
    %422 = vector.shape_cast %421 : vector<1x128x32xf32> to vector<128x32xf32>
    %cst_133 = arith.constant dense<0.000000e+00> : vector<32x32xf32>
    %423 = tpu.matmul %420, %422, %cst_133 {dimension_numbers = #tpu.dot_dimension_numbers<[1], [0], [0], [1], [0, 0, 1, 1], [], []>} : vector<32x128xf32>, vector<128x32xf32>, vector<32x32xf32> -> vector<32x32xf32>
    %424 = arith.addf %386, %423 : vector<32x32xf32>
    %425 = vector.extract_strided_slice %0 {offsets = [15, 0], sizes = [1, 32], strides = [1, 1]} : vector<20x128xf32> to vector<1x32xf32>
    %426 = vector.broadcast %425 : vector<1x32xf32> to vector<32x32xf32>
    %427 = arith.addf %424, %426 : vector<32x32xf32>
    %428 = vector.extract_strided_slice %0 {offsets = [0, 0], sizes = [1, 32], strides = [1, 1]} : vector<20x128xf32> to vector<1x32xf32>
    %429 = vector.extract_strided_slice %0 {offsets = [1, 0], sizes = [1, 32], strides = [1, 1]} : vector<20x128xf32> to vector<1x32xf32>
    %cst_134 = arith.constant dense<0.000000e+00> : vector<32xf32>
    %430 = vector.multi_reduction <add>, %427, %cst_134 [1] : vector<32x32xf32> to vector<32xf32>
    %431 = vector.shape_cast %430 : vector<32xf32> to vector<32x1xf32>
    %cst_135 = arith.constant 3.200000e+01 : f32
    %432 = vector.broadcast %cst_135 : f32 to vector<32x1xf32>
    %433 = arith.divf %431, %432 : vector<32x1xf32>
    %434 = vector.broadcast %433 : vector<32x1xf32> to vector<32x32xf32>
    %435 = arith.subf %427, %434 : vector<32x32xf32>
    %436 = arith.mulf %435, %435 : vector<32x32xf32>
    %cst_136 = arith.constant dense<0.000000e+00> : vector<32xf32>
    %437 = vector.multi_reduction <add>, %436, %cst_136 [1] : vector<32x32xf32> to vector<32xf32>
    %438 = vector.shape_cast %437 : vector<32xf32> to vector<32x1xf32>
    %cst_137 = arith.constant 3.200000e+01 : f32
    %439 = vector.broadcast %cst_137 : f32 to vector<32x1xf32>
    %440 = arith.divf %438, %439 : vector<32x1xf32>
    %441 = vector.broadcast %433 : vector<32x1xf32> to vector<32x32xf32>
    %442 = arith.subf %427, %441 : vector<32x32xf32>
    %cst_138 = arith.constant 9.99999974E-6 : f32
    %443 = vector.broadcast %cst_138 : f32 to vector<32x1xf32>
    %444 = arith.addf %440, %443 : vector<32x1xf32>
    %445 = math.rsqrt %444 : vector<32x1xf32>
    %446 = vector.broadcast %445 : vector<32x1xf32> to vector<32x32xf32>
    %447 = arith.mulf %442, %446 : vector<32x32xf32>
    %448 = vector.broadcast %428 : vector<1x32xf32> to vector<32x32xf32>
    %449 = arith.mulf %447, %448 : vector<32x32xf32>
    %450 = vector.broadcast %429 : vector<1x32xf32> to vector<32x32xf32>
    %451 = arith.addf %449, %450 : vector<32x32xf32>
    %452 = vector.extract_strided_slice %451 {offsets = [0, 0], sizes = [1, 32], strides = [1, 1]} : vector<32x32xf32> to vector<1x32xf32>
    %c0_139 = arith.constant 0 : index
    %c0_140 = arith.constant 0 : index
    %453 = vector.load %arg11[%c0_139, %c0_140] : memref<2x512xf32, #tpu.memory_space<vmem>>, vector<1x32xf32>
    tpu.vector_store %arg11[%c0_139, %c0_140], %452 {strides = array<i32>} : memref<2x512xf32, #tpu.memory_space<vmem>>, vector<1x32xf32>,
    %454 = vector.extract_strided_slice %451 {offsets = [1, 0], sizes = [1, 32], strides = [1, 1]} : vector<32x32xf32> to vector<1x32xf32>
    %c0_141 = arith.constant 0 : index
    %c32 = arith.constant 32 : index
    %455 = vector.load %arg11[%c0_141, %c32] : memref<2x512xf32, #tpu.memory_space<vmem>>, vector<1x32xf32>
    tpu.vector_store %arg11[%c0_141, %c32], %454 {strides = array<i32>} : memref<2x512xf32, #tpu.memory_space<vmem>>, vector<1x32xf32>,
    %456 = vector.extract_strided_slice %451 {offsets = [2, 0], sizes = [1, 32], strides = [1, 1]} : vector<32x32xf32> to vector<1x32xf32>
    %c0_142 = arith.constant 0 : index
    %c64 = arith.constant 64 : index
    %457 = vector.load %arg11[%c0_142, %c64] : memref<2x512xf32, #tpu.memory_space<vmem>>, vector<1x32xf32>
    tpu.vector_store %arg11[%c0_142, %c64], %456 {strides = array<i32>} : memref<2x512xf32, #tpu.memory_space<vmem>>, vector<1x32xf32>,
    %458 = vector.extract_strided_slice %451 {offsets = [3, 0], sizes = [1, 32], strides = [1, 1]} : vector<32x32xf32> to vector<1x32xf32>
    %c0_143 = arith.constant 0 : index
    %c96 = arith.constant 96 : index
    %459 = vector.load %arg11[%c0_143, %c96] : memref<2x512xf32, #tpu.memory_space<vmem>>, vector<1x32xf32>
    tpu.vector_store %arg11[%c0_143, %c96], %458 {strides = array<i32>} : memref<2x512xf32, #tpu.memory_space<vmem>>, vector<1x32xf32>,
    %460 = vector.extract_strided_slice %451 {offsets = [4, 0], sizes = [1, 32], strides = [1, 1]} : vector<32x32xf32> to vector<1x32xf32>
    %c0_144 = arith.constant 0 : index
    %c128 = arith.constant 128 : index
    %461 = vector.load %arg11[%c0_144, %c128] : memref<2x512xf32, #tpu.memory_space<vmem>>, vector<1x32xf32>
    tpu.vector_store %arg11[%c0_144, %c128], %460 {strides = array<i32>} : memref<2x512xf32, #tpu.memory_space<vmem>>, vector<1x32xf32>,
    %462 = vector.extract_strided_slice %451 {offsets = [5, 0], sizes = [1, 32], strides = [1, 1]} : vector<32x32xf32> to vector<1x32xf32>
    %c0_145 = arith.constant 0 : index
    %c160 = arith.constant 160 : index
    %463 = vector.load %arg11[%c0_145, %c160] : memref<2x512xf32, #tpu.memory_space<vmem>>, vector<1x32xf32>
    tpu.vector_store %arg11[%c0_145, %c160], %462 {strides = array<i32>} : memref<2x512xf32, #tpu.memory_space<vmem>>, vector<1x32xf32>,
    %464 = vector.extract_strided_slice %451 {offsets = [6, 0], sizes = [1, 32], strides = [1, 1]} : vector<32x32xf32> to vector<1x32xf32>
    %c0_146 = arith.constant 0 : index
    %c192 = arith.constant 192 : index
    %465 = vector.load %arg11[%c0_146, %c192] : memref<2x512xf32, #tpu.memory_space<vmem>>, vector<1x32xf32>
    tpu.vector_store %arg11[%c0_146, %c192], %464 {strides = array<i32>} : memref<2x512xf32, #tpu.memory_space<vmem>>, vector<1x32xf32>,
    %466 = vector.extract_strided_slice %451 {offsets = [7, 0], sizes = [1, 32], strides = [1, 1]} : vector<32x32xf32> to vector<1x32xf32>
    %c0_147 = arith.constant 0 : index
    %c224 = arith.constant 224 : index
    %467 = vector.load %arg11[%c0_147, %c224] : memref<2x512xf32, #tpu.memory_space<vmem>>, vector<1x32xf32>
    tpu.vector_store %arg11[%c0_147, %c224], %466 {strides = array<i32>} : memref<2x512xf32, #tpu.memory_space<vmem>>, vector<1x32xf32>,
    %468 = vector.extract_strided_slice %451 {offsets = [8, 0], sizes = [1, 32], strides = [1, 1]} : vector<32x32xf32> to vector<1x32xf32>
    %c0_148 = arith.constant 0 : index
    %c256 = arith.constant 256 : index
    %469 = vector.load %arg11[%c0_148, %c256] : memref<2x512xf32, #tpu.memory_space<vmem>>, vector<1x32xf32>
    tpu.vector_store %arg11[%c0_148, %c256], %468 {strides = array<i32>} : memref<2x512xf32, #tpu.memory_space<vmem>>, vector<1x32xf32>,
    %470 = vector.extract_strided_slice %451 {offsets = [9, 0], sizes = [1, 32], strides = [1, 1]} : vector<32x32xf32> to vector<1x32xf32>
    %c0_149 = arith.constant 0 : index
    %c288 = arith.constant 288 : index
    %471 = vector.load %arg11[%c0_149, %c288] : memref<2x512xf32, #tpu.memory_space<vmem>>, vector<1x32xf32>
    tpu.vector_store %arg11[%c0_149, %c288], %470 {strides = array<i32>} : memref<2x512xf32, #tpu.memory_space<vmem>>, vector<1x32xf32>,
    %472 = vector.extract_strided_slice %451 {offsets = [10, 0], sizes = [1, 32], strides = [1, 1]} : vector<32x32xf32> to vector<1x32xf32>
    %c0_150 = arith.constant 0 : index
    %c320 = arith.constant 320 : index
    %473 = vector.load %arg11[%c0_150, %c320] : memref<2x512xf32, #tpu.memory_space<vmem>>, vector<1x32xf32>
    tpu.vector_store %arg11[%c0_150, %c320], %472 {strides = array<i32>} : memref<2x512xf32, #tpu.memory_space<vmem>>, vector<1x32xf32>,
    %474 = vector.extract_strided_slice %451 {offsets = [11, 0], sizes = [1, 32], strides = [1, 1]} : vector<32x32xf32> to vector<1x32xf32>
    %c0_151 = arith.constant 0 : index
    %c352 = arith.constant 352 : index
    %475 = vector.load %arg11[%c0_151, %c352] : memref<2x512xf32, #tpu.memory_space<vmem>>, vector<1x32xf32>
    tpu.vector_store %arg11[%c0_151, %c352], %474 {strides = array<i32>} : memref<2x512xf32, #tpu.memory_space<vmem>>, vector<1x32xf32>,
    %476 = vector.extract_strided_slice %451 {offsets = [12, 0], sizes = [1, 32], strides = [1, 1]} : vector<32x32xf32> to vector<1x32xf32>
    %c0_152 = arith.constant 0 : index
    %c384 = arith.constant 384 : index
    %477 = vector.load %arg11[%c0_152, %c384] : memref<2x512xf32, #tpu.memory_space<vmem>>, vector<1x32xf32>
    tpu.vector_store %arg11[%c0_152, %c384], %476 {strides = array<i32>} : memref<2x512xf32, #tpu.memory_space<vmem>>, vector<1x32xf32>,
    %478 = vector.extract_strided_slice %451 {offsets = [13, 0], sizes = [1, 32], strides = [1, 1]} : vector<32x32xf32> to vector<1x32xf32>
    %c0_153 = arith.constant 0 : index
    %c416 = arith.constant 416 : index
    %479 = vector.load %arg11[%c0_153, %c416] : memref<2x512xf32, #tpu.memory_space<vmem>>, vector<1x32xf32>
    tpu.vector_store %arg11[%c0_153, %c416], %478 {strides = array<i32>} : memref<2x512xf32, #tpu.memory_space<vmem>>, vector<1x32xf32>,
    %480 = vector.extract_strided_slice %451 {offsets = [14, 0], sizes = [1, 32], strides = [1, 1]} : vector<32x32xf32> to vector<1x32xf32>
    %c0_154 = arith.constant 0 : index
    %c448 = arith.constant 448 : index
    %481 = vector.load %arg11[%c0_154, %c448] : memref<2x512xf32, #tpu.memory_space<vmem>>, vector<1x32xf32>
    tpu.vector_store %arg11[%c0_154, %c448], %480 {strides = array<i32>} : memref<2x512xf32, #tpu.memory_space<vmem>>, vector<1x32xf32>,
    %482 = vector.extract_strided_slice %451 {offsets = [15, 0], sizes = [1, 32], strides = [1, 1]} : vector<32x32xf32> to vector<1x32xf32>
    %c0_155 = arith.constant 0 : index
    %c480 = arith.constant 480 : index
    %483 = vector.load %arg11[%c0_155, %c480] : memref<2x512xf32, #tpu.memory_space<vmem>>, vector<1x32xf32>
    tpu.vector_store %arg11[%c0_155, %c480], %482 {strides = array<i32>} : memref<2x512xf32, #tpu.memory_space<vmem>>, vector<1x32xf32>,
    %484 = vector.extract_strided_slice %451 {offsets = [16, 0], sizes = [1, 32], strides = [1, 1]} : vector<32x32xf32> to vector<1x32xf32>
    %c1_156 = arith.constant 1 : index
    %c0_157 = arith.constant 0 : index
    %485 = vector.load %arg11[%c1_156, %c0_157] : memref<2x512xf32, #tpu.memory_space<vmem>>, vector<1x32xf32>
    tpu.vector_store %arg11[%c1_156, %c0_157], %484 {strides = array<i32>} : memref<2x512xf32, #tpu.memory_space<vmem>>, vector<1x32xf32>,
    %486 = vector.extract_strided_slice %451 {offsets = [17, 0], sizes = [1, 32], strides = [1, 1]} : vector<32x32xf32> to vector<1x32xf32>
    %c1_158 = arith.constant 1 : index
    %c32_159 = arith.constant 32 : index
    %487 = vector.load %arg11[%c1_158, %c32_159] : memref<2x512xf32, #tpu.memory_space<vmem>>, vector<1x32xf32>
    tpu.vector_store %arg11[%c1_158, %c32_159], %486 {strides = array<i32>} : memref<2x512xf32, #tpu.memory_space<vmem>>, vector<1x32xf32>,
    %488 = vector.extract_strided_slice %451 {offsets = [18, 0], sizes = [1, 32], strides = [1, 1]} : vector<32x32xf32> to vector<1x32xf32>
    %c1_160 = arith.constant 1 : index
    %c64_161 = arith.constant 64 : index
    %489 = vector.load %arg11[%c1_160, %c64_161] : memref<2x512xf32, #tpu.memory_space<vmem>>, vector<1x32xf32>
    tpu.vector_store %arg11[%c1_160, %c64_161], %488 {strides = array<i32>} : memref<2x512xf32, #tpu.memory_space<vmem>>, vector<1x32xf32>,
    %490 = vector.extract_strided_slice %451 {offsets = [19, 0], sizes = [1, 32], strides = [1, 1]} : vector<32x32xf32> to vector<1x32xf32>
    %c1_162 = arith.constant 1 : index
    %c96_163 = arith.constant 96 : index
    %491 = vector.load %arg11[%c1_162, %c96_163] : memref<2x512xf32, #tpu.memory_space<vmem>>, vector<1x32xf32>
    tpu.vector_store %arg11[%c1_162, %c96_163], %490 {strides = array<i32>} : memref<2x512xf32, #tpu.memory_space<vmem>>, vector<1x32xf32>,
    %492 = vector.extract_strided_slice %451 {offsets = [20, 0], sizes = [1, 32], strides = [1, 1]} : vector<32x32xf32> to vector<1x32xf32>
    %c1_164 = arith.constant 1 : index
    %c128_165 = arith.constant 128 : index
    %493 = vector.load %arg11[%c1_164, %c128_165] : memref<2x512xf32, #tpu.memory_space<vmem>>, vector<1x32xf32>
    tpu.vector_store %arg11[%c1_164, %c128_165], %492 {strides = array<i32>} : memref<2x512xf32, #tpu.memory_space<vmem>>, vector<1x32xf32>,
    %494 = vector.extract_strided_slice %451 {offsets = [21, 0], sizes = [1, 32], strides = [1, 1]} : vector<32x32xf32> to vector<1x32xf32>
    %c1_166 = arith.constant 1 : index
    %c160_167 = arith.constant 160 : index
    %495 = vector.load %arg11[%c1_166, %c160_167] : memref<2x512xf32, #tpu.memory_space<vmem>>, vector<1x32xf32>
    tpu.vector_store %arg11[%c1_166, %c160_167], %494 {strides = array<i32>} : memref<2x512xf32, #tpu.memory_space<vmem>>, vector<1x32xf32>,
    %496 = vector.extract_strided_slice %451 {offsets = [22, 0], sizes = [1, 32], strides = [1, 1]} : vector<32x32xf32> to vector<1x32xf32>
    %c1_168 = arith.constant 1 : index
    %c192_169 = arith.constant 192 : index
    %497 = vector.load %arg11[%c1_168, %c192_169] : memref<2x512xf32, #tpu.memory_space<vmem>>, vector<1x32xf32>
    tpu.vector_store %arg11[%c1_168, %c192_169], %496 {strides = array<i32>} : memref<2x512xf32, #tpu.memory_space<vmem>>, vector<1x32xf32>,
    %498 = vector.extract_strided_slice %451 {offsets = [23, 0], sizes = [1, 32], strides = [1, 1]} : vector<32x32xf32> to vector<1x32xf32>
    %c1_170 = arith.constant 1 : index
    %c224_171 = arith.constant 224 : index
    %499 = vector.load %arg11[%c1_170, %c224_171] : memref<2x512xf32, #tpu.memory_space<vmem>>, vector<1x32xf32>
    tpu.vector_store %arg11[%c1_170, %c224_171], %498 {strides = array<i32>} : memref<2x512xf32, #tpu.memory_space<vmem>>, vector<1x32xf32>,
    %500 = vector.extract_strided_slice %451 {offsets = [24, 0], sizes = [1, 32], strides = [1, 1]} : vector<32x32xf32> to vector<1x32xf32>
    %c1_172 = arith.constant 1 : index
    %c256_173 = arith.constant 256 : index
    %501 = vector.load %arg11[%c1_172, %c256_173] : memref<2x512xf32, #tpu.memory_space<vmem>>, vector<1x32xf32>
    tpu.vector_store %arg11[%c1_172, %c256_173], %500 {strides = array<i32>} : memref<2x512xf32, #tpu.memory_space<vmem>>, vector<1x32xf32>,
    %502 = vector.extract_strided_slice %451 {offsets = [25, 0], sizes = [1, 32], strides = [1, 1]} : vector<32x32xf32> to vector<1x32xf32>
    %c1_174 = arith.constant 1 : index
    %c288_175 = arith.constant 288 : index
    %503 = vector.load %arg11[%c1_174, %c288_175] : memref<2x512xf32, #tpu.memory_space<vmem>>, vector<1x32xf32>
    tpu.vector_store %arg11[%c1_174, %c288_175], %502 {strides = array<i32>} : memref<2x512xf32, #tpu.memory_space<vmem>>, vector<1x32xf32>,
    %504 = vector.extract_strided_slice %451 {offsets = [26, 0], sizes = [1, 32], strides = [1, 1]} : vector<32x32xf32> to vector<1x32xf32>
    %c1_176 = arith.constant 1 : index
    %c320_177 = arith.constant 320 : index
    %505 = vector.load %arg11[%c1_176, %c320_177] : memref<2x512xf32, #tpu.memory_space<vmem>>, vector<1x32xf32>
    tpu.vector_store %arg11[%c1_176, %c320_177], %504 {strides = array<i32>} : memref<2x512xf32, #tpu.memory_space<vmem>>, vector<1x32xf32>,
    %506 = vector.extract_strided_slice %451 {offsets = [27, 0], sizes = [1, 32], strides = [1, 1]} : vector<32x32xf32> to vector<1x32xf32>
    %c1_178 = arith.constant 1 : index
    %c352_179 = arith.constant 352 : index
    %507 = vector.load %arg11[%c1_178, %c352_179] : memref<2x512xf32, #tpu.memory_space<vmem>>, vector<1x32xf32>
    tpu.vector_store %arg11[%c1_178, %c352_179], %506 {strides = array<i32>} : memref<2x512xf32, #tpu.memory_space<vmem>>, vector<1x32xf32>,
    %508 = vector.extract_strided_slice %451 {offsets = [28, 0], sizes = [1, 32], strides = [1, 1]} : vector<32x32xf32> to vector<1x32xf32>
    %c1_180 = arith.constant 1 : index
    %c384_181 = arith.constant 384 : index
    %509 = vector.load %arg11[%c1_180, %c384_181] : memref<2x512xf32, #tpu.memory_space<vmem>>, vector<1x32xf32>
    tpu.vector_store %arg11[%c1_180, %c384_181], %508 {strides = array<i32>} : memref<2x512xf32, #tpu.memory_space<vmem>>, vector<1x32xf32>,
    %510 = vector.extract_strided_slice %451 {offsets = [29, 0], sizes = [1, 32], strides = [1, 1]} : vector<32x32xf32> to vector<1x32xf32>
    %c1_182 = arith.constant 1 : index
    %c416_183 = arith.constant 416 : index
    %511 = vector.load %arg11[%c1_182, %c416_183] : memref<2x512xf32, #tpu.memory_space<vmem>>, vector<1x32xf32>
    tpu.vector_store %arg11[%c1_182, %c416_183], %510 {strides = array<i32>} : memref<2x512xf32, #tpu.memory_space<vmem>>, vector<1x32xf32>,
    %512 = vector.extract_strided_slice %451 {offsets = [30, 0], sizes = [1, 32], strides = [1, 1]} : vector<32x32xf32> to vector<1x32xf32>
    %c1_184 = arith.constant 1 : index
    %c448_185 = arith.constant 448 : index
    %513 = vector.load %arg11[%c1_184, %c448_185] : memref<2x512xf32, #tpu.memory_space<vmem>>, vector<1x32xf32>
    tpu.vector_store %arg11[%c1_184, %c448_185], %512 {strides = array<i32>} : memref<2x512xf32, #tpu.memory_space<vmem>>, vector<1x32xf32>,
    %514 = vector.extract_strided_slice %451 {offsets = [31, 0], sizes = [1, 32], strides = [1, 1]} : vector<32x32xf32> to vector<1x32xf32>
    %c1_186 = arith.constant 1 : index
    %c480_187 = arith.constant 480 : index
    %515 = vector.load %arg11[%c1_186, %c480_187] : memref<2x512xf32, #tpu.memory_space<vmem>>, vector<1x32xf32>
    tpu.vector_store %arg11[%c1_186, %c480_187], %514 {strides = array<i32>} : memref<2x512xf32, #tpu.memory_space<vmem>>, vector<1x32xf32>,
    %c0_188 = arith.constant 0 : index
    %c0_189 = arith.constant 0 : index
    %516 = vector.load %arg11[%c0_188, %c0_189] : memref<2x512xf32, #tpu.memory_space<vmem>>, vector<2x512xf32>
    %c0_190 = arith.constant 0 : index
    %c0_191 = arith.constant 0 : index
    %517 = vector.load %arg8[%c0_190, %c0_191] : memref<512x32xf32, #tpu.memory_space<vmem>>, vector<512x32xf32>
    %cst_192 = arith.constant dense<0.000000e+00> : vector<2x32xf32>
    %518 = tpu.matmul %516, %517, %cst_192 {dimension_numbers = #tpu.dot_dimension_numbers<[1], [0], [0], [1], [0, 0, 1, 1], [], []>} : vector<2x512xf32>, vector<512x32xf32>, vector<2x32xf32> -> vector<2x32xf32>
    %519 = vector.extract_strided_slice %0 {offsets = [16, 0], sizes = [1, 32], strides = [1, 1]} : vector<20x128xf32> to vector<1x32xf32>
    %520 = vector.broadcast %519 : vector<1x32xf32> to vector<2x32xf32>
    %521 = arith.mulf %518, %520 : vector<2x32xf32>
    %522 = vector.extract_strided_slice %0 {offsets = [17, 0], sizes = [1, 32], strides = [1, 1]} : vector<20x128xf32> to vector<1x32xf32>
    %523 = vector.broadcast %522 : vector<1x32xf32> to vector<2x32xf32>
    %524 = arith.addf %521, %523 : vector<2x32xf32>
    %c0_193 = arith.constant 0 : index
    %c0_194 = arith.constant 0 : index
    %525 = vector.load %arg9[%c0_193, %c0_194] : memref<32x32xf32, #tpu.memory_space<vmem>>, vector<32x32xf32>
    %cst_195 = arith.constant dense<0.000000e+00> : vector<2x32xf32>
    %526 = tpu.matmul %524, %525, %cst_195 {dimension_numbers = #tpu.dot_dimension_numbers<[1], [0], [0], [1], [0, 0, 1, 1], [], []>} : vector<2x32xf32>, vector<32x32xf32>, vector<2x32xf32> -> vector<2x32xf32>
    %527 = vector.extract_strided_slice %0 {offsets = [18, 0], sizes = [1, 32], strides = [1, 1]} : vector<20x128xf32> to vector<1x32xf32>
    %528 = vector.broadcast %527 : vector<1x32xf32> to vector<2x32xf32>
    %529 = arith.mulf %526, %528 : vector<2x32xf32>
    %530 = vector.extract_strided_slice %0 {offsets = [19, 0], sizes = [1, 32], strides = [1, 1]} : vector<20x128xf32> to vector<1x32xf32>
    %531 = vector.broadcast %530 : vector<1x32xf32> to vector<2x32xf32>
    %532 = arith.addf %529, %531 : vector<2x32xf32>
    %c0_196 = arith.constant 0 : index
    %c0_197 = arith.constant 0 : index
    %533 = vector.load %arg10[%c0_196, %c0_197] : memref<2x32xf32, #tpu.memory_space<vmem>>, vector<2x32xf32>
    tpu.vector_store %arg10[%c0_196, %c0_197], %532 {strides = array<i32>} : memref<2x32xf32, #tpu.memory_space<vmem>>, vector<2x32xf32>,
    return
  }
}

</mosaic_0001>

<bundles_post_ra>
// kernel: vit_forward.1
= control target key start
LH: loop header
LB: loop body
LE: loop exit
PB: predicated region body
PF: predicated region fallthrough
CT: control target
= control target key end

     0   :  { %vm53_vm0 = vcmask 392192   ;;  %s8221_s0 = inlined_call_operand.vmem [shape: f32[32,48], index: 0, kind: input, shape index: {}]   ;;  %s8222_s1 = inlined_call_operand.vmem [shape: f32[32,32], index: 1, kind: input, shape index: {}]   ;;  %s8223_s2 = inlined_call_operand.vmem [shape: f32[48,32], index: 2, kind: input, shape index: {}]   ;;  %s8224_s3 = inlined_call_operand.vmem [shape: f32[2,32,96], index: 3, kind: input, shape index: {}]   ;;  %s8225_s4 = inlined_call_operand.vmem [shape: f32[2,32,32], index: 4, kind: input, shape index: {}]   ;;  %s8226_s5 = inlined_call_operand.vmem [shape: f32[2,32,128], index: 5, kind: input, shape index: {}]   ;;  %s8227_s6 = inlined_call_operand.vmem [shape: f32[2,128,32], index: 6, kind: input, shape index: {}]   ;;  %s8228_s7 = inlined_call_operand.vmem [shape: f32[20,128], index: 7, kind: input, shape index: {}]   ;;  %s8229_s8 = inlined_call_operand.vmem [shape: f32[512,32], index: 8, kind: input, shape index: {}]   ;;  %s8230_s9 = inlined_call_operand.vmem [shape: f32[32,32], index: 9, kind: input, shape index: {}]   ;;  %s8231_s10 = inlined_call_operand.hbm [shape: f32[2,32], index: 10, kind: output, shape index: {}]  }
   0x1   :  { %v48_v0 = vld [vmem:[%s8223_s2 + $0x28] sm:$0xff]  ;;  %v47_v1 = vld [vmem:[%s8223_s2 + $0x20] sm:$0xff]  ;;  %v46_v2 = vld [vmem:[%s8223_s2 + $0x18] sm:$0xff] }
   0x2   :  { %6243 = vmatprep.subr.mxu0 %v48_v0  ;;  %v39_v3 = vld [vmem:[%s8221_s0] sm:$0xff] }
   0x3   :  { %6244 = vmatpush3.msra.mxu0 %v48_v0  ;;  %6255 = vmatprep.mubr.msk.f32.mxu0 %vm53_vm0, %v39_v3 }
   0x4   :  { %6245 = vmatprep.subr.mxu0 %v47_v1 }
   0x5   :  { %15 = vsyncpa [#allocation4], 0  ;;  %6246 = vmatpush3.msra.mxu0 %v47_v1  ;;  %v45_v4 = vld [vmem:[%s8223_s2 + $0x10] sm:$0xff]  ;;  %v44_v5 = vld [vmem:[%s8223_s2 + $0x8] sm:$0xff]  ;;  %vm159_vm1 = vcmask 261120   ;;  %v213_v57 = vlaneseq  ;;  %vm332_vm2 = vcmask 64512  }
   0x6   :  { %6247 = vmatprep.subr.mxu0 %v46_v2  ;;  %v43_v6 = vld [vmem:[%s8223_s2] sm:$0xff]  ;;  %v40_v7 = vld [vmem:[%s8221_s0 + $0x8] sm:$0xff]  ;;  %v41_v8 = vld [vmem:[%s8221_s0 + $0x10] sm:$0xff]  ;;  %s6902_s28 = smov 96   ;;  %vm416_vm3 = vcmask 130048   ;;  %s6903_s29 = smov 64  }
   0x7   :  { %6248 = vmatpush3.msra.mxu0 %v46_v2  ;;  %v42_v9 = vld [vmem:[%s8221_s0 + $0x18] sm:$0xff]  ;;  %v49_v11 = vld [vmem:[%s8222_s1] sm:$0xff]  ;;  %v50_v12 = vld [vmem:[%s8222_s1 + $0x8] sm:$0xff]  ;;  %v7055_v62 = vshrl.u32 %v213_v57, 7  ;;  %s6904_s30 = smov 88   ;;  %s6905_s11 = smov 120  }
   0x8   :  { %6249 = vmatprep.subr.mxu0 %v45_v4  ;;  %v51_v16 = vld [vmem:[%s8222_s1 + $0x10] sm:$0xff]  ;;  %v52_v19 = vld [vmem:[%s8222_s1 + $0x18] sm:$0xff]  ;;  %v152_v48 = vld [vmem:[%s8224_s3 + $0x8] sm:$0xff]  ;;  %s6906_s12 = smov 56   ;;  %s6907_s14 = smov 80   ;;  %vm5169_vm4 = vcmask 253952  }
   0x9   :  { %6250 = vmatpush3.msra.mxu0 %v45_v4  ;;  %v154_v46 = vld [vmem:[%s8224_s3 + $0x18] sm:$0xff]  ;;  %v153_v47 = vld [vmem:[%s8224_s3 + $0x10] sm:$0xff]  ;;  %v151_v49 = vld [vmem:[%s8224_s3] sm:$0xff]  ;;  %v7058_v0 = vsub.s32 2, %v7055_v62  ;;  %v7064_v2 = vsub.s32 3, %v7055_v62  ;;  %s6908_s15 = smov 112  }
   0xa   :  { %6251 = vmatprep.subr.mxu0 %v44_v5  ;;  %v36_v1 = vld [vmem:[%s8228_s7] sm:$0xff]  ;;  %s6909_s16 = smov 72   ;;  %s6910_s17 = smov 104   ;;  %vm5184_vm5 = vcmask 516352   ;;  %vm5190_vm6 = vcmask 778752   ;;  %vm5197_vm7 = vcmask 1041152  }
   0xb   :  { %6252 = vmatpush3.msra.mxu0 %v44_v5  ;;  %v216_v3 = vrot.slane %v36_v1, %v7058_v0  ;;  %s6911_s1 = smov 48   ;;  %s6912_s19 = smov 40   ;;  %vm6916_vm8 = vmmov 0   ;;  %vm5709_vm9 = vcmask 254976  }
   0xc   :  { %6253 = vmatprep.subr.mxu0 %v43_v6 }
   0xd   :  { %6254 = vmatpush3.msra.mxu0 %v43_v6  ;;  %v224_v6 = vrot.slane %v36_v1, %v7064_v2 }
   0xe   :  { %6256 = vmatmul.mubr.msk.f32.vlgmr.msra.gmra.mxu0 %vm53_vm0, %v40_v7  ;;  %6261 = vmatprep.subr.mxu0 %v154_v46 }
   0xf   :  { %6258 = vmatprep.mubr.msk.f32.mxu0 %vm53_vm0, %v41_v8  ;;  %6262 = vmatpush3.msra.mxu0 %v154_v46 }
  0x10   :  { %6263 = vmatprep.subr.mxu0 %v153_v47 }
  0x11   :  { %6264 = vmatpush3.msra.mxu0 %v153_v47 }
  0x12   :  { %6259 = vmatmul.mubr.msk.f32.gmra.mxu0 %vm53_vm0, %v42_v9  ;;  %6265 = vmatprep.subr.mxu0 %v152_v48 }
  0x13   :  { %6266 = vmatpush3.msra.mxu0 %v152_v48 }
  0x14   :  { %6267 = vmatprep.subr.mxu0 %v151_v49 }
  0x15   :  { %6268 = vmatpush3.msra.mxu0 %v151_v49 }
  0xce   :  { %v6257_v10 = vpop.f32.mrf.mxu0 }
  0xcf   :  { %v7018_v17 = vadd.f32 %v6257_v10, %v50_v12 }
  0xd0   :  { %v132_v13 = vpop.f32.mrf.mxu0 }
  0xd1   :  { %v7013_v14 = vadd.f32 %v132_v13, %v49_v11  ;;  %v163_v24 = vsel %vm159_vm1, %v7018_v17, 0.0 }
  0xd2   :  { %v6260_v15 = vpop.f32.mrf.mxu0 }
  0xd3   :  { %v160_v18 = vsel %vm159_vm1, %v7013_v14, 0.0  ;;  %v7027_v22 = vadd.f32 %v6260_v15, %v52_v19 }
  0xd4   :  { %v142_v20 = vpop.f32.mrf.mxu0  ;;  %161 = vadd.xlane.f32.xlu0 %v160_v18 }
  0xd5   :  { %v7025_v21 = vadd.f32 %v142_v20, %v51_v16  ;;  %v169_v25 = vsel %vm159_vm1, %v7027_v22, 0.0 }
  0xd7   :  { %v166_v23 = vsel %vm159_vm1, %v7025_v21, 0.0 }
  0xd8   :  { %167 = vadd.xlane.f32.xlu1 %v166_v23  ;;  %164 = vadd.xlane.f32.xlu0 %v163_v24 }
  0xdc   :  { %170 = vadd.xlane.f32.xlu1 %v169_v25 }
 0x15d   :  { %v162_v26 = vpop.xlane.xlu0 %161 }
 0x15e   :  { %v173_v27 = vmul.f32 0.03125, %v162_v26 }
 0x160   :  { %v177_v28 = vsub.f32 %v7013_v14, %v173_v27 }
 0x161   :  { %v168_v29 = vpop.xlane.xlu1 %167  ;;  %v165_v30 = vpop.xlane.xlu0 %164 }
 0x162   :  { %v175_v31 = vmul.f32 0.03125, %v168_v29  ;;  %v174_v32 = vmul.f32 0.03125, %v165_v30  ;;  %v181_v33 = vmul.f32 %v177_v28, %v177_v28 }
 0x164   :  { %v179_v34 = vsub.f32 %v7025_v21, %v175_v31  ;;  %v178_v35 = vsub.f32 %v7018_v17, %v174_v32  ;;  %v185_v36 = vsel %vm159_vm1, %v181_v33, 0.0 }
 0x165   :  { %v171_v37 = vpop.xlane.xlu1 %170  ;;  %186 = vadd.xlane.f32.xlu0 %v185_v36 }
 0x166   :  { %v176_v38 = vmul.f32 0.03125, %v171_v37  ;;  %v183_v39 = vmul.f32 %v179_v34, %v179_v34  ;;  %v182_v40 = vmul.f32 %v178_v35, %v178_v35 }
 0x168   :  { %v180_v41 = vsub.f32 %v7027_v22, %v176_v38  ;;  %v191_v42 = vsel %vm159_vm1, %v183_v39, 0.0  ;;  %v188_v43 = vsel %vm159_vm1, %v182_v40, 0.0 }
 0x169   :  { %192 = vadd.xlane.f32.xlu0 %v191_v42  ;;  %189 = vadd.xlane.f32.xlu1 %v188_v43 }
 0x16a   :  { %v184_v44 = vmul.f32 %v180_v41, %v180_v41 }
 0x16c   :  { %v194_v45 = vsel %vm159_vm1, %v184_v44, 0.0 }
 0x16d   :  { %195 = vadd.xlane.f32.xlu1 %v194_v45 }
 0x1ee   :  { %v187_v50 = vpop.xlane.xlu0 %186 }
 0x1ef   :  { %v197_v51 = vmul.f32 0.03125, %v187_v50 }
 0x1f1   :  { %v201_v52 = vadd.f32 1e-05, %v197_v51 }
 0x1f2   :  { %v190_v53 = vpop.xlane.xlu1 %189  ;;  %v193_v54 = vpop.xlane.xlu0 %192 }
 0x1f3   :  { %6709 = vrsqrt.f32 %v201_v52  ;;  %v198_v55 = vmul.f32 0.03125, %v190_v53  ;;  %v199_v56 = vmul.f32 0.03125, %v193_v54 }
 0x1f5   :  { %v202_v58 = vadd.f32 1e-05, %v198_v55  ;;  %v203_v59 = vadd.f32 1e-05, %v199_v56 }
 0x1f6   :  { %v196_v60 = vpop.xlane.xlu1 %195 }
 0x1f7   :  { %6711 = vrsqrt.f32 %v202_v58  ;;  %v200_v61 = vmul.f32 0.03125, %v196_v60 }
 0x1f8   :  { %6713 = vrsqrt.f32 %v203_v59 }
 0x1f9   :  { %v204_v63 = vadd.f32 1e-05, %v200_v61 }
 0x1fb   :  { %6715 = vrsqrt.f32 %v204_v63 }
 0x200   :  { %v6710_v4 = vpop.eup %6709 }
 0x201   :  { %v209_v5 = vmul.f32 %v6710_v4, %v177_v28 }
 0x203   :  { %v217_v7 = vmul.f32 %v216_v3, %v209_v5 }
 0x204   :  { %v6712_v8 = vpop.eup %6711 }
 0x205   :  { %v6714_v9 = vpop.eup %6713  ;;  %v210_v10 = vmul.f32 %v6712_v8, %v178_v35  ;;  %v225_v11 = vadd.f32 %v224_v6, %v217_v7 }
 0x206   :  { %v211_v12 = vmul.f32 %v6714_v9, %v179_v34 }
 0x207   :  { %6269 = vmatprep.mubr.msk.f32.mxu0 %vm159_vm1, %v225_v11  ;;  %v218_v13 = vmul.f32 %v216_v3, %v210_v10 }
 0x208   :  { %v6716_v15 = vpop.eup %6715  ;;  %v219_v16 = vmul.f32 %v216_v3, %v211_v12 }
 0x209   :  { %v226_v18 = vadd.f32 %v224_v6, %v218_v13  ;;  %v212_v19 = vmul.f32 %v6716_v15, %v180_v41 }
 0x20a   :  { %v227_v20 = vadd.f32 %v224_v6, %v219_v16 }
 0x20b   :  { %6270 = vmatmul.mubr.msk.f32.vlgmr.msra.gmra.mxu0 %vm159_vm1, %v226_v18  ;;  %v220_v23 = vmul.f32 %v216_v3, %v212_v19 }
 0x20c   :  { %6272 = vmatprep.mubr.msk.f32.mxu0 %vm159_vm1, %v227_v20 }
 0x20d   :  { %v228_v24 = vadd.f32 %v224_v6, %v220_v23 }
 0x20f   :  { %6273 = vmatmul.mubr.msk.f32.gmra.mxu0 %vm159_vm1, %v228_v24 }
 0x2cb   :  { %v7072_v25 = vpop.f32.mrf.mxu0 }
 0x2cc   :  { %330 = vrot.lane.b32.xlu0 %v7072_v25, %s6902_s28 }
 0x2cd   :  { %v7076_v26 = vpop.f32.mrf.mxu0 }
 0x2ce   :  { %328 = vrot.lane.b32.xlu1 %v7076_v26, %s6902_s28  ;;  %6279 = vmatprep.mubr.msk.f32.mxu1 %vm332_vm2, %v7076_v26 }
 0x2cf   :  { %v7082_v27 = vpop.f32.mrf.mxu0 }
 0x2d1   :  { %v7086_v28 = vpop.f32.mrf.mxu0 }
 0x2d2   :  { %530 = vrot.lane.b32.xlu1 %v7082_v27, %s6902_s28 }
 0x2d6   :  { %528 = vrot.lane.b32.xlu1 %v7086_v28, %s6902_s28 }
 0x33e   :  { %v331_v29 = vpop.permute.xlu0 %330 }
 0x33f   :  { %6275 = vmatprep.subr.msk.mxu1 %vm332_vm2, %v331_v29 }
 0x340   :  { %6276 = vmatpush3.xpose.msk.msra.mxu1 %vm332_vm2, %v331_v29  ;;  %v329_v30 = vpop.permute.xlu1 %328 }
 0x341   :  { %6277 = vmatprep.subr.msk.mxu1 %vm332_vm2, %v329_v30 }
 0x344   :  { %6278 = vmatpush3.xpose.msk.msra.mxu1 %vm332_vm2, %v329_v30  ;;  %v531_v31 = vpop.permute.xlu1 %530 }
 0x345   :  { %6289 = vmatprep.subr.msk.mxu1 %vm332_vm2, %v531_v31 }
 0x347   :  { %6280 = vmatmul.mubr.msk.f32.vlgmr.msra.gmra.mxu1 %vm332_vm2, %v7072_v25 }
 0x348   :  { %6290 = vmatpush3.xpose.msk.msra.mxu1 %vm332_vm2, %v531_v31  ;;  %v529_v32 = vpop.permute.xlu1 %528  ;;  %6293 = vmatprep.mubr.msk.f32.mxu1 %vm332_vm2, %v7086_v28 }
 0x349   :  { %6291 = vmatprep.subr.msk.mxu1 %vm332_vm2, %v529_v32 }
 0x34c   :  { %6292 = vmatpush3.xpose.msk.msra.mxu1 %vm332_vm2, %v529_v32 }
 0x34f   :  { %6294 = vmatmul.mubr.msk.f32.vlgmr.msra.gmra.mxu1 %vm332_vm2, %v7082_v27 }
 0x407   :  { %v6281_v33 = vpop.f32.mrf.mxu1 }
 0x408   :  { %v420_v34 = vsel %vm416_vm3, %v6281_v33, -inf }
 0x409   :  { %v407_v35 = vpop.f32.mrf.mxu1  ;;  %421 = vmax.xlane.f32.xlu1 %v420_v34 }
 0x40a   :  { %v417_v36 = vsel %vm416_vm3, %v407_v35, -inf }
 0x40b   :  { %418 = vmax.xlane.f32.xlu0 %v417_v36 }
 0x40f   :  { %v6295_v37 = vpop.f32.mrf.mxu1 }
 0x410   :  { %v618_v40 = vsel %vm416_vm3, %v6295_v37, -inf }
 0x411   :  { %v606_v38 = vpop.f32.mrf.mxu1 }
 0x412   :  { %v615_v39 = vsel %vm416_vm3, %v606_v38, -inf }
 0x413   :  { %616 = vmax.xlane.f32.xlu0 %v615_v39 }
 0x417   :  { %619 = vmax.xlane.f32.xlu0 %v618_v40 }
 0x41a   :  { %439 = vrot.lane.b32.xlu1 %v7076_v26, %s6903_s29 }
 0x41e   :  { %639 = vrot.lane.b32.xlu1 %v7082_v27, %s6903_s29 }
 0x422   :  { %637 = vrot.lane.b32.xlu1 %v7086_v28, %s6903_s29 }
 0x42d   :  { %441 = vrot.lane.b32.xlu0 %v7072_v25, %s6903_s29 }
 0x492   :  { %v422_v41 = vpop.xlane.xlu1 %421 }
 0x493   :  { %v424_v42 = vsub.f32 %v6281_v33, %v422_v41 }
 0x494   :  { %v419_v43 = vpop.xlane.xlu0 %418 }
 0x495   :  { %v427_v44 = vmul.f32 1.442695, %v424_v42  ;;  %v423_v45 = vsub.f32 %v407_v35, %v419_v43 }
 0x496   :  { %v440_v52 = vpop.permute.xlu1 %439 }
 0x497   :  { %6717 = vpow2.f32 %v427_v44  ;;  %v425_v46 = vmul.f32 1.442695, %v423_v45 }
 0x499   :  { %6719 = vpow2.f32 %v425_v46 }
 0x49a   :  { %v640_v59 = vpop.permute.xlu1 %639 }
 0x49c   :  { %v617_v47 = vpop.xlane.xlu0 %616 }
 0x49d   :  { %v621_v48 = vsub.f32 %v606_v38, %v617_v47 }
 0x49e   :  { %v638_v3 = vpop.permute.xlu1 %637 }
 0x49f   :  { %v623_v49 = vmul.f32 1.442695, %v621_v48 }
 0x4a0   :  { %v620_v50 = vpop.xlane.xlu0 %619 }
 0x4a1   :  { %6721 = vpow2.f32 %v623_v49  ;;  %v622_v51 = vsub.f32 %v6295_v37, %v620_v50 }
 0x4a3   :  { %v625_v53 = vmul.f32 1.442695, %v622_v51 }
 0x4a4   :  { %v6718_v54 = vpop.eup %6717  ;;  %v442_v55 = vpop.permute.xlu0 %441 }
 0x4a5   :  { %6723 = vpow2.f32 %v625_v53  ;;  %6282 = vmatprep.subr.mxu0 %v442_v55  ;;  %v432_v56 = vsel %vm416_vm3, %v6718_v54, 0.0 }
 0x4a6   :  { %v6720_v57 = vpop.eup %6719  ;;  %433 = vadd.xlane.f32.xlu1 %v432_v56  ;;  %6283 = vmatpush3.msra.mxu0 %v442_v55 }
 0x4a7   :  { %6284 = vmatprep.subr.mxu0 %v440_v52  ;;  %v429_v58 = vsel %vm416_vm3, %v6720_v57, 0.0 }
 0x4a8   :  { %430 = vadd.xlane.f32.xlu0 %v429_v58  ;;  %6285 = vmatpush3.msra.mxu0 %v440_v52 }
 0x4a9   :  { %6296 = vmatprep.subr.mxu0 %v640_v59 }
 0x4ae   :  { %v6722_v60 = vpop.eup %6721 }
 0x4af   :  { %v627_v61 = vsel %vm416_vm3, %v6722_v60, 0.0 }
 0x4b0   :  { %628 = vadd.xlane.f32.xlu0 %v627_v61 }
 0x4b2   :  { %v6724_v63 = vpop.eup %6723 }
 0x4b3   :  { %v630_v1 = vsel %vm416_vm3, %v6724_v63, 0.0 }
 0x4b4   :  { %631 = vadd.xlane.f32.xlu1 %v630_v1 }
 0x4c5   :  { %728 = vrot.lane.b32.xlu1 %v7076_v26, %s6904_s30 }
 0x4c6   :  { %730 = vrot.lane.b32.xlu0 %v7072_v25, %s6904_s30 }
 0x4c9   :  { %726 = vrot.lane.b32.xlu1 %v7072_v25, %s6905_s11 }
 0x4ca   :  { %724 = vrot.lane.b32.xlu0 %v7076_v26, %s6905_s11 }
 0x52f   :  { %v434_v4 = vpop.xlane.xlu1 %433 }
 0x530   :  { %6725 = vrcp.f32 %v434_v4 }
 0x531   :  { %v431_v5 = vpop.xlane.xlu0 %430 }
 0x532   :  { %6727 = vrcp.f32 %v431_v5 }
 0x539   :  { %v629_v6 = vpop.xlane.xlu0 %628 }
 0x53a   :  { %6729 = vrcp.f32 %v629_v6 }
 0x53d   :  { %v632_v7 = vpop.xlane.xlu1 %631  ;;  %v6726_v8 = vpop.eup %6725 }
 0x53e   :  { %6731 = vrcp.f32 %v632_v7  ;;  %v438_v11 = vmul.f32 %v6726_v8, %v6718_v54  ;;  %v731_v12 = vpop.permute.xlu0 %730 }
 0x53f   :  { %v6728_v9 = vpop.eup %6727 }
 0x540   :  { %v437_v10 = vmul.f32 %v6728_v9, %v6720_v57  ;;  %v155_v57 = vld [vmem:[%s8225_s4] sm:$0xff] }
 0x541   :  { %v729_v20 = vpop.permute.xlu1 %728 }
 0x542   :  { %6286 = vmatprep.mubr.msk.f32.mxu0 %vm416_vm3, %v437_v10  ;;  %v725_v19 = vpop.permute.xlu0 %724 }
 0x543   :  { %6287 = vmatmul.mubr.msk.f32.vlgmr.msra.gmra.mxu0 %vm416_vm3, %v438_v11 }
 0x544   :  { %6297 = vmatpush3.msra.mxu0 %v640_v59 }
 0x545   :  { %6298 = vmatprep.subr.mxu0 %v638_v3  ;;  %v727_v23 = vpop.permute.xlu1 %726 }
 0x546   :  { %6299 = vmatpush3.msra.mxu0 %v638_v3 }
 0x547   :  { %v6730_v13 = vpop.eup %6729  ;;  %6303 = vmatprep.subr.msk.mxu0 %vm332_vm2, %v731_v12 }
 0x548   :  { %v635_v15 = vmul.f32 %v6730_v13, %v6722_v60 }
 0x54a   :  { %6300 = vmatprep.mubr.msk.f32.mxu0 %vm416_vm3, %v635_v15 }
 0x54b   :  { %v6732_v16 = vpop.eup %6731 }
 0x54c   :  { %v636_v18 = vmul.f32 %v6732_v16, %v6724_v63 }
 0x54e   :  { %6301 = vmatmul.mubr.msk.f32.vlgmr.msra.gmra.mxu0 %vm416_vm3, %v636_v18 }
 0x54f   :  { %6304 = vmatpush3.xpose.msk.msra.mxu0 %vm332_vm2, %v731_v12  ;;  %6307 = vmatprep.mubr.msk.f32.mxu0 %vm332_vm2, %v725_v19 }
 0x550   :  { %6305 = vmatprep.subr.msk.mxu0 %vm332_vm2, %v729_v20 }
 0x553   :  { %6306 = vmatpush3.xpose.msk.msra.mxu0 %vm332_vm2, %v729_v20  ;;  %v156_v20 = vld [vmem:[%s8225_s4 + $0x8] sm:$0xff] }
 0x556   :  { %6308 = vmatmul.mubr.msk.f32.vlgmr.msra.gmra.mxu0 %vm332_vm2, %v727_v23 }
 0x603   :  { %v6288_v24 = vpop.f32.mrf.mxu0 }
 0x605   :  { %v517_v29 = vpop.f32.mrf.mxu0 }
 0x60e   :  { %v6302_v30 = vpop.f32.mrf.mxu0 }
 0x610   :  { %v715_v31 = vpop.f32.mrf.mxu0 }
 0x616   :  { %v6309_v32 = vpop.f32.mrf.mxu0 }
 0x617   :  { %v818_v33 = vsel %vm416_vm3, %v6309_v32, -inf }
 0x618   :  { %819 = vmax.xlane.f32.xlu1 %v818_v33  ;;  %v806_v34 = vpop.f32.mrf.mxu0 }
 0x619   :  { %v815_v35 = vsel %vm416_vm3, %v806_v34, -inf }
 0x61a   :  { %816 = vmax.xlane.f32.xlu0 %v815_v35 }
 0x629   :  { %837 = vrot.lane.b32.xlu1 %v7076_v26, %s6906_s12 }
 0x62d   :  { %930 = vrot.lane.b32.xlu1 %v7082_v27, %s6904_s30 }
 0x631   :  { %928 = vrot.lane.b32.xlu1 %v7086_v28, %s6904_s30 }
 0x635   :  { %926 = vrot.lane.b32.xlu1 %v7082_v27, %s6905_s11 }
 0x6a1   :  { %v820_v36 = vpop.xlane.xlu1 %819 }
 0x6a2   :  { %v822_v37 = vsub.f32 %v6309_v32, %v820_v36 }
 0x6a3   :  { %v817_v38 = vpop.xlane.xlu0 %816 }
 0x6a4   :  { %v825_v39 = vmul.f32 1.442695, %v822_v37  ;;  %v821_v40 = vsub.f32 %v806_v34, %v817_v38 }
 0x6a5   :  { %v838_v48 = vpop.permute.xlu1 %837 }
 0x6a6   :  { %6733 = vpow2.f32 %v825_v39  ;;  %v823_v41 = vmul.f32 1.442695, %v821_v40 }
 0x6a8   :  { %6735 = vpow2.f32 %v823_v41 }
 0x6a9   :  { %v931_v50 = vpop.permute.xlu1 %930 }
 0x6ad   :  { %v929_v56 = vpop.permute.xlu1 %928 }
 0x6b1   :  { %v927_v58 = vpop.permute.xlu1 %926 }
 0x6b3   :  { %v6734_v42 = vpop.eup %6733 }
 0x6b4   :  { %v830_v43 = vsel %vm416_vm3, %v6734_v42, 0.0 }
 0x6b5   :  { %v6736_v44 = vpop.eup %6735  ;;  %831 = vadd.xlane.f32.xlu0 %v830_v43 }
 0x6b6   :  { %v827_v45 = vsel %vm416_vm3, %v6736_v44, 0.0 }
 0x6b9   :  { %828 = vadd.xlane.f32.xlu0 %v827_v45 }
 0x6cf   :  { %839 = vrot.lane.b32.xlu0 %v7072_v25, %s6906_s12 }
 0x6d3   :  { %924 = vrot.lane.b32.xlu0 %v7086_v28, %s6905_s11 }
 0x73e   :  { %v832_v46 = vpop.xlane.xlu0 %831 }
 0x73f   :  { %6737 = vrcp.f32 %v832_v46 }
 0x742   :  { %v829_v47 = vpop.xlane.xlu0 %828 }
 0x743   :  { %6739 = vrcp.f32 %v829_v47 }
 0x746   :  { %v840_v49 = vpop.permute.xlu0 %839 }
 0x747   :  { %6310 = vmatprep.subr.mxu1 %v840_v49 }
 0x748   :  { %6311 = vmatpush3.msra.mxu1 %v840_v49 }
 0x749   :  { %6312 = vmatprep.subr.mxu1 %v838_v48 }
 0x74a   :  { %6313 = vmatpush3.msra.mxu1 %v838_v48  ;;  %v925_v55 = vpop.permute.xlu0 %924 }
 0x74b   :  { %6317 = vmatprep.subr.msk.mxu1 %vm332_vm2, %v931_v50 }
 0x74c   :  { %v6738_v51 = vpop.eup %6737 }
 0x74d   :  { %v836_v54 = vmul.f32 %v6738_v51, %v6734_v42 }
 0x750   :  { %v6740_v52 = vpop.eup %6739 }
 0x751   :  { %v835_v53 = vmul.f32 %v6740_v52, %v6736_v44 }
 0x753   :  { %6314 = vmatprep.mubr.msk.f32.mxu1 %vm416_vm3, %v835_v53 }
 0x754   :  { %6315 = vmatmul.mubr.msk.f32.vlgmr.msra.gmra.mxu1 %vm416_vm3, %v836_v54 }
 0x755   :  { %6318 = vmatpush3.xpose.msk.msra.mxu1 %vm332_vm2, %v931_v50  ;;  %6321 = vmatprep.mubr.msk.f32.mxu1 %vm332_vm2, %v925_v55 }
 0x756   :  { %6319 = vmatprep.subr.msk.mxu1 %vm332_vm2, %v929_v56 }
 0x759   :  { %6320 = vmatpush3.xpose.msk.msra.mxu1 %vm332_vm2, %v929_v56 }
 0x75a   :  { %6339 = vmatprep.subr.mxu1 %v155_v57 }
 0x75c   :  { %6322 = vmatmul.mubr.msk.f32.vlgmr.msra.gmra.mxu1 %vm332_vm2, %v927_v58 }
 0x75d   :  { %6341 = vmatprep.mubr.msk.f32.mxu1 %vm332_vm2, %v517_v29  ;;  %6340 = vmatpush3.msra.mxu1 %v155_v57 }
 0x760   :  { %6342 = vmatmul.mubr.msk.f32.vlgmr.msra.gmra.mxu1 %vm332_vm2, %v6288_v24 }
 0x761   :  { %6344 = vmatprep.mubr.msk.f32.mxu1 %vm332_vm2, %v715_v31 }
 0x764   :  { %6345 = vmatmul.mubr.msk.f32.gmra.mxu1 %vm332_vm2, %v6302_v30 }
 0x814   :  { %v7169_v59 = vpop.f32.mrf.mxu1 }
 0x816   :  { %v915_v60 = vpop.f32.mrf.mxu1 }
 0x81c   :  { %v6323_v61 = vpop.f32.mrf.mxu1 }
 0x81d   :  { %v1018_v63 = vsel %vm416_vm3, %v6323_v61, -inf }
 0x81e   :  { %1019 = vmax.xlane.f32.xlu1 %v1018_v63  ;;  %v1006_v1 = vpop.f32.mrf.mxu1 }
 0x81f   :  { %v1015_v3 = vsel %vm416_vm3, %v1006_v1, -inf }
 0x820   :  { %1016 = vmax.xlane.f32.xlu0 %v1015_v3 }
 0x82f   :  { %1037 = vrot.lane.b32.xlu1 %v7086_v28, %s6906_s12 }
 0x833   :  { %1324 = vrot.lane.b32.xlu1 %v7072_v25, %s6907_s14 }
 0x837   :  { %1322 = vrot.lane.b32.xlu1 %v7076_v26, %s6907_s14 }
 0x83b   :  { %1524 = vrot.lane.b32.xlu1 %v7082_v27, %s6907_s14 }
 0x83f   :  { %1522 = vrot.lane.b32.xlu1 %v7086_v28, %s6907_s14 }
 0x843   :  { %1520 = vrot.lane.b32.xlu1 %v7082_v27, %s6908_s15 }
 0x847   :  { %1823 = vrot.lane.b32.xlu1 %v7076_v26, %s6909_s16 }
 0x84b   :  { %1821 = vrot.lane.b32.xlu1 %v7072_v25, %s6910_s17 }
 0x8a7   :  { %v1020_v4 = vpop.xlane.xlu1 %1019 }
 0x8a8   :  { %v1022_v5 = vsub.f32 %v6323_v61, %v1020_v4 }
 0x8a9   :  { %v1017_v6 = vpop.xlane.xlu0 %1016 }
 0x8aa   :  { %v1025_v7 = vmul.f32 1.442695, %v1022_v5  ;;  %v1021_v8 = vsub.f32 %v1006_v1, %v1017_v6 }
 0x8ab   :  { %v1038_v19 = vpop.permute.xlu1 %1037 }
 0x8ac   :  { %6741 = vpow2.f32 %v1025_v7  ;;  %v1023_v9 = vmul.f32 1.442695, %v1021_v8 }
 0x8ae   :  { %6743 = vpow2.f32 %v1023_v9 }
 0x8af   :  { %v1325_v29 = vpop.permute.xlu1 %1324 }
 0x8b3   :  { %v1323_v32 = vpop.permute.xlu1 %1322 }
 0x8b7   :  { %v1525_v33 = vpop.permute.xlu1 %1524 }
 0x8b9   :  { %v6742_v10 = vpop.eup %6741 }
 0x8ba   :  { %v1030_v11 = vsel %vm416_vm3, %v6742_v10, 0.0 }
 0x8bb   :  { %v6744_v12 = vpop.eup %6743  ;;  %1031 = vadd.xlane.f32.xlu0 %v1030_v11  ;;  %v1523_v39 = vpop.permute.xlu1 %1522 }
 0x8bc   :  { %v1027_v13 = vsel %vm416_vm3, %v6744_v12, 0.0 }
 0x8bf   :  { %1028 = vadd.xlane.f32.xlu0 %v1027_v13  ;;  %v1521_v41 = vpop.permute.xlu1 %1520 }
 0x8c3   :  { %v1824_v43 = vpop.permute.xlu1 %1823 }
 0x8c7   :  { %v1822_v44 = vpop.permute.xlu1 %1821 }
 0x8d5   :  { %1039 = vrot.lane.b32.xlu0 %v7082_v27, %s6906_s12 }
 0x8d9   :  { %1318 = vrot.lane.b32.xlu0 %v7076_v26, %s6908_s15 }
 0x8dd   :  { %1320 = vrot.lane.b32.xlu0 %v7072_v25, %s6908_s15 }
 0x8e1   :  { %1518 = vrot.lane.b32.xlu0 %v7086_v28, %s6908_s15 }
 0x8e5   :  { %1825 = vrot.lane.b32.xlu0 %v7072_v25, %s6909_s16 }
 0x8e9   :  { %1819 = vrot.lane.b32.xlu0 %v7076_v26, %s6910_s17 }
 0x944   :  { %v1032_v15 = vpop.xlane.xlu0 %1031 }
 0x945   :  { %6745 = vrcp.f32 %v1032_v15 }
 0x948   :  { %v1029_v16 = vpop.xlane.xlu0 %1028 }
 0x949   :  { %6747 = vrcp.f32 %v1029_v16 }
 0x94c   :  { %v1040_v18 = vpop.permute.xlu0 %1039 }
 0x94d   :  { %6324 = vmatprep.subr.mxu0 %v1040_v18 }
 0x94e   :  { %6325 = vmatpush3.msra.mxu0 %v1040_v18 }
 0x94f   :  { %6326 = vmatprep.subr.mxu0 %v1038_v19 }
 0x950   :  { %6327 = vmatpush3.msra.mxu0 %v1038_v19  ;;  %v1319_v34 = vpop.permute.xlu0 %1318 }
 0x951   :  { %6331 = vmatprep.subr.mxu0 %v156_v20 }
 0x952   :  { %v6746_v23 = vpop.eup %6745 }
 0x953   :  { %v1036_v31 = vmul.f32 %v6746_v23, %v6742_v10 }
 0x954   :  { %v1321_v35 = vpop.permute.xlu0 %1320 }
 0x956   :  { %v6748_v24 = vpop.eup %6747 }
 0x957   :  { %v1035_v30 = vmul.f32 %v6748_v24, %v6744_v12 }
 0x958   :  { %v1519_v38 = vpop.permute.xlu0 %1518 }
 0x959   :  { %6328 = vmatprep.mubr.msk.f32.mxu0 %vm416_vm3, %v1035_v30 }
 0x95a   :  { %6329 = vmatmul.mubr.msk.f32.vlgmr.msra.gmra.mxu0 %vm416_vm3, %v1036_v31 }
 0x95b   :  { %6332 = vmatpush3.msra.mxu0 %v156_v20  ;;  %6333 = vmatprep.mubr.msk.f32.mxu0 %vm332_vm2, %v915_v60 }
 0x95c   :  { %6347 = vmatprep.subr.msk.mxu0 %vm332_vm2, %v1325_v29  ;;  %v1826_v40 = vpop.permute.xlu0 %1825 }
 0x95e   :  { %6334 = vmatmul.mubr.msk.f32.vlgmr.msra.gmra.mxu0 %vm332_vm2, %v7169_v59 }
 0x95f   :  { %6348 = vmatpush3.xpose.msk.msra.mxu0 %vm332_vm2, %v1325_v29 }
 0x960   :  { %6349 = vmatprep.subr.msk.mxu0 %vm332_vm2, %v1323_v32  ;;  %v1820_v42 = vpop.permute.xlu0 %1819 }
 0x963   :  { %6350 = vmatpush3.xpose.msk.msra.mxu0 %vm332_vm2, %v1323_v32 }
 0x964   :  { %6361 = vmatprep.subr.msk.mxu0 %vm332_vm2, %v1525_v33 }
 0xa1a   :  { %v6330_v36 = vpop.f32.mrf.mxu0 }
 0xa1c   :  { %v1115_v37 = vpop.f32.mrf.mxu0 }
 0xa1d   :  { %6336 = vmatprep.mubr.msk.f32.mxu0 %vm332_vm2, %v1115_v37 }
 0xa1e   :  { %6337 = vmatmul.mubr.msk.f32.gmra.mxu0 %vm332_vm2, %v6330_v36  ;;  %v7231_v45 = vpop.f32.mrf.mxu0 }
 0xa1f   :  { %6351 = vmatprep.mubr.msk.f32.mxu0 %vm332_vm2, %v1319_v34 }
 0xa20   :  { %v7233_v46 = vpop.f32.mrf.mxu0 }
 0xa22   :  { %6352 = vmatmul.mubr.msk.f32.vlgmr.msra.gmra.mxu0 %vm332_vm2, %v1321_v35 }
 0xa23   :  { %6362 = vmatpush3.xpose.msk.msra.mxu0 %vm332_vm2, %v1525_v33  ;;  %6365 = vmatprep.mubr.msk.f32.mxu0 %vm332_vm2, %v1519_v38 }
 0xa24   :  { %6363 = vmatprep.subr.msk.mxu0 %vm332_vm2, %v1523_v39 }
 0xa27   :  { %6364 = vmatpush3.xpose.msk.msra.mxu0 %vm332_vm2, %v1523_v39 }
 0xa28   :  { %6383 = vmatprep.subr.msk.mxu0 %vm332_vm2, %v1826_v40 }
 0xa2a   :  { %6366 = vmatmul.mubr.msk.f32.vlgmr.msra.gmra.mxu0 %vm332_vm2, %v1521_v41 }
 0xa2b   :  { %6384 = vmatpush3.xpose.msk.msra.mxu0 %vm332_vm2, %v1826_v40  ;;  %6387 = vmatprep.mubr.msk.f32.mxu0 %vm332_vm2, %v1820_v42 }
 0xa2c   :  { %6385 = vmatprep.subr.msk.mxu0 %vm332_vm2, %v1824_v43 }
 0xa2f   :  { %6386 = vmatpush3.xpose.msk.msra.mxu0 %vm332_vm2, %v1824_v43 }
 0xa32   :  { %6388 = vmatmul.mubr.msk.f32.vlgmr.msra.gmra.mxu0 %vm332_vm2, %v1822_v44 }
 0xade   :  { %v7235_v47 = vpop.f32.mrf.mxu0 }
 0xae0   :  { %v7237_v48 = vpop.f32.mrf.mxu0 }
 0xae2   :  { %v6353_v49 = vpop.f32.mrf.mxu0 }
 0xae3   :  { %v1412_v50 = vsel %vm416_vm3, %v6353_v49, -inf }
 0xae4   :  { %1413 = vmax.xlane.f32.xlu1 %v1412_v50  ;;  %v1400_v51 = vpop.f32.mrf.mxu0 }
 0xae5   :  { %v1409_v52 = vsel %vm416_vm3, %v1400_v51, -inf }
 0xae6   :  { %1410 = vmax.xlane.f32.xlu0 %v1409_v52 }
 0xaea   :  { %v6367_v53 = vpop.f32.mrf.mxu0 }
 0xaeb   :  { %v1612_v56 = vsel %vm416_vm3, %v6367_v53, -inf }
 0xaec   :  { %v1600_v54 = vpop.f32.mrf.mxu0 }
 0xaed   :  { %v1609_v55 = vsel %vm416_vm3, %v1600_v54, -inf }
 0xaee   :  { %1610 = vmax.xlane.f32.xlu0 %v1609_v55 }
 0xaf2   :  { %1613 = vmax.xlane.f32.xlu0 %v1612_v56  ;;  %v6389_v18 = vpop.f32.mrf.mxu0 }
 0xaf3   :  { %v1913_v23 = vsel %vm416_vm3, %v6389_v18, -inf }
 0xaf4   :  { %v1901_v19 = vpop.f32.mrf.mxu0 }
 0xaf5   :  { %v1910_v20 = vsel %vm416_vm3, %v1901_v19, -inf }
 0xb6d   :  { %v1414_v57 = vpop.xlane.xlu1 %1413 }
 0xb6e   :  { %v1416_v58 = vsub.f32 %v6353_v49, %v1414_v57  ;;  %v157_v57 = vld [vmem:[%s8225_s4 + $0x10] sm:$0xff] }
 0xb6f   :  { %v1411_v59 = vpop.xlane.xlu0 %1410 }
 0xb70   :  { %v1419_v60 = vmul.f32 1.442695, %v1416_v58  ;;  %v1415_v61 = vsub.f32 %v1400_v51, %v1411_v59 }
 0xb72   :  { %6749 = vpow2.f32 %v1419_v60  ;;  %v1417_v63 = vmul.f32 1.442695, %v1415_v61 }
 0xb74   :  { %6751 = vpow2.f32 %v1417_v63  ;;  %v6343_v63 = vpop.f32.mrf.mxu1 }
 0xb77   :  { %v1611_v1 = vpop.xlane.xlu0 %1610 }
 0xb78   :  { %v1615_v3 = vsub.f32 %v1600_v54, %v1611_v1  ;;  %v7284_v1 = vpop.f32.mrf.mxu1 }
 0xb7a   :  { %v1617_v4 = vmul.f32 1.442695, %v1615_v3  ;;  %v6346_v3 = vpop.f32.mrf.mxu1 }
 0xb7b   :  { %v1614_v5 = vpop.xlane.xlu0 %1613 }
 0xb7c   :  { %6753 = vpow2.f32 %v1617_v4  ;;  %v1616_v6 = vsub.f32 %v6367_v53, %v1614_v5  ;;  %v1309_v4 = vpop.f32.mrf.mxu1 }
 0xb7e   :  { %v1619_v7 = vmul.f32 1.442695, %v1616_v6 }
 0xb7f   :  { %v6750_v8 = vpop.eup %6749 }
 0xb80   :  { %6755 = vpow2.f32 %v1619_v7  ;;  %v1424_v9 = vsel %vm416_vm3, %v6750_v8, 0.0 }
 0xb81   :  { %v6752_v10 = vpop.eup %6751  ;;  %1425 = vadd.xlane.f32.xlu1 %v1424_v9 }
 0xb82   :  { %v1421_v11 = vsel %vm416_vm3, %v6752_v10, 0.0 }
 0xb83   :  { %1422 = vadd.xlane.f32.xlu0 %v1421_v11 }
 0xb89   :  { %v6754_v12 = vpop.eup %6753 }
 0xb8a   :  { %v1621_v13 = vsel %vm416_vm3, %v6754_v12, 0.0 }
 0xb8b   :  { %1622 = vadd.xlane.f32.xlu0 %v1621_v13 }
 0xb8d   :  { %v6756_v15 = vpop.eup %6755 }
 0xb8e   :  { %v1624_v16 = vsel %vm416_vm3, %v6756_v15, 0.0 }
 0xb8f   :  { %1625 = vadd.xlane.f32.xlu1 %v1624_v16 }
 0xba0   :  { %1431 = vrot.lane.b32.xlu1 %v7076_v26, %s6911_s1 }
 0xba1   :  { %1433 = vrot.lane.b32.xlu0 %v7072_v25, %s6911_s1 }
 0xba4   :  { %1633 = vrot.lane.b32.xlu1 %v7082_v27, %s6911_s1 }
 0xba5   :  { %2025 = vrot.lane.b32.xlu0 %v7082_v27, %s6909_s16 }
 0xba8   :  { %1631 = vrot.lane.b32.xlu1 %v7086_v28, %s6911_s1 }
 0xba9   :  { %2019 = vrot.lane.b32.xlu0 %v7086_v28, %s6910_s17 }
 0xbac   :  { %2023 = vrot.lane.b32.xlu1 %v7086_v28, %s6909_s16 }
 0xbb0   :  { %2021 = vrot.lane.b32.xlu1 %v7082_v27, %s6910_s17 }
 0xbc8   :  { %1911 = vmax.xlane.f32.xlu0 %v1910_v20 }
 0xbd4   :  { %1914 = vmax.xlane.f32.xlu1 %v1913_v23 }
 0xbe5   :  { %1932 = vrot.lane.b32.xlu1 %v7076_v26, %s6912_s19 }
 0xc0a   :  { %v1426_v24 = vpop.xlane.xlu1 %1425 }
 0xc0b   :  { %6757 = vrcp.f32 %v1426_v24 }
 0xc0c   :  { %v1423_v29 = vpop.xlane.xlu0 %1422 }
 0xc0d   :  { %6759 = vrcp.f32 %v1423_v29 }
 0xc14   :  { %v1623_v30 = vpop.xlane.xlu0 %1622 }
 0xc15   :  { %6761 = vrcp.f32 %v1623_v30 }
 0xc18   :  { %v1626_v31 = vpop.xlane.xlu1 %1625  ;;  %v1434_v32 = vpop.permute.xlu0 %1433 }
 0xc19   :  { %v6758_v33 = vpop.eup %6757  ;;  %6763 = vrcp.f32 %v1626_v31  ;;  %6354 = vmatprep.subr.mxu1 %v1434_v32 }
 0xc1a   :  { %v6760_v34 = vpop.eup %6759  ;;  %6355 = vmatpush3.msra.mxu1 %v1434_v32  ;;  %v1430_v38 = vmul.f32 %v6758_v33, %v6750_v8 }
 0xc1b   :  { %v1429_v35 = vmul.f32 %v6760_v34, %v6752_v10 }
 0xc1c   :  { %v1432_v36 = vpop.permute.xlu1 %1431  ;;  %v2026_v37 = vpop.permute.xlu0 %2025 }
 0xc1d   :  { %6356 = vmatprep.subr.mxu1 %v1432_v36  ;;  %6397 = vmatprep.subr.msk.mxu0 %vm332_vm2, %v2026_v37 }
 0xc1e   :  { %6357 = vmatpush3.msra.mxu1 %v1432_v36  ;;  %6358 = vmatprep.mubr.msk.f32.mxu1 %vm416_vm3, %v1429_v35 }
 0xc1f   :  { %6398 = vmatpush3.xpose.msk.msra.mxu0 %vm332_vm2, %v2026_v37  ;;  %6359 = vmatmul.mubr.msk.f32.vlgmr.msra.gmra.mxu1 %vm416_vm3, %v1430_v38  ;;  %v1305_v38 = vadd.f32 %v6343_v63, %v7231_v45 }
 0xc20   :  { %v1634_v26 = vpop.permute.xlu1 %1633  ;;  %v2020_v39 = vpop.permute.xlu0 %2019 }
 0xc21   :  { %6368 = vmatprep.subr.mxu1 %v1634_v26  ;;  %6401 = vmatprep.mubr.msk.f32.mxu0 %vm332_vm2, %v2020_v39 }
 0xc22   :  { %v6762_v40 = vpop.eup %6761  ;;  %6369 = vmatpush3.msra.mxu1 %v1634_v26 }
 0xc23   :  { %v1629_v41 = vmul.f32 %v6762_v40, %v6754_v12 }
 0xc24   :  { %v1632_v42 = vpop.permute.xlu1 %1631 }
 0xc25   :  { %6370 = vmatprep.subr.mxu1 %v1632_v42  ;;  %6372 = vmatprep.mubr.msk.f32.mxu1 %vm416_vm3, %v1629_v41  ;;  %v1315_v41 = vadd.f32 %v6346_v3, %v7235_v47 }
 0xc26   :  { %v6764_v43 = vpop.eup %6763  ;;  %6371 = vmatpush3.msra.mxu1 %v1632_v42 }
 0xc27   :  { %v1630_v44 = vmul.f32 %v6764_v43, %v6756_v15  ;;  %6375 = vmatprep.subr.mxu1 %v157_v57  ;;  %v1310_v43 = vadd.f32 %v1309_v4, %v7237_v48  ;;  %v7322_v4 = vld [vmem:[%s8228_s7] sm:$0xff] }
 0xc28   :  { %v2024_v49 = vpop.permute.xlu1 %2023 }
 0xc29   :  { %6373 = vmatmul.mubr.msk.f32.vlgmr.msra.gmra.mxu1 %vm416_vm3, %v1630_v44  ;;  %6399 = vmatprep.subr.msk.mxu0 %vm332_vm2, %v2024_v49 }
 0xc2a   :  { %6400 = vmatpush3.xpose.msk.msra.mxu0 %vm332_vm2, %v2024_v49  ;;  %6376 = vmatpush3.msra.mxu1 %v157_v57 }
 0xc2c   :  { %v2022_v50 = vpop.permute.xlu1 %2021 }
 0xc2d   :  { %6402 = vmatmul.mubr.msk.f32.vlgmr.msra.gmra.mxu0 %vm332_vm2, %v2022_v50 }
 0xc51   :  { %v1912_v51 = vpop.xlane.xlu0 %1911 }
 0xc52   :  { %v1916_v52 = vsub.f32 %v1901_v19, %v1912_v51 }
 0xc54   :  { %v1918_v55 = vmul.f32 1.442695, %v1916_v52 }
 0xc5d   :  { %v1915_v53 = vpop.xlane.xlu1 %1914 }
 0xc5e   :  { %v1917_v54 = vsub.f32 %v6389_v18, %v1915_v53 }
 0xc60   :  { %v1920_v56 = vmul.f32 1.442695, %v1917_v54 }
 0xc61   :  { %v1933_v16 = vpop.permute.xlu1 %1932 }
 0xc62   :  { %6765 = vpow2.f32 %v1920_v56 }
 0xc63   :  { %6767 = vpow2.f32 %v1918_v55 }
 0xc6f   :  { %v6766_v58 = vpop.eup %6765 }
 0xc70   :  { %v1925_v59 = vsel %vm416_vm3, %v6766_v58, 0.0  ;;  %v6768_v60 = vpop.eup %6767 }
 0xc71   :  { %1926 = vadd.xlane.f32.xlu0 %v1925_v59  ;;  %v1922_v61 = vsel %vm416_vm3, %v6768_v60, 0.0 }
 0xc75   :  { %1923 = vadd.xlane.f32.xlu0 %v1922_v61 }
 0xc8b   :  { %1934 = vrot.lane.b32.xlu0 %v7072_v25, %s6912_s19 }
 0xcdf   :  { %v6360_v5 = vpop.f32.mrf.mxu1 }
 0xce1   :  { %v1509_v6 = vpop.f32.mrf.mxu1 }
 0xce2   :  { %6377 = vmatprep.mubr.msk.f32.mxu1 %vm332_vm2, %v1509_v6 }
 0xce3   :  { %6378 = vmatmul.mubr.msk.f32.vlgmr.msra.gmra.mxu1 %vm332_vm2, %v6360_v5 }
 0xce9   :  { %v6374_v7 = vpop.f32.mrf.mxu1 }
 0xceb   :  { %v1709_v8 = vpop.f32.mrf.mxu1 }
 0xcec   :  { %6380 = vmatprep.mubr.msk.f32.mxu1 %vm332_vm2, %v1709_v8 }
 0xced   :  { %6381 = vmatmul.mubr.msk.f32.gmra.mxu1 %vm332_vm2, %v6374_v7  ;;  %v6403_v9 = vpop.f32.mrf.mxu0 }
 0xcee   :  { %v2113_v25 = vsel %vm416_vm3, %v6403_v9, -inf }
 0xcef   :  { %v2101_v10 = vpop.f32.mrf.mxu0  ;;  %2114 = vmax.xlane.f32.xlu0 %v2113_v25 }
 0xcf0   :  { %v2110_v11 = vsel %vm416_vm3, %v2101_v10, -inf }
 0xcf1   :  { %2111 = vmax.xlane.f32.xlu1 %v2110_v11 }
 0xcfa   :  { %v1927_v12 = vpop.xlane.xlu0 %1926 }
 0xcfb   :  { %6769 = vrcp.f32 %v1927_v12 }
 0xcfe   :  { %v1924_v13 = vpop.xlane.xlu0 %1923 }
 0xcff   :  { %6771 = vrcp.f32 %v1924_v13 }
 0xd02   :  { %v1935_v15 = vpop.permute.xlu0 %1934 }
 0xd03   :  { %6390 = vmatprep.subr.mxu1 %v1935_v15 }
 0xd04   :  { %6391 = vmatpush3.msra.mxu1 %v1935_v15 }
 0xd05   :  { %6392 = vmatprep.subr.mxu1 %v1933_v16 }
 0xd06   :  { %6393 = vmatpush3.msra.mxu1 %v1933_v16 }
 0xd08   :  { %v6770_v18 = vpop.eup %6769 }
 0xd09   :  { %v1931_v23 = vmul.f32 %v6770_v18, %v6766_v58  ;;  %v2326_v58 = vsub.s32 4, %v7055_v62 }
 0xd0b   :  { %v2327_v5 = vrot.slane %v7322_v4, %v2326_v58 }
 0xd0c   :  { %v6772_v19 = vpop.eup %6771 }
 0xd0d   :  { %v1930_v20 = vmul.f32 %v6772_v19, %v6768_v60  ;;  %v1300_v60 = vadd.f32 %v7284_v1, %v7233_v46 }
 0xd0f   :  { %6394 = vmatprep.mubr.msk.f32.mxu1 %vm416_vm3, %v1930_v20 }
 0xd10   :  { %6395 = vmatmul.mubr.msk.f32.vlgmr.msra.gmra.mxu1 %vm416_vm3, %v1931_v23  ;;  %v2403_v23 = vld [vmem:[%s8226_s5 + $0x18] sm:$0xff] }
 0xd11   :  { %6419 = vmatprep.subr.mxu0 %v2403_v23 }
 0xd12   :  { %6420 = vmatpush3.msra.mxu0 %v2403_v23  ;;  %v2513_v23 = vld [vmem:[%s8227_s6] sm:$0xff] }
 0xd78   :  { %v2115_v24 = vpop.xlane.xlu0 %2114 }
 0xd79   :  { %v2117_v29 = vsub.f32 %v6403_v9, %v2115_v24  ;;  %v2402_v24 = vld [vmem:[%s8226_s5 + $0x10] sm:$0xff] }
 0xd7a   :  { %v2112_v30 = vpop.xlane.xlu1 %2111  ;;  %6421 = vmatprep.subr.mxu0 %v2402_v24 }
 0xd7b   :  { %v2120_v31 = vmul.f32 1.442695, %v2117_v29  ;;  %v2116_v32 = vsub.f32 %v2101_v10, %v2112_v30  ;;  %v2401_v29 = vld [vmem:[%s8226_s5 + $0x8] sm:$0xff]  ;;  %6422 = vmatpush3.msra.mxu0 %v2402_v24  ;;  %v2400_v30 = vld [vmem:[%s8226_s5] sm:$0xff] }
 0xd7c   :  { %6423 = vmatprep.subr.mxu0 %v2401_v29 }
 0xd7d   :  { %6773 = vpow2.f32 %v2120_v31  ;;  %v2118_v33 = vmul.f32 1.442695, %v2116_v32  ;;  %6424 = vmatpush3.msra.mxu0 %v2401_v29 }
 0xd7e   :  { %6425 = vmatprep.subr.mxu0 %v2400_v30 }
 0xd7f   :  { %6775 = vpow2.f32 %v2118_v33  ;;  %6426 = vmatpush3.msra.mxu0 %v2400_v30 }
 0xd8a   :  { %v6774_v34 = vpop.eup %6773 }
 0xd8b   :  { %v2125_v35 = vsel %vm416_vm3, %v6774_v34, 0.0 }
 0xd8c   :  { %v6776_v36 = vpop.eup %6775  ;;  %2126 = vadd.xlane.f32.xlu1 %v2125_v35 }
 0xd8d   :  { %v2122_v37 = vsel %vm416_vm3, %v6776_v36, 0.0 }
 0xd8e   :  { %2123 = vadd.xlane.f32.xlu0 %v2122_v37 }
 0xd9d   :  { %2132 = vrot.lane.b32.xlu1 %v7086_v28, %s6912_s19 }
 0xda3   :  { %v6379_v26 = vpop.f32.mrf.mxu1 }
 0xda4   :  { %v1816_v39 = vadd.f32 %v6379_v26, %v1305_v38  ;;  %2134 = vrot.lane.b32.xlu0 %v7082_v27, %s6912_s19  ;;  %v158_v27 = vld [vmem:[%s8225_s4 + $0x18] sm:$0xff] }
 0xda5   :  { %v1796_v40 = vpop.f32.mrf.mxu1 }
 0xda6   :  { %v1815_v63 = vadd.f32 %v1796_v40, %v1300_v60 }
 0xdad   :  { %v6382_v42 = vpop.f32.mrf.mxu1 }
 0xdae   :  { %v7303_v44 = vadd.f32 %v6382_v42, %v1315_v41 }
 0xdaf   :  { %v1806_v49 = vpop.f32.mrf.mxu1 }
 0xdb0   :  { %v7305_v50 = vadd.f32 %v1806_v49, %v1310_v43 }
 0xdd0   :  { %v6396_v53 = vpop.f32.mrf.mxu1 }
 0xdd2   :  { %v2010_v56 = vpop.f32.mrf.mxu1 }
 0xe15   :  { %v2127_v51 = vpop.xlane.xlu1 %2126 }
 0xe16   :  { %6777 = vrcp.f32 %v2127_v51  ;;  %v2394_v51 = vsub.s32 6, %v7055_v62 }
 0xe17   :  { %v2124_v28 = vpop.xlane.xlu0 %2123 }
 0xe18   :  { %6779 = vrcp.f32 %v2124_v28 }
 0xe19   :  { %v2133_v52 = vpop.permute.xlu1 %2132 }
 0xe1b   :  { %v2135_v45 = vpop.permute.xlu0 %2134 }
 0xe1c   :  { %6404 = vmatprep.subr.mxu1 %v2135_v45 }
 0xe1d   :  { %6405 = vmatpush3.msra.mxu1 %v2135_v45 }
 0xe1e   :  { %6406 = vmatprep.subr.mxu1 %v2133_v52 }
 0xe1f   :  { %6407 = vmatpush3.msra.mxu1 %v2133_v52 }
 0xe20   :  { %6411 = vmatprep.subr.mxu1 %v158_v27 }
 0xe23   :  { %v6778_v47 = vpop.eup %6777 }
 0xe24   :  { %v2131_v55 = vmul.f32 %v6778_v47, %v6774_v34 }
 0xe25   :  { %v6780_v48 = vpop.eup %6779 }
 0xe26   :  { %v2130_v54 = vmul.f32 %v6780_v48, %v6776_v36 }
 0xe28   :  { %6408 = vmatprep.mubr.msk.f32.mxu1 %vm416_vm3, %v2130_v54 }
 0xe29   :  { %6409 = vmatmul.mubr.msk.f32.vlgmr.msra.gmra.mxu1 %vm416_vm3, %v2131_v55 }
 0xe2a   :  { %6412 = vmatpush3.msra.mxu1 %v158_v27  ;;  %6413 = vmatprep.mubr.msk.f32.mxu1 %vm332_vm2, %v2010_v56  ;;  %v7375_v27 = vrot.slane %v7322_v4, %v2394_v51 }
 0xe2d   :  { %6414 = vmatmul.mubr.msk.f32.vlgmr.msra.gmra.mxu1 %vm332_vm2, %v6396_v53 }
 0xee9   :  { %v6410_v57 = vpop.f32.mrf.mxu1 }
 0xeeb   :  { %v2210_v59 = vpop.f32.mrf.mxu1 }
 0xeec   :  { %6416 = vmatprep.mubr.msk.f32.mxu1 %vm332_vm2, %v2210_v59 }
 0xeed   :  { %v6415_v61 = vpop.f32.mrf.mxu1  ;;  %6417 = vmatmul.mubr.msk.f32.gmra.mxu1 %vm332_vm2, %v6410_v57 }
 0xeee   :  { %v2317_v3 = vadd.f32 %v6415_v61, %v1816_v39 }
 0xeef   :  { %v2297_v6 = vpop.f32.mrf.mxu1 }
 0xef0   :  { %v2321_v7 = vadd.f32 %v2317_v3, %v7018_v17  ;;  %v2316_v46 = vadd.f32 %v2297_v6, %v1815_v63 }
 0xef2   :  { %v7328_v1 = vadd.f32 %v2327_v5, %v2321_v7  ;;  %v2320_v8 = vadd.f32 %v2316_v46, %v7013_v14  ;;  %v2528_v7 = vld [vmem:[%s8227_s6 + $0x78] sm:$0xff]  ;;  %v2527_v46 = vld [vmem:[%s8227_s6 + $0x70] sm:$0xff] }
 0xef3   :  { %6433 = vmatprep.subr.mxu1 %v2528_v7 }
 0xef4   :  { %v7331_v9 = vadd.f32 %v2327_v5, %v2320_v8  ;;  %v2335_v25 = vsel %vm159_vm1, %v7328_v1, 0.0  ;;  %6434 = vmatpush3.msra.mxu1 %v2528_v7  ;;  %v2526_v8 = vld [vmem:[%s8227_s6 + $0x68] sm:$0xff] }
 0xef5   :  { %2336 = vadd.xlane.f32.xlu0 %v2335_v25  ;;  %6435 = vmatprep.subr.mxu1 %v2527_v46  ;;  %v2525_v25 = vld [vmem:[%s8227_s6 + $0x60] sm:$0xff] }
 0xef6   :  { %v2332_v10 = vsel %vm159_vm1, %v7331_v9, 0.0  ;;  %6436 = vmatpush3.msra.mxu1 %v2527_v46 }
 0xef7   :  { %2333 = vadd.xlane.f32.xlu1 %v2332_v10  ;;  %6437 = vmatprep.subr.mxu1 %v2526_v8  ;;  %v2524_v10 = vld [vmem:[%s8227_s6 + $0x58] sm:$0xff] }
 0xef8   :  { %6438 = vmatpush3.msra.mxu1 %v2526_v8 }
 0xef9   :  { %6439 = vmatprep.subr.mxu1 %v2525_v25 }
 0xefa   :  { %6440 = vmatpush3.msra.mxu1 %v2525_v25 }
 0xefb   :  { %6441 = vmatprep.subr.mxu1 %v2524_v10 }
 0xefc   :  { %6442 = vmatpush3.msra.mxu1 %v2524_v10 }
 0xf7e   :  { %v2337_v11 = vpop.xlane.xlu0 %2336 }
 0xf7f   :  { %v2345_v12 = vmul.f32 0.03125, %v2337_v11  ;;  %v2523_v11 = vld [vmem:[%s8227_s6 + $0x50] sm:$0xff] }
 0xf80   :  { %v2334_v13 = vpop.xlane.xlu1 %2333  ;;  %6443 = vmatprep.subr.mxu1 %v2523_v11 }
 0xf81   :  { %v2349_v17 = vsub.f32 %v7328_v1, %v2345_v12  ;;  %v2344_v15 = vmul.f32 0.03125, %v2334_v13  ;;  %v2522_v12 = vld [vmem:[%s8227_s6 + $0x48] sm:$0xff]  ;;  %6444 = vmatpush3.msra.mxu1 %v2523_v11  ;;  %v2521_v13 = vld [vmem:[%s8227_s6 + $0x40] sm:$0xff] }
 0xf82   :  { %6445 = vmatprep.subr.mxu1 %v2522_v12 }
 0xf83   :  { %v2348_v16 = vsub.f32 %v7331_v9, %v2344_v15  ;;  %v2353_v18 = vmul.f32 %v2349_v17, %v2349_v17  ;;  %6446 = vmatpush3.msra.mxu1 %v2522_v12  ;;  %v2519_v15 = vld [vmem:[%s8227_s6 + $0x30] sm:$0xff] }
 0xf84   :  { %6447 = vmatprep.subr.mxu1 %v2521_v13 }
 0xf85   :  { %v2359_v14 = vsel %vm159_vm1, %v2353_v18, 0.0  ;;  %v2352_v19 = vmul.f32 %v2348_v16, %v2348_v16  ;;  %6448 = vmatpush3.msra.mxu1 %v2521_v13  ;;  %v2517_v18 = vld [vmem:[%s8227_s6 + $0x20] sm:$0xff] }
 0xf86   :  { %2360 = vadd.xlane.f32.xlu1 %v2359_v14  ;;  %v2516_v14 = vld [vmem:[%s8227_s6 + $0x18] sm:$0xff] }
 0xf87   :  { %v2356_v20 = vsel %vm159_vm1, %v2352_v19, 0.0  ;;  %v2515_v19 = vld [vmem:[%s8227_s6 + $0x10] sm:$0xff] }
 0xf88   :  { %2357 = vadd.xlane.f32.xlu0 %v2356_v20  ;;  %v2514_v20 = vld [vmem:[%s8227_s6 + $0x8] sm:$0xff] }
 0xfad   :  { %v6418_v31 = vpop.f32.mrf.mxu1 }
 0xfae   :  { %v2319_v32 = vadd.f32 %v6418_v31, %v7303_v44 }
 0xfaf   :  { %v2307_v33 = vpop.f32.mrf.mxu1 }
 0xfb0   :  { %v2323_v34 = vadd.f32 %v2319_v32, %v7027_v22  ;;  %v2318_v35 = vadd.f32 %v2307_v33, %v7305_v50 }
 0xfb2   :  { %v7356_v36 = vadd.f32 %v2327_v5, %v2323_v34  ;;  %v2322_v37 = vadd.f32 %v2318_v35, %v7025_v21  ;;  %v2386_v21 = vsub.s32 5, %v7055_v62 }
 0xfb4   :  { %v7359_v38 = vadd.f32 %v2327_v5, %v2322_v37  ;;  %v2341_v26 = vsel %vm159_vm1, %v7356_v36, 0.0  ;;  %v7369_v50 = vrot.slane %v7322_v4, %v2386_v21 }
 0xfb5   :  { %2342 = vadd.xlane.f32.xlu1 %v2341_v26 }
 0xfb6   :  { %v2338_v39 = vsel %vm159_vm1, %v7359_v38, 0.0 }
 0xfb7   :  { %2339 = vadd.xlane.f32.xlu0 %v2338_v39  ;;  %v2406_v39 = vsub.s32 7, %v7055_v62 }
0x100f   :  { %v2361_v40 = vpop.xlane.xlu1 %2360 }
0x1010   :  { %v2369_v41 = vmul.f32 0.03125, %v2361_v40 }
0x1011   :  { %v2358_v42 = vpop.xlane.xlu0 %2357 }
0x1012   :  { %v2373_v22 = vadd.f32 1e-05, %v2369_v41  ;;  %v2368_v43 = vmul.f32 0.03125, %v2358_v42 }
0x1014   :  { %6781 = vrsqrt.f32 %v2373_v22  ;;  %v2372_v44 = vadd.f32 1e-05, %v2368_v43  ;;  %v2407_v22 = vrot.slane %v7322_v4, %v2406_v39 }
0x1016   :  { %6783 = vrsqrt.f32 %v2372_v44 }
0x1021   :  { %v6782_v49 = vpop.eup %6781 }
0x1022   :  { %v2381_v28 = vmul.f32 %v6782_v49, %v2349_v17  ;;  %v2520_v17 = vld [vmem:[%s8227_s6 + $0x38] sm:$0xff] }
0x1023   :  { %v6784_v45 = vpop.eup %6783  ;;  %6449 = vmatprep.subr.mxu1 %v2520_v17 }
0x1024   :  { %v2380_v52 = vmul.f32 %v6784_v45, %v2348_v16  ;;  %v2389_v47 = vmul.f32 %v7369_v50, %v2381_v28  ;;  %6450 = vmatpush3.msra.mxu1 %v2520_v17  ;;  %v2518_v16 = vld [vmem:[%s8227_s6 + $0x28] sm:$0xff] }
0x1025   :  { %6451 = vmatprep.subr.mxu1 %v2519_v15 }
0x1026   :  { %v2388_v48 = vmul.f32 %v7369_v50, %v2380_v52  ;;  %v2397_v54 = vadd.f32 %v7375_v27, %v2389_v47  ;;  %6452 = vmatpush3.msra.mxu1 %v2519_v15 }
0x1027   :  { %6453 = vmatprep.subr.mxu1 %v2518_v16 }
0x1028   :  { %v2396_v53 = vadd.f32 %v7375_v27, %v2388_v48  ;;  %6454 = vmatpush3.msra.mxu1 %v2518_v16 }
0x1029   :  { %6455 = vmatprep.subr.mxu1 %v2517_v18 }
0x102a   :  { %6427 = vmatprep.mubr.msk.f32.mxu0 %vm159_vm1, %v2396_v53  ;;  %6456 = vmatpush3.msra.mxu1 %v2517_v18 }
0x102b   :  { %6428 = vmatmul.mubr.msk.f32.vlgmr.msra.gmra.mxu0 %vm159_vm1, %v2397_v54  ;;  %6457 = vmatprep.subr.mxu1 %v2516_v14 }
0x102c   :  { %6458 = vmatpush3.msra.mxu1 %v2516_v14 }
0x102d   :  { %6459 = vmatprep.subr.mxu1 %v2515_v19 }
0x102e   :  { %6460 = vmatpush3.msra.mxu1 %v2515_v19  ;;  %v5804_v19 = vld [vmem:[%s8224_s3 + $0x38] sm:$0xff] }
0x102f   :  { %6461 = vmatprep.subr.mxu1 %v2514_v20  ;;  %6471 = vmatprep.subr.mxu0 %v5804_v19 }
0x1030   :  { %6462 = vmatpush3.msra.mxu1 %v2514_v20  ;;  %v5803_v20 = vld [vmem:[%s8224_s3 + $0x30] sm:$0xff]  ;;  %6472 = vmatpush3.msra.mxu0 %v5804_v19 }
0x1031   :  { %6463 = vmatprep.subr.mxu1 %v2513_v23  ;;  %6473 = vmatprep.subr.mxu0 %v5803_v20 }
0x1032   :  { %6464 = vmatpush3.msra.mxu1 %v2513_v23  ;;  %v5802_v23 = vld [vmem:[%s8224_s3 + $0x28] sm:$0xff]  ;;  %6474 = vmatpush3.msra.mxu0 %v5803_v20 }
0x1033   :  { %6475 = vmatprep.subr.mxu0 %v5802_v23 }
0x1034   :  { %6476 = vmatpush3.msra.mxu0 %v5802_v23 }
0x103e   :  { %v2343_v55 = vpop.xlane.xlu1 %2342 }
0x103f   :  { %v2347_v56 = vmul.f32 0.03125, %v2343_v55 }
0x1040   :  { %v2340_v57 = vpop.xlane.xlu0 %2339 }
0x1041   :  { %v7384_v59 = vsub.f32 %v7356_v36, %v2347_v56  ;;  %v2346_v60 = vmul.f32 0.03125, %v2340_v57  ;;  %v7456_v57 = vsub.s32 0, %v7055_v62 }
0x1043   :  { %v7387_v61 = vsub.f32 %v7359_v38, %v2346_v60  ;;  %v2355_v63 = vmul.f32 %v7384_v59, %v7384_v59 }
0x1045   :  { %v2365_v3 = vsel %vm159_vm1, %v2355_v63, 0.0  ;;  %v2354_v5 = vmul.f32 %v7387_v61, %v7387_v61 }
0x1046   :  { %2366 = vadd.xlane.f32.xlu1 %v2365_v3 }
0x1047   :  { %v2362_v6 = vsel %vm159_vm1, %v2354_v5, 0.0 }
0x1048   :  { %2363 = vadd.xlane.f32.xlu0 %v2362_v6 }
0x10cf   :  { %v2367_v24 = vpop.xlane.xlu1 %2366 }
0x10d0   :  { %v2371_v29 = vmul.f32 0.03125, %v2367_v24  ;;  %v5801_v24 = vld [vmem:[%s8224_s3 + $0x20] sm:$0xff] }
0x10d1   :  { %v2364_v30 = vpop.xlane.xlu0 %2363  ;;  %6477 = vmatprep.subr.mxu0 %v5801_v24 }
0x10d2   :  { %v2375_v31 = vadd.f32 1e-05, %v2371_v29  ;;  %v2370_v32 = vmul.f32 0.03125, %v2364_v30  ;;  %6478 = vmatpush3.msra.mxu0 %v5801_v24 }
0x10d4   :  { %6785 = vrsqrt.f32 %v2375_v31  ;;  %v2374_v33 = vadd.f32 1e-05, %v2370_v32 }
0x10d6   :  { %6787 = vrsqrt.f32 %v2374_v33 }
0x10e1   :  { %v6786_v34 = vpop.eup %6785 }
0x10e2   :  { %v2383_v35 = vmul.f32 %v6786_v34, %v7384_v59  ;;  %v7461_v59 = vld [vmem:[%s8228_s7 + $0x8] sm:$0xff] }
0x10e3   :  { %v6788_v37 = vpop.eup %6787  ;;  %v2621_v63 = vrot.slane %v7461_v59, %v7456_v57 }
0x10e4   :  { %v2382_v26 = vmul.f32 %v6788_v37, %v7387_v61  ;;  %v2391_v40 = vmul.f32 %v7369_v50, %v2383_v35 }
0x10e6   :  { %v2390_v41 = vmul.f32 %v7369_v50, %v2382_v26  ;;  %v2399_v43 = vadd.f32 %v7375_v27, %v2391_v40 }
0x10e8   :  { %v2398_v42 = vadd.f32 %v7375_v27, %v2390_v41 }
0x10ea   :  { %6430 = vmatprep.mubr.msk.f32.mxu0 %vm159_vm1, %v2398_v42 }
0x10eb   :  { %v6429_v44 = vpop.f32.mrf.mxu0  ;;  %6431 = vmatmul.mubr.msk.f32.gmra.mxu0 %vm159_vm1, %v2399_v43 }
0x10ec   :  { %v2492_v49 = vadd.f32 %v6429_v44, %v2407_v22 }
0x10ed   :  { %v2486_v28 = vpop.f32.mrf.mxu0 }
0x10ee   :  { %v2487_v45 = vadd.f32 %v2486_v28, %v2407_v22  ;;  %v2506_v52 = vmax.f32 %v2492_v49, 0.0 }
0x10f0   :  { %v2505_v47 = vmax.f32 %v2487_v45, 0.0  ;;  %v2510_v50 = vmin.f32 %v2506_v52, 6.0  ;;  %v2699_v52 = vrot.slane %v7461_v59, %v7058_v0 }
0x10f2   :  { %v2509_v48 = vmin.f32 %v2505_v47, 6.0 }
0x10f4   :  { %6465 = vmatprep.mubr.f32.mxu1 %v2509_v48 }
0x10f5   :  { %6466 = vmatmul.mubr.f32.vlgmr.msra.gmra.mxu1 %v2510_v50 }
0x11ab   :  { %v6432_v53 = vpop.f32.mrf.mxu0 }
0x11ac   :  { %v2502_v54 = vadd.f32 %v6432_v53, %v2407_v22 }
0x11ad   :  { %v2496_v55 = vpop.f32.mrf.mxu0 }
0x11ae   :  { %v2497_v4 = vadd.f32 %v2496_v55, %v2407_v22  ;;  %v2508_v56 = vmax.f32 %v2502_v54, 0.0 }
0x11b0   :  { %v2507_v27 = vmax.f32 %v2497_v4, 0.0  ;;  %v2512_v61 = vmin.f32 %v2508_v56, 6.0 }
0x11b2   :  { %v2511_v60 = vmin.f32 %v2507_v27, 6.0 }
0x11b4   :  { %6468 = vmatprep.mubr.f32.mxu1 %v2511_v60 }
0x11b5   :  { %v6467_v3 = vpop.f32.mrf.mxu1  ;;  %6469 = vmatmul.mubr.f32.gmra.mxu1 %v2512_v61 }
0x11b6   :  { %v2615_v5 = vadd.f32 %v6467_v3, %v7328_v1 }
0x11b7   :  { %v2595_v6 = vpop.f32.mrf.mxu1 }
0x11b8   :  { %v7466_v7 = vadd.f32 %v2621_v63, %v2615_v5  ;;  %v2614_v46 = vadd.f32 %v2595_v6, %v7331_v9 }
0x11ba   :  { %v7469_v8 = vadd.f32 %v2621_v63, %v2614_v46  ;;  %v2639_v25 = vsel %vm159_vm1, %v7466_v7, 0.0 }
0x11bb   :  { %2640 = vadd.xlane.f32.xlu1 %v2639_v25 }
0x11bc   :  { %v2636_v10 = vsel %vm159_vm1, %v7469_v8, 0.0 }
0x11bd   :  { %2637 = vadd.xlane.f32.xlu0 %v2636_v10 }
0x1244   :  { %v2641_v11 = vpop.xlane.xlu1 %2640 }
0x1245   :  { %v2649_v12 = vmul.f32 0.03125, %v2641_v11 }
0x1246   :  { %v2638_v13 = vpop.xlane.xlu0 %2637 }
0x1247   :  { %v2653_v1 = vsub.f32 %v7466_v7, %v2649_v12  ;;  %v2648_v17 = vmul.f32 0.03125, %v2638_v13 }
0x1249   :  { %v2652_v15 = vsub.f32 %v7469_v8, %v2648_v17  ;;  %v2657_v16 = vmul.f32 %v2653_v1, %v2653_v1 }
0x124b   :  { %v2663_v9 = vsel %vm159_vm1, %v2657_v16, 0.0  ;;  %v2656_v18 = vmul.f32 %v2652_v15, %v2652_v15 }
0x124c   :  { %2664 = vadd.xlane.f32.xlu1 %v2663_v9 }
0x124d   :  { %v2660_v14 = vsel %vm159_vm1, %v2656_v18, 0.0 }
0x124e   :  { %2661 = vadd.xlane.f32.xlu0 %v2660_v14 }
0x1275   :  { %v6470_v29 = vpop.f32.mrf.mxu1 }
0x1276   :  { %v2617_v30 = vadd.f32 %v6470_v29, %v7356_v36 }
0x1277   :  { %v2605_v31 = vpop.f32.mrf.mxu1 }
0x1278   :  { %v7492_v32 = vadd.f32 %v2621_v63, %v2617_v30  ;;  %v2616_v33 = vadd.f32 %v2605_v31, %v7359_v38  ;;  %v7502_v38 = vsub.s32 1, %v7055_v62 }
0x127a   :  { %v7495_v34 = vadd.f32 %v2621_v63, %v2616_v33  ;;  %v2645_v35 = vsel %vm159_vm1, %v7492_v32, 0.0  ;;  %v2691_v44 = vrot.slane %v7461_v59, %v7502_v38 }
0x127b   :  { %2646 = vadd.xlane.f32.xlu1 %v2645_v35 }
0x127c   :  { %v2642_v37 = vsel %vm159_vm1, %v7495_v34, 0.0 }
0x127d   :  { %2643 = vadd.xlane.f32.xlu0 %v2642_v37 }
0x12d5   :  { %v2665_v26 = vpop.xlane.xlu1 %2664 }
0x12d6   :  { %v2673_v40 = vmul.f32 0.03125, %v2665_v26 }
0x12d7   :  { %v2662_v41 = vpop.xlane.xlu0 %2661 }
0x12d8   :  { %v2677_v42 = vadd.f32 1e-05, %v2673_v40  ;;  %v2672_v36 = vmul.f32 0.03125, %v2662_v41 }
0x12da   :  { %6789 = vrsqrt.f32 %v2677_v42  ;;  %v2676_v22 = vadd.f32 1e-05, %v2672_v36 }
0x12dc   :  { %6791 = vrsqrt.f32 %v2676_v22 }
0x12e7   :  { %v6790_v43 = vpop.eup %6789 }
0x12e8   :  { %v2685_v49 = vmul.f32 %v6790_v43, %v2653_v1 }
0x12e9   :  { %v6792_v28 = vpop.eup %6791 }
0x12ea   :  { %v2684_v45 = vmul.f32 %v6792_v28, %v2652_v15  ;;  %v2693_v47 = vmul.f32 %v2691_v44, %v2685_v49 }
0x12ec   :  { %v2692_v48 = vmul.f32 %v2691_v44, %v2684_v45  ;;  %v2701_v53 = vadd.f32 %v2699_v52, %v2693_v47 }
0x12ee   :  { %v2700_v50 = vadd.f32 %v2699_v52, %v2692_v48 }
0x12f0   :  { %6479 = vmatprep.mubr.msk.f32.mxu0 %vm159_vm1, %v2700_v50 }
0x12f1   :  { %6480 = vmatmul.mubr.msk.f32.vlgmr.msra.gmra.mxu0 %vm159_vm1, %v2701_v53 }
0x1304   :  { %v2647_v54 = vpop.xlane.xlu1 %2646 }
0x1305   :  { %v2651_v55 = vmul.f32 0.03125, %v2647_v54 }
0x1306   :  { %v2644_v4 = vpop.xlane.xlu0 %2643 }
0x1307   :  { %v2655_v56 = vsub.f32 %v7492_v32, %v2651_v55  ;;  %v2650_v27 = vmul.f32 0.03125, %v2644_v4 }
0x1309   :  { %v2654_v60 = vsub.f32 %v7495_v34, %v2650_v27  ;;  %v2659_v61 = vmul.f32 %v2655_v56, %v2655_v56 }
0x130b   :  { %v2669_v63 = vsel %vm159_vm1, %v2659_v61, 0.0  ;;  %v2658_v59 = vmul.f32 %v2654_v60, %v2654_v60 }
0x130c   :  { %2670 = vadd.xlane.f32.xlu1 %v2669_v63 }
0x130d   :  { %v2666_v3 = vsel %vm159_vm1, %v2658_v59, 0.0 }
0x130e   :  { %2667 = vadd.xlane.f32.xlu0 %v2666_v3 }
0x1395   :  { %v2671_v5 = vpop.xlane.xlu1 %2670 }
0x1396   :  { %v2675_v6 = vmul.f32 0.03125, %v2671_v5 }
0x1397   :  { %v2668_v46 = vpop.xlane.xlu0 %2667 }
0x1398   :  { %v2679_v25 = vadd.f32 1e-05, %v2675_v6  ;;  %v2674_v10 = vmul.f32 0.03125, %v2668_v46  ;;  %v5805_v6 = vld [vmem:[%s8225_s4 + $0x20] sm:$0xff] }
0x139a   :  { %6793 = vrsqrt.f32 %v2679_v25  ;;  %v2678_v11 = vadd.f32 1e-05, %v2674_v10 }
0x139c   :  { %6795 = vrsqrt.f32 %v2678_v11 }
0x13a7   :  { %v6794_v12 = vpop.eup %6793 }
0x13a8   :  { %v2687_v13 = vmul.f32 %v6794_v12, %v2655_v56 }
0x13a9   :  { %v6796_v1 = vpop.eup %6795 }
0x13aa   :  { %v2686_v17 = vmul.f32 %v6796_v1, %v2654_v60  ;;  %v2695_v15 = vmul.f32 %v2691_v44, %v2687_v13 }
0x13ac   :  { %v2694_v16 = vmul.f32 %v2691_v44, %v2686_v17  ;;  %v2703_v18 = vadd.f32 %v2699_v52, %v2695_v15 }
0x13ae   :  { %v2702_v9 = vadd.f32 %v2699_v52, %v2694_v16 }
0x13b0   :  { %6482 = vmatprep.mubr.msk.f32.mxu0 %vm159_vm1, %v2702_v9 }
0x13b1   :  { %v7515_v14 = vpop.f32.mrf.mxu0  ;;  %6483 = vmatmul.mubr.msk.f32.gmra.mxu0 %vm159_vm1, %v2703_v18 }
0x13b2   :  { %2805 = vrot.lane.b32.xlu0 %v7515_v14, %s6902_s28 }
0x13b3   :  { %v7520_v19 = vpop.f32.mrf.mxu0 }
0x13b4   :  { %2803 = vrot.lane.b32.xlu1 %v7520_v19, %s6902_s28  ;;  %6489 = vmatprep.mubr.msk.f32.mxu0 %vm332_vm2, %v7520_v19 }
0x1424   :  { %v2806_v20 = vpop.permute.xlu0 %2805 }
0x1425   :  { %6485 = vmatprep.subr.msk.mxu0 %vm332_vm2, %v2806_v20 }
0x1426   :  { %v2804_v23 = vpop.permute.xlu1 %2803  ;;  %6486 = vmatpush3.xpose.msk.msra.mxu0 %vm332_vm2, %v2806_v20 }
0x1427   :  { %6487 = vmatprep.subr.msk.mxu0 %vm332_vm2, %v2804_v23 }
0x142a   :  { %6488 = vmatpush3.xpose.msk.msra.mxu0 %vm332_vm2, %v2804_v23 }
0x142d   :  { %6490 = vmatmul.mubr.msk.f32.vlgmr.msra.gmra.mxu0 %vm332_vm2, %v7515_v14 }
0x1471   :  { %v7532_v24 = vpop.f32.mrf.mxu0 }
0x1473   :  { %v7534_v29 = vpop.f32.mrf.mxu0 }
0x14ed   :  { %v6491_v30 = vpop.f32.mrf.mxu0 }
0x14ee   :  { %v2893_v31 = vsel %vm416_vm3, %v6491_v30, -inf }
0x14ef   :  { %2894 = vmax.xlane.f32.xlu0 %v2893_v31  ;;  %v2881_v33 = vpop.f32.mrf.mxu0 }
0x14f0   :  { %v2890_v35 = vsel %vm416_vm3, %v2881_v33, -inf }
0x14f1   :  { %2891 = vmax.xlane.f32.xlu1 %v2890_v35 }
0x1502   :  { %2912 = vrot.lane.b32.xlu1 %v7520_v19, %s6903_s29 }
0x1505   :  { %2914 = vrot.lane.b32.xlu0 %v7515_v14, %s6903_s29 }
0x1506   :  { %3003 = vrot.lane.b32.xlu1 %v7532_v24, %s6902_s28 }
0x150a   :  { %3203 = vrot.lane.b32.xlu1 %v7515_v14, %s6904_s30 }
0x1578   :  { %v2895_v37 = vpop.xlane.xlu0 %2894 }
0x1579   :  { %v2897_v26 = vsub.f32 %v6491_v30, %v2895_v37 }
0x157a   :  { %v2892_v40 = vpop.xlane.xlu1 %2891 }
0x157b   :  { %v2900_v41 = vmul.f32 1.442695, %v2897_v26  ;;  %v2896_v42 = vsub.f32 %v2881_v33, %v2892_v40 }
0x157c   :  { %v2915_v36 = vpop.permute.xlu0 %2914 }
0x157d   :  { %6797 = vpow2.f32 %v2900_v41  ;;  %v2898_v22 = vmul.f32 1.442695, %v2896_v42  ;;  %6492 = vmatprep.subr.mxu0 %v2915_v36 }
0x157e   :  { %6493 = vmatpush3.msra.mxu0 %v2915_v36  ;;  %v2913_v43 = vpop.permute.xlu1 %2912 }
0x157f   :  { %6799 = vpow2.f32 %v2898_v22  ;;  %6494 = vmatprep.subr.mxu0 %v2913_v43 }
0x1580   :  { %6495 = vmatpush3.msra.mxu0 %v2913_v43 }
0x1582   :  { %v3004_v44 = vpop.permute.xlu1 %3003 }
0x1583   :  { %6499 = vmatprep.subr.msk.mxu0 %vm332_vm2, %v3004_v44 }
0x1586   :  { %v3204_v49 = vpop.permute.xlu1 %3203 }
0x1587   :  { %6513 = vmatprep.subr.msk.mxu1 %vm332_vm2, %v3204_v49 }
0x1588   :  { %6514 = vmatpush3.xpose.msk.msra.mxu1 %vm332_vm2, %v3204_v49 }
0x158a   :  { %v6798_v28 = vpop.eup %6797 }
0x158b   :  { %v2905_v45 = vsel %vm416_vm3, %v6798_v28, 0.0 }
0x158c   :  { %v6800_v52 = vpop.eup %6799  ;;  %2906 = vadd.xlane.f32.xlu1 %v2905_v45 }
0x158d   :  { %v2902_v47 = vsel %vm416_vm3, %v6800_v52, 0.0 }
0x158e   :  { %2903 = vadd.xlane.f32.xlu0 %v2902_v47 }
0x159d   :  { %3201 = vrot.lane.b32.xlu1 %v7520_v19, %s6904_s30 }
0x15a1   :  { %3403 = vrot.lane.b32.xlu1 %v7532_v24, %s6904_s30 }
0x15a4   :  { %3001 = vrot.lane.b32.xlu0 %v7534_v29, %s6902_s28 }
0x15a5   :  { %3401 = vrot.lane.b32.xlu1 %v7534_v29, %s6904_s30 }
0x15a8   :  { %3197 = vrot.lane.b32.xlu0 %v7520_v19, %s6905_s11 }
0x15a9   :  { %3399 = vrot.lane.b32.xlu1 %v7532_v24, %s6905_s11 }
0x15ac   :  { %3199 = vrot.lane.b32.xlu0 %v7515_v14, %s6905_s11 }
0x15b0   :  { %3397 = vrot.lane.b32.xlu0 %v7534_v29, %s6905_s11 }
0x1615   :  { %v2907_v48 = vpop.xlane.xlu1 %2906 }
0x1616   :  { %6801 = vrcp.f32 %v2907_v48 }
0x1617   :  { %v2904_v50 = vpop.xlane.xlu0 %2903 }
0x1618   :  { %6803 = vrcp.f32 %v2904_v50 }
0x1619   :  { %v3202_v53 = vpop.permute.xlu1 %3201 }
0x161a   :  { %6515 = vmatprep.subr.msk.mxu1 %vm332_vm2, %v3202_v53 }
0x161b   :  { %v3002_v54 = vpop.permute.xlu0 %3001  ;;  %6516 = vmatpush3.xpose.msk.msra.mxu1 %vm332_vm2, %v3202_v53 }
0x161d   :  { %v3404_v55 = vpop.permute.xlu1 %3403 }
0x161e   :  { %6527 = vmatprep.subr.msk.mxu1 %vm332_vm2, %v3404_v55 }
0x161f   :  { %v3198_v4 = vpop.permute.xlu0 %3197 }
0x1620   :  { %6517 = vmatprep.mubr.msk.f32.mxu1 %vm332_vm2, %v3198_v4 }
0x1621   :  { %v3402_v61 = vpop.permute.xlu1 %3401 }
0x1623   :  { %v3200_v56 = vpop.permute.xlu0 %3199  ;;  %v6802_v27 = vpop.eup %6801 }
0x1624   :  { %6518 = vmatmul.mubr.msk.f32.vlgmr.msra.gmra.mxu1 %vm332_vm2, %v3200_v56  ;;  %v2911_v3 = vmul.f32 %v6802_v27, %v6798_v28 }
0x1625   :  { %v6804_v60 = vpop.eup %6803  ;;  %6528 = vmatpush3.xpose.msk.msra.mxu1 %vm332_vm2, %v3404_v55  ;;  %v3400_v5 = vpop.permute.xlu1 %3399 }
0x1626   :  { %6529 = vmatprep.subr.msk.mxu1 %vm332_vm2, %v3402_v61  ;;  %v2910_v63 = vmul.f32 %v6804_v60, %v6800_v52 }
0x1627   :  { %v3398_v59 = vpop.permute.xlu0 %3397 }
0x1628   :  { %6496 = vmatprep.mubr.msk.f32.mxu0 %vm416_vm3, %v2910_v63  ;;  %6531 = vmatprep.mubr.msk.f32.mxu1 %vm332_vm2, %v3398_v59 }
0x1629   :  { %6530 = vmatpush3.xpose.msk.msra.mxu1 %vm332_vm2, %v3402_v61  ;;  %6497 = vmatmul.mubr.msk.f32.vlgmr.msra.gmra.mxu0 %vm416_vm3, %v2911_v3 }
0x162a   :  { %6500 = vmatpush3.xpose.msk.msra.mxu0 %vm332_vm2, %v3004_v44  ;;  %6503 = vmatprep.mubr.msk.f32.mxu0 %vm332_vm2, %v7534_v29 }
0x162b   :  { %6501 = vmatprep.subr.msk.mxu0 %vm332_vm2, %v3002_v54  ;;  %6549 = vmatprep.subr.mxu1 %v5805_v6 }
0x162c   :  { %6532 = vmatmul.mubr.msk.f32.vlgmr.msra.gmra.mxu1 %vm332_vm2, %v3400_v5 }
0x162d   :  { %6550 = vmatpush3.msra.mxu1 %v5805_v6 }
0x162e   :  { %6502 = vmatpush3.xpose.msk.msra.mxu0 %vm332_vm2, %v3002_v54 }
0x1631   :  { %6504 = vmatmul.mubr.msk.f32.vlgmr.msra.gmra.mxu0 %vm332_vm2, %v7532_v24 }
0x16e4   :  { %v6519_v46 = vpop.f32.mrf.mxu1 }
0x16e5   :  { %v3291_v18 = vsel %vm416_vm3, %v6519_v46, -inf }
0x16e6   :  { %v3279_v25 = vpop.f32.mrf.mxu1 }
0x16e7   :  { %v3288_v10 = vsel %vm416_vm3, %v3279_v25, -inf }
0x16e8   :  { %3289 = vmax.xlane.f32.xlu0 %v3288_v10 }
0x16e9   :  { %v6498_v11 = vpop.f32.mrf.mxu0 }
0x16eb   :  { %v2990_v12 = vpop.f32.mrf.mxu0 }
0x16ec   :  { %6551 = vmatprep.mubr.msk.f32.mxu1 %vm332_vm2, %v2990_v12  ;;  %v6533_v17 = vpop.f32.mrf.mxu1 }
0x16ed   :  { %6552 = vmatmul.mubr.msk.f32.vlgmr.msra.gmra.mxu1 %vm332_vm2, %v6498_v11  ;;  %v3491_v9 = vsel %vm416_vm3, %v6533_v17, -inf }
0x16ee   :  { %v3479_v20 = vpop.f32.mrf.mxu1 }
0x16ef   :  { %v3488_v23 = vsel %vm416_vm3, %v3479_v20, -inf }
0x16f1   :  { %v6505_v13 = vpop.f32.mrf.mxu0 }
0x16f2   :  { %v3091_v1 = vsel %vm416_vm3, %v6505_v13, -inf }
0x16f3   :  { %3092 = vmax.xlane.f32.xlu1 %v3091_v1  ;;  %v3079_v15 = vpop.f32.mrf.mxu0 }
0x16f4   :  { %v3088_v16 = vsel %vm416_vm3, %v3079_v15, -inf }
0x16f5   :  { %3089 = vmax.xlane.f32.xlu0 %v3088_v16 }
0x16f7   :  { %3492 = vmax.xlane.f32.xlu1 %v3491_v9 }
0x16f9   :  { %3292 = vmax.xlane.f32.xlu0 %v3291_v18 }
0x16fd   :  { %3489 = vmax.xlane.f32.xlu0 %v3488_v23 }
0x1771   :  { %v3290_v30 = vpop.xlane.xlu0 %3289 }
0x1772   :  { %v3294_v31 = vsub.f32 %v3279_v25, %v3290_v30 }
0x1774   :  { %v3296_v33 = vmul.f32 1.442695, %v3294_v31 }
0x1776   :  { %6805 = vpow2.f32 %v3296_v33 }
0x177c   :  { %v3093_v35 = vpop.xlane.xlu1 %3092 }
0x177d   :  { %v3095_v22 = vsub.f32 %v6505_v13, %v3093_v35 }
0x177e   :  { %v3090_v37 = vpop.xlane.xlu0 %3089 }
0x177f   :  { %v3094_v44 = vsub.f32 %v3079_v15, %v3090_v37  ;;  %v3098_v47 = vmul.f32 1.442695, %v3095_v22 }
0x1780   :  { %v3493_v26 = vpop.xlane.xlu1 %3492 }
0x1781   :  { %v3495_v40 = vsub.f32 %v6533_v17, %v3493_v26  ;;  %v3096_v48 = vmul.f32 1.442695, %v3094_v44 }
0x1782   :  { %v3293_v41 = vpop.xlane.xlu0 %3292 }
0x1783   :  { %v7597_v42 = vpop.eup %6805  ;;  %v3295_v36 = vsub.f32 %v6519_v46, %v3293_v41  ;;  %v3498_v49 = vmul.f32 1.442695, %v3495_v40  ;;  %v5806_v40 = vld [vmem:[%s8225_s4 + $0x28] sm:$0xff] }
0x1784   :  { %v3300_v43 = vsel %vm416_vm3, %v7597_v42, 0.0 }
0x1785   :  { %v3298_v28 = vmul.f32 1.442695, %v3295_v36  ;;  %3301 = vadd.xlane.f32.xlu0 %v3300_v43 }
0x1786   :  { %v3490_v45 = vpop.xlane.xlu0 %3489 }
0x1787   :  { %6807 = vpow2.f32 %v3298_v28  ;;  %v3494_v52 = vsub.f32 %v3479_v20, %v3490_v45 }
0x1788   :  { %6809 = vpow2.f32 %v3498_v49 }
0x1789   :  { %v3496_v50 = vmul.f32 1.442695, %v3494_v52 }
0x178b   :  { %6811 = vpow2.f32 %v3496_v50 }
0x178c   :  { %6813 = vpow2.f32 %v3098_v47 }
0x178d   :  { %6815 = vpow2.f32 %v3096_v48 }
0x1794   :  { %v7601_v53 = vpop.eup %6807 }
0x1795   :  { %v3303_v54 = vsel %vm416_vm3, %v7601_v53, 0.0  ;;  %v7605_v55 = vpop.eup %6809 }
0x1796   :  { %3304 = vadd.xlane.f32.xlu1 %v3303_v54  ;;  %v3503_v60 = vsel %vm416_vm3, %v7605_v55, 0.0 }
0x1798   :  { %v7607_v4 = vpop.eup %6811 }
0x1799   :  { %v6814_v56 = vpop.eup %6813  ;;  %v3500_v27 = vsel %vm416_vm3, %v7607_v4, 0.0 }
0x179a   :  { %v6816_v61 = vpop.eup %6815  ;;  %3501 = vadd.xlane.f32.xlu0 %v3500_v27  ;;  %3504 = vadd.xlane.f32.xlu1 %v3503_v60  ;;  %v3103_v59 = vsel %vm416_vm3, %v6814_v56, 0.0 }
0x179b   :  { %v3100_v63 = vsel %vm416_vm3, %v6816_v61, 0.0 }
0x179e   :  { %3101 = vadd.xlane.f32.xlu0 %v3100_v63  ;;  %3104 = vadd.xlane.f32.xlu1 %v3103_v59 }
0x17af   :  { %3110 = vrot.lane.b32.xlu1 %v7534_v29, %s6903_s29 }
0x17b3   :  { %3312 = vrot.lane.b32.xlu1 %v7515_v14, %s6906_s12 }
0x17b4   :  { %3112 = vrot.lane.b32.xlu0 %v7532_v24, %s6903_s29 }
0x17b7   :  { %3310 = vrot.lane.b32.xlu1 %v7520_v19, %s6906_s12 }
0x17b8   :  { %3512 = vrot.lane.b32.xlu0 %v7532_v24, %s6906_s12 }
0x17bb   :  { %3510 = vrot.lane.b32.xlu1 %v7534_v29, %s6906_s12  ;;  %s6914_s12 = smov 32  }
0x17bc   :  { %3797 = vrot.lane.b32.xlu0 %v7515_v14, %s6907_s14 }
0x17bf   :  { %3795 = vrot.lane.b32.xlu1 %v7520_v19, %s6907_s14 }
0x17c0   :  { %3791 = vrot.lane.b32.xlu0 %v7520_v19, %s6908_s15 }
0x17c3   :  { %3997 = vrot.lane.b32.xlu1 %v7532_v24, %s6907_s14 }
0x17c4   :  { %3793 = vrot.lane.b32.xlu0 %v7515_v14, %s6908_s15 }
0x17c7   :  { %3995 = vrot.lane.b32.xlu1 %v7534_v29, %s6907_s14 }
0x17c8   :  { %3991 = vrot.lane.b32.xlu0 %v7534_v29, %s6908_s15 }
0x17cb   :  { %3993 = vrot.lane.b32.xlu1 %v7532_v24, %s6908_s15 }
0x17cc   :  { %4298 = vrot.lane.b32.xlu0 %v7515_v14, %s6909_s16 }
0x17cf   :  { %4296 = vrot.lane.b32.xlu1 %v7520_v19, %s6909_s16 }
0x17d0   :  { %4292 = vrot.lane.b32.xlu0 %v7520_v19, %s6910_s17 }
0x17d3   :  { %4498 = vrot.lane.b32.xlu1 %v7532_v24, %s6909_s16 }
0x17d4   :  { %4294 = vrot.lane.b32.xlu0 %v7515_v14, %s6910_s17 }
0x17d7   :  { %4496 = vrot.lane.b32.xlu1 %v7534_v29, %s6909_s16 }
0x17d8   :  { %4492 = vrot.lane.b32.xlu0 %v7534_v29, %s6910_s17 }
0x17db   :  { %4494 = vrot.lane.b32.xlu1 %v7532_v24, %s6910_s17 }
0x180e   :  { %v3302_v3 = vpop.xlane.xlu0 %3301 }
0x180f   :  { %6817 = vrcp.f32 %v3302_v3  ;;  %v7702_v3 = vpop.f32.mrf.mxu1 }
0x181c   :  { %v6818_v1 = vpop.eup %6817 }
0x181d   :  { %v3308_v23 = vmul.f32 %v6818_v1, %v7597_v42 }
0x181f   :  { %v3305_v5 = vpop.xlane.xlu1 %3304 }
0x1823   :  { %v3502_v6 = vpop.xlane.xlu0 %3501  ;;  %v3505_v46 = vpop.xlane.xlu1 %3504 }
0x1827   :  { %v3102_v25 = vpop.xlane.xlu0 %3101  ;;  %v3105_v10 = vpop.xlane.xlu1 %3104 }
0x1828   :  { %6819 = vrcp.f32 %v3102_v25 }
0x1829   :  { %6821 = vrcp.f32 %v3105_v10 }
0x182a   :  { %6823 = vrcp.f32 %v3305_v5 }
0x182b   :  { %v3113_v11 = vpop.permute.xlu0 %3112  ;;  %v3111_v12 = vpop.permute.xlu1 %3110  ;;  %6825 = vrcp.f32 %v3502_v6 }
0x182c   :  { %6506 = vmatprep.subr.mxu0 %v3113_v11  ;;  %6827 = vrcp.f32 %v3505_v46  ;;  %v3772_v6 = vpop.f32.mrf.mxu1 }
0x182d   :  { %6507 = vmatpush3.msra.mxu0 %v3113_v11 }
0x182e   :  { %6508 = vmatprep.subr.mxu0 %v3111_v12 }
0x182f   :  { %6509 = vmatpush3.msra.mxu0 %v3111_v12  ;;  %v3313_v13 = vpop.permute.xlu1 %3312  ;;  %v3513_v35 = vpop.permute.xlu0 %3512 }
0x1830   :  { %6520 = vmatprep.subr.mxu0 %v3313_v13 }
0x1833   :  { %v3311_v20 = vpop.permute.xlu1 %3310  ;;  %v3798_v42 = vpop.permute.xlu0 %3797 }
0x1835   :  { %v6820_v17 = vpop.eup %6819 }
0x1836   :  { %v6822_v15 = vpop.eup %6821  ;;  %v3108_v16 = vmul.f32 %v6820_v17, %v6816_v61 }
0x1837   :  { %v3109_v9 = vmul.f32 %v6822_v15, %v6814_v56  ;;  %v6824_v18 = vpop.eup %6823  ;;  %v3511_v26 = vpop.permute.xlu1 %3510 }
0x1838   :  { %6510 = vmatprep.mubr.msk.f32.mxu0 %vm416_vm3, %v3108_v16  ;;  %v6826_v30 = vpop.eup %6825  ;;  %v3309_v31 = vmul.f32 %v6824_v18, %v7601_v53  ;;  %v3792_v36 = vpop.permute.xlu0 %3791 }
0x1839   :  { %6511 = vmatmul.mubr.msk.f32.vlgmr.msra.gmra.mxu0 %vm416_vm3, %v3109_v9  ;;  %v6828_v33 = vpop.eup %6827  ;;  %v3508_v37 = vmul.f32 %v6826_v30, %v7607_v4 }
0x183a   :  { %6521 = vmatpush3.msra.mxu0 %v3313_v13  ;;  %6524 = vmatprep.mubr.msk.f32.mxu0 %vm416_vm3, %v3308_v23  ;;  %v3509_v41 = vmul.f32 %v6828_v33, %v7605_v55 }
0x183b   :  { %6522 = vmatprep.subr.mxu0 %v3311_v20  ;;  %v3796_v22 = vpop.permute.xlu1 %3795 }
0x183c   :  { %6523 = vmatpush3.msra.mxu0 %v3311_v20  ;;  %v3794_v44 = vpop.permute.xlu0 %3793 }
0x183d   :  { %6534 = vmatprep.subr.mxu0 %v3513_v35  ;;  %6525 = vmatmul.mubr.msk.f32.vlgmr.msra.gmra.mxu0 %vm416_vm3, %v3309_v31 }
0x183e   :  { %6535 = vmatpush3.msra.mxu0 %v3513_v35  ;;  %6538 = vmatprep.mubr.msk.f32.mxu0 %vm416_vm3, %v3508_v37 }
0x183f   :  { %6536 = vmatprep.subr.mxu0 %v3511_v26  ;;  %v3998_v28 = vpop.permute.xlu1 %3997 }
0x1840   :  { %6537 = vmatpush3.msra.mxu0 %v3511_v26  ;;  %v3992_v47 = vpop.permute.xlu0 %3991 }
0x1841   :  { %6541 = vmatprep.subr.mxu0 %v5806_v40  ;;  %6539 = vmatmul.mubr.msk.f32.vlgmr.msra.gmra.mxu0 %vm416_vm3, %v3509_v41 }
0x1842   :  { %6542 = vmatpush3.msra.mxu0 %v5806_v40 }
0x1843   :  { %6557 = vmatprep.subr.msk.mxu0 %vm332_vm2, %v3798_v42  ;;  %v3996_v50 = vpop.permute.xlu1 %3995 }
0x1844   :  { %v4299_v54 = vpop.permute.xlu0 %4298 }
0x1847   :  { %v3994_v55 = vpop.permute.xlu1 %3993 }
0x1848   :  { %v4293_v4 = vpop.permute.xlu0 %4292 }
0x184b   :  { %v4297_v56 = vpop.permute.xlu1 %4296 }
0x184c   :  { %v4295_v27 = vpop.permute.xlu0 %4294 }
0x184f   :  { %v4499_v60 = vpop.permute.xlu1 %4498 }
0x1850   :  { %v4493_v61 = vpop.permute.xlu0 %4492 }
0x1853   :  { %v4497_v63 = vpop.permute.xlu1 %4496 }
0x1857   :  { %v4495_v59 = vpop.permute.xlu1 %4494 }
0x18f9   :  { %v6512_v43 = vpop.f32.mrf.mxu0 }
0x18fb   :  { %v3188_v49 = vpop.f32.mrf.mxu0 }
0x18fc   :  { %6554 = vmatprep.mubr.msk.f32.mxu1 %vm332_vm2, %v3188_v49 }
0x18fd   :  { %v6526_v45 = vpop.f32.mrf.mxu0  ;;  %6555 = vmatmul.mubr.msk.f32.gmra.mxu1 %vm332_vm2, %v6512_v43 }
0x18ff   :  { %v3388_v52 = vpop.f32.mrf.mxu0 }
0x1900   :  { %6543 = vmatprep.mubr.msk.f32.mxu0 %vm332_vm2, %v3388_v52 }
0x1901   :  { %v6540_v48 = vpop.f32.mrf.mxu0  ;;  %6544 = vmatmul.mubr.msk.f32.vlgmr.msra.gmra.mxu0 %vm332_vm2, %v6526_v45 }
0x1902   :  { %6558 = vmatpush3.xpose.msk.msra.mxu0 %vm332_vm2, %v3798_v42 }
0x1903   :  { %6559 = vmatprep.subr.msk.mxu0 %vm332_vm2, %v3796_v22  ;;  %v3588_v53 = vpop.f32.mrf.mxu0 }
0x1904   :  { %6546 = vmatprep.mubr.msk.f32.mxu0 %vm332_vm2, %v3588_v53 }
0x1905   :  { %6547 = vmatmul.mubr.msk.f32.gmra.mxu0 %vm332_vm2, %v6540_v48 }
0x1906   :  { %6560 = vmatpush3.xpose.msk.msra.mxu0 %vm332_vm2, %v3796_v22  ;;  %6561 = vmatprep.mubr.msk.f32.mxu0 %vm332_vm2, %v3792_v36 }
0x1907   :  { %6571 = vmatprep.subr.msk.mxu0 %vm332_vm2, %v3998_v28 }
0x1909   :  { %6562 = vmatmul.mubr.msk.f32.vlgmr.msra.gmra.mxu0 %vm332_vm2, %v3794_v44 }
0x190a   :  { %6572 = vmatpush3.xpose.msk.msra.mxu0 %vm332_vm2, %v3998_v28  ;;  %6575 = vmatprep.mubr.msk.f32.mxu0 %vm332_vm2, %v3992_v47 }
0x190b   :  { %6573 = vmatprep.subr.msk.mxu0 %vm332_vm2, %v3996_v50 }
0x190e   :  { %6574 = vmatpush3.xpose.msk.msra.mxu0 %vm332_vm2, %v3996_v50 }
0x190f   :  { %6593 = vmatprep.subr.msk.mxu0 %vm332_vm2, %v4299_v54 }
0x1911   :  { %6576 = vmatmul.mubr.msk.f32.vlgmr.msra.gmra.mxu0 %vm332_vm2, %v3994_v55 }
0x1912   :  { %6594 = vmatpush3.xpose.msk.msra.mxu0 %vm332_vm2, %v4299_v54  ;;  %6597 = vmatprep.mubr.msk.f32.mxu0 %vm332_vm2, %v4293_v4 }
0x1913   :  { %6595 = vmatprep.subr.msk.mxu0 %vm332_vm2, %v4297_v56 }
0x1916   :  { %6596 = vmatpush3.xpose.msk.msra.mxu0 %vm332_vm2, %v4297_v56 }
0x1917   :  { %6607 = vmatprep.subr.msk.mxu0 %vm332_vm2, %v4499_v60 }
0x1919   :  { %6598 = vmatmul.mubr.msk.f32.vlgmr.msra.gmra.mxu0 %vm332_vm2, %v4295_v27 }
0x191a   :  { %6608 = vmatpush3.xpose.msk.msra.mxu0 %vm332_vm2, %v4499_v60  ;;  %6611 = vmatprep.mubr.msk.f32.mxu0 %vm332_vm2, %v4493_v61 }
0x191b   :  { %6609 = vmatprep.subr.msk.mxu0 %vm332_vm2, %v4497_v63 }
0x191e   :  { %6610 = vmatpush3.xpose.msk.msra.mxu0 %vm332_vm2, %v4497_v63 }
0x1921   :  { %6612 = vmatmul.mubr.msk.f32.vlgmr.msra.gmra.mxu0 %vm332_vm2, %v4495_v59 }
0x19bd   :  { %v6556_v10 = vpop.f32.mrf.mxu1 }
0x19c1   :  { %v7704_v5 = vpop.f32.mrf.mxu0 }
0x19c3   :  { %v3675_v46 = vpop.f32.mrf.mxu0 }
0x19c4   :  { %v7706_v25 = vadd.f32 %v3772_v6, %v3675_v46 }
0x19c5   :  { %v6548_v11 = vpop.f32.mrf.mxu0 }
0x19c6   :  { %v7708_v12 = vadd.f32 %v6556_v10, %v6548_v11 }
0x19c7   :  { %v7710_v13 = vpop.f32.mrf.mxu0 }
0x19c9   :  { %v6563_v1 = vpop.f32.mrf.mxu0 }
0x19ca   :  { %v3885_v17 = vsel %vm416_vm3, %v6563_v1, -inf }
0x19cb   :  { %3886 = vmax.xlane.f32.xlu1 %v3885_v17  ;;  %v3873_v15 = vpop.f32.mrf.mxu0 }
0x19cc   :  { %v3882_v16 = vsel %vm416_vm3, %v3873_v15, -inf }
0x19cd   :  { %3883 = vmax.xlane.f32.xlu0 %v3882_v16 }
0x19d1   :  { %v6577_v9 = vpop.f32.mrf.mxu0 }
0x19d2   :  { %v4085_v23 = vsel %vm416_vm3, %v6577_v9, -inf }
0x19d3   :  { %v4073_v18 = vpop.f32.mrf.mxu0 }
0x19d4   :  { %v4082_v20 = vsel %vm416_vm3, %v4073_v18, -inf }
0x19d5   :  { %4083 = vmax.xlane.f32.xlu0 %v4082_v20 }
0x19d9   :  { %4086 = vmax.xlane.f32.xlu0 %v4085_v23  ;;  %v6599_v53 = vpop.f32.mrf.mxu0 }
0x19da   :  { %v4386_v61 = vsel %vm416_vm3, %v6599_v53, -inf }
0x19db   :  { %v4374_v54 = vpop.f32.mrf.mxu0 }
0x19dc   :  { %v4383_v4 = vsel %vm416_vm3, %v4374_v54, -inf }
0x19e1   :  { %v6613_v55 = vpop.f32.mrf.mxu0 }
0x19e2   :  { %v4586_v60 = vsel %vm416_vm3, %v6613_v55, -inf }
0x19e3   :  { %v4574_v56 = vpop.f32.mrf.mxu0 }
0x19e4   :  { %v4583_v27 = vsel %vm416_vm3, %v4574_v56, -inf }
0x1a54   :  { %v3887_v30 = vpop.xlane.xlu1 %3886 }
0x1a55   :  { %v3889_v31 = vsub.f32 %v6563_v1, %v3887_v30 }
0x1a56   :  { %v3884_v33 = vpop.xlane.xlu0 %3883 }
0x1a57   :  { %v3892_v35 = vmul.f32 1.442695, %v3889_v31  ;;  %v3888_v37 = vsub.f32 %v3873_v15, %v3884_v33 }
0x1a59   :  { %6829 = vpow2.f32 %v3892_v35  ;;  %v3890_v26 = vmul.f32 1.442695, %v3888_v37 }
0x1a5b   :  { %6831 = vpow2.f32 %v3890_v26 }
0x1a5e   :  { %v4084_v40 = vpop.xlane.xlu0 %4083 }
0x1a5f   :  { %v4088_v41 = vsub.f32 %v4073_v18, %v4084_v40 }
0x1a61   :  { %v4090_v42 = vmul.f32 1.442695, %v4088_v41 }
0x1a62   :  { %v4087_v36 = vpop.xlane.xlu0 %4086 }
0x1a63   :  { %6833 = vpow2.f32 %v4090_v42  ;;  %v4089_v22 = vsub.f32 %v6577_v9, %v4087_v36 }
0x1a65   :  { %v4092_v43 = vmul.f32 1.442695, %v4089_v22 }
0x1a66   :  { %v6830_v44 = vpop.eup %6829 }
0x1a67   :  { %6835 = vpow2.f32 %v4092_v43  ;;  %v3897_v49 = vsel %vm416_vm3, %v6830_v44, 0.0 }
0x1a68   :  { %v6832_v28 = vpop.eup %6831  ;;  %3898 = vadd.xlane.f32.xlu1 %v3897_v49 }
0x1a69   :  { %v3894_v45 = vsel %vm416_vm3, %v6832_v28, 0.0 }
0x1a6a   :  { %3895 = vadd.xlane.f32.xlu0 %v3894_v45 }
0x1a70   :  { %v6834_v52 = vpop.eup %6833 }
0x1a71   :  { %v4094_v47 = vsel %vm416_vm3, %v6834_v52, 0.0 }
0x1a72   :  { %4095 = vadd.xlane.f32.xlu0 %v4094_v47 }
0x1a74   :  { %v6836_v48 = vpop.eup %6835 }
0x1a75   :  { %v4097_v50 = vsel %vm416_vm3, %v6836_v48, 0.0 }
0x1a76   :  { %4098 = vadd.xlane.f32.xlu1 %v4097_v50 }
0x1a87   :  { %3904 = vrot.lane.b32.xlu1 %v7520_v19, %s6911_s1 }
0x1a88   :  { %3906 = vrot.lane.b32.xlu0 %v7515_v14, %s6911_s1 }
0x1a8b   :  { %4106 = vrot.lane.b32.xlu1 %v7532_v24, %s6911_s1 }
0x1a8f   :  { %4104 = vrot.lane.b32.xlu1 %v7534_v29, %s6911_s1 }
0x1aa7   :  { %4384 = vmax.xlane.f32.xlu0 %v4383_v4  ;;  %v3782_v4 = vpop.f32.mrf.mxu1 }
0x1aab   :  { %4584 = vmax.xlane.f32.xlu0 %v4583_v27 }
0x1aaf   :  { %4587 = vmax.xlane.f32.xlu0 %v4586_v60 }
0x1ab3   :  { %4387 = vmax.xlane.f32.xlu1 %v4386_v61 }
0x1af1   :  { %v3899_v63 = vpop.xlane.xlu1 %3898 }
0x1af2   :  { %6837 = vrcp.f32 %v3899_v63 }
0x1af3   :  { %v3896_v59 = vpop.xlane.xlu0 %3895 }
0x1af4   :  { %6839 = vrcp.f32 %v3896_v59 }
0x1afb   :  { %v4096_v6 = vpop.xlane.xlu0 %4095 }
0x1afc   :  { %6841 = vrcp.f32 %v4096_v6 }
0x1aff   :  { %v3907_v46 = vpop.permute.xlu0 %3906  ;;  %v4099_v10 = vpop.xlane.xlu1 %4098 }
0x1b00   :  { %v6838_v11 = vpop.eup %6837  ;;  %6843 = vrcp.f32 %v4099_v10  ;;  %6564 = vmatprep.subr.mxu1 %v3907_v46 }
0x1b01   :  { %v6840_v1 = vpop.eup %6839  ;;  %6565 = vmatpush3.msra.mxu1 %v3907_v46  ;;  %v3903_v16 = vmul.f32 %v6838_v11, %v6830_v44 }
0x1b02   :  { %v3902_v17 = vmul.f32 %v6840_v1, %v6832_v28 }
0x1b03   :  { %v3905_v15 = vpop.permute.xlu1 %3904 }
0x1b04   :  { %6566 = vmatprep.subr.mxu1 %v3905_v15  ;;  %6568 = vmatprep.mubr.msk.f32.mxu1 %vm416_vm3, %v3902_v17 }
0x1b05   :  { %6567 = vmatpush3.msra.mxu1 %v3905_v15 }
0x1b06   :  { %6569 = vmatmul.mubr.msk.f32.vlgmr.msra.gmra.mxu1 %vm416_vm3, %v3903_v16 }
0x1b07   :  { %v4107_v9 = vpop.permute.xlu1 %4106 }
0x1b08   :  { %6578 = vmatprep.subr.mxu1 %v4107_v9 }
0x1b09   :  { %v6842_v18 = vpop.eup %6841  ;;  %6579 = vmatpush3.msra.mxu1 %v4107_v9 }
0x1b0a   :  { %v4102_v20 = vmul.f32 %v6842_v18, %v6834_v52 }
0x1b0b   :  { %v4105_v23 = vpop.permute.xlu1 %4104 }
0x1b0c   :  { %6580 = vmatprep.subr.mxu1 %v4105_v23  ;;  %6582 = vmatprep.mubr.msk.f32.mxu1 %vm416_vm3, %v4102_v20  ;;  %v5808_v20 = vld [vmem:[%s8225_s4 + $0x38] sm:$0xff] }
0x1b0d   :  { %v6844_v30 = vpop.eup %6843  ;;  %6581 = vmatpush3.msra.mxu1 %v4105_v23  ;;  %v3778_v23 = vadd.f32 %v7702_v3, %v7704_v5 }
0x1b0e   :  { %v4103_v31 = vmul.f32 %v6844_v30, %v6836_v48  ;;  %v5807_v48 = vld [vmem:[%s8225_s4 + $0x30] sm:$0xff] }
0x1b0f   :  { %6585 = vmatprep.subr.mxu1 %v5807_v48 }
0x1b10   :  { %6583 = vmatmul.mubr.msk.f32.vlgmr.msra.gmra.mxu1 %vm416_vm3, %v4103_v31 }
0x1b11   :  { %6586 = vmatpush3.msra.mxu1 %v5807_v48 }
0x1b30   :  { %v4385_v33 = vpop.xlane.xlu0 %4384 }
0x1b31   :  { %v4389_v35 = vsub.f32 %v4374_v54, %v4385_v33 }
0x1b33   :  { %v4391_v37 = vmul.f32 1.442695, %v4389_v35 }
0x1b34   :  { %v4585_v26 = vpop.xlane.xlu0 %4584 }
0x1b35   :  { %6845 = vpow2.f32 %v4391_v37  ;;  %v4589_v40 = vsub.f32 %v4574_v56, %v4585_v26  ;;  %v3783_v26 = vadd.f32 %v3782_v4, %v7710_v13 }
0x1b37   :  { %v4591_v41 = vmul.f32 1.442695, %v4589_v40 }
0x1b38   :  { %v4588_v42 = vpop.xlane.xlu0 %4587 }
0x1b39   :  { %6847 = vpow2.f32 %v4591_v41  ;;  %v4590_v36 = vsub.f32 %v6613_v55, %v4588_v42 }
0x1b3b   :  { %v4593_v44 = vmul.f32 1.442695, %v4590_v36 }
0x1b3c   :  { %v4388_v22 = vpop.xlane.xlu1 %4387 }
0x1b3d   :  { %v4390_v43 = vsub.f32 %v6599_v53, %v4388_v22 }
0x1b3f   :  { %v4393_v49 = vmul.f32 1.442695, %v4390_v43 }
0x1b41   :  { %6849 = vpow2.f32 %v4393_v49 }
0x1b42   :  { %v6846_v28 = vpop.eup %6845  ;;  %6851 = vpow2.f32 %v4593_v44 }
0x1b43   :  { %v4395_v45 = vsel %vm416_vm3, %v6846_v28, 0.0 }
0x1b44   :  { %4396 = vadd.xlane.f32.xlu0 %v4395_v45 }
0x1b46   :  { %v6848_v52 = vpop.eup %6847 }
0x1b47   :  { %v4595_v47 = vsel %vm416_vm3, %v6848_v52, 0.0 }
0x1b48   :  { %4596 = vadd.xlane.f32.xlu0 %v4595_v47 }
0x1b4e   :  { %v6850_v50 = vpop.eup %6849 }
0x1b4f   :  { %v4398_v53 = vsel %vm416_vm3, %v6850_v50, 0.0  ;;  %v6852_v54 = vpop.eup %6851 }
0x1b50   :  { %4399 = vadd.xlane.f32.xlu1 %v4398_v53  ;;  %v4598_v55 = vsel %vm416_vm3, %v6852_v54, 0.0 }
0x1b54   :  { %4599 = vadd.xlane.f32.xlu1 %v4598_v55 }
0x1b5e   :  { %4407 = vrot.lane.b32.xlu0 %v7515_v14, %s6912_s19 }
0x1b65   :  { %4405 = vrot.lane.b32.xlu1 %v7520_v19, %s6912_s19 }
0x1b69   :  { %4607 = vrot.lane.b32.xlu1 %v7532_v24, %s6912_s19 }
0x1b6d   :  { %4605 = vrot.lane.b32.xlu1 %v7534_v29, %s6912_s19 }
0x1bc6   :  { %v6570_v56 = vpop.f32.mrf.mxu1 }
0x1bc8   :  { %v3982_v27 = vpop.f32.mrf.mxu1 }
0x1bc9   :  { %6587 = vmatprep.mubr.msk.f32.mxu1 %vm332_vm2, %v3982_v27 }
0x1bca   :  { %6588 = vmatmul.mubr.msk.f32.vlgmr.msra.gmra.mxu1 %vm332_vm2, %v6570_v56 }
0x1bcd   :  { %v4397_v60 = vpop.xlane.xlu0 %4396 }
0x1bce   :  { %6853 = vrcp.f32 %v4397_v60 }
0x1bd0   :  { %v6584_v61 = vpop.f32.mrf.mxu1 }
0x1bd1   :  { %v4597_v14 = vpop.xlane.xlu0 %4596 }
0x1bd2   :  { %v4182_v63 = vpop.f32.mrf.mxu1  ;;  %6855 = vrcp.f32 %v4597_v14 }
0x1bd3   :  { %6590 = vmatprep.mubr.msk.f32.mxu1 %vm332_vm2, %v4182_v63 }
0x1bd4   :  { %6591 = vmatmul.mubr.msk.f32.gmra.mxu1 %vm332_vm2, %v6584_v61 }
0x1bd5   :  { %v4408_v19 = vpop.permute.xlu0 %4407 }
0x1bd6   :  { %6600 = vmatprep.subr.mxu1 %v4408_v19 }
0x1bd7   :  { %6601 = vmatpush3.msra.mxu1 %v4408_v19 }
0x1bd9   :  { %v4400_v24 = vpop.xlane.xlu1 %4399 }
0x1bda   :  { %6857 = vrcp.f32 %v4400_v24 }
0x1bdb   :  { %v6854_v29 = vpop.eup %6853 }
0x1bdc   :  { %v4403_v59 = vmul.f32 %v6854_v29, %v6846_v28 }
0x1bdd   :  { %v4600_v6 = vpop.xlane.xlu1 %4599 }
0x1bde   :  { %6859 = vrcp.f32 %v4600_v6  ;;  %6604 = vmatprep.mubr.msk.f32.mxu1 %vm416_vm3, %v4403_v59 }
0x1bdf   :  { %v6856_v11 = vpop.eup %6855 }
0x1be0   :  { %v4603_v16 = vmul.f32 %v6856_v11, %v6848_v52 }
0x1be1   :  { %v4406_v46 = vpop.permute.xlu1 %4405 }
0x1be2   :  { %6602 = vmatprep.subr.mxu1 %v4406_v46 }
0x1be3   :  { %6603 = vmatpush3.msra.mxu1 %v4406_v46 }
0x1be5   :  { %v4608_v10 = vpop.permute.xlu1 %4607 }
0x1be6   :  { %6614 = vmatprep.subr.mxu1 %v4608_v10 }
0x1be7   :  { %v6858_v1 = vpop.eup %6857 }
0x1be8   :  { %v4404_v17 = vmul.f32 %v6858_v1, %v6850_v50 }
0x1be9   :  { %v4606_v15 = vpop.permute.xlu1 %4605 }
0x1bea   :  { %6605 = vmatmul.mubr.msk.f32.vlgmr.msra.gmra.mxu1 %vm416_vm3, %v4404_v17 }
0x1beb   :  { %v6860_v9 = vpop.eup %6859  ;;  %6615 = vmatpush3.msra.mxu1 %v4608_v10  ;;  %6618 = vmatprep.mubr.msk.f32.mxu1 %vm416_vm3, %v4603_v16 }
0x1bec   :  { %6616 = vmatprep.subr.mxu1 %v4606_v15  ;;  %v4604_v18 = vmul.f32 %v6860_v9, %v6852_v54 }
0x1bed   :  { %6617 = vmatpush3.msra.mxu1 %v4606_v15 }
0x1bee   :  { %6619 = vmatmul.mubr.msk.f32.vlgmr.msra.gmra.mxu1 %vm416_vm3, %v4604_v18  ;;  %6621 = vmatprep.subr.mxu1 %v5808_v20 }
0x1bef   :  { %6622 = vmatpush3.msra.mxu1 %v5808_v20 }
0x1c8a   :  { %v6589_v30 = vpop.f32.mrf.mxu1 }
0x1c8b   :  { %v4289_v31 = vadd.f32 %v6589_v30, %v3778_v23  ;;  %v5880_v30 = vld [vmem:[%s8226_s5 + $0x38] sm:$0xff] }
0x1c8c   :  { %v4269_v33 = vpop.f32.mrf.mxu1  ;;  %6629 = vmatprep.subr.mxu0 %v5880_v30 }
0x1c8d   :  { %v4288_v35 = vadd.f32 %v4269_v33, %v7706_v25  ;;  %6630 = vmatpush3.msra.mxu0 %v5880_v30  ;;  %v5878_v33 = vld [vmem:[%s8226_s5 + $0x28] sm:$0xff] }
0x1c94   :  { %v6592_v37 = vpop.f32.mrf.mxu1 }
0x1c95   :  { %v4291_v40 = vadd.f32 %v6592_v37, %v7708_v12  ;;  %v7774_v12 = vld [vmem:[%s8228_s7 + $0x8] sm:$0xff]  ;;  %v5900_v37 = vld [vmem:[%s8227_s6 + $0xf8] sm:$0xff] }
0x1c96   :  { %v4279_v41 = vpop.f32.mrf.mxu1  ;;  %v4800_v13 = vrot.slane %v7774_v12, %v7064_v2  ;;  %6643 = vmatprep.subr.mxu1 %v5900_v37 }
0x1c97   :  { %v4290_v42 = vadd.f32 %v4279_v41, %v3783_v26  ;;  %v5899_v26 = vld [vmem:[%s8227_s6 + $0xf0] sm:$0xff]  ;;  %v5897_v41 = vld [vmem:[%s8227_s6 + $0xe0] sm:$0xff] }
0x1caa   :  { %v6606_v36 = vpop.f32.mrf.mxu1 }
0x1cac   :  { %v4483_v22 = vpop.f32.mrf.mxu1 }
0x1cad   :  { %6623 = vmatprep.mubr.msk.f32.mxu1 %vm332_vm2, %v4483_v22  ;;  %v5894_v22 = vld [vmem:[%s8227_s6 + $0xc8] sm:$0xff] }
0x1cae   :  { %v6620_v43 = vpop.f32.mrf.mxu1  ;;  %6624 = vmatmul.mubr.msk.f32.vlgmr.msra.gmra.mxu1 %vm332_vm2, %v6606_v36  ;;  %v5895_v36 = vld [vmem:[%s8227_s6 + $0xd0] sm:$0xff] }
0x1caf   :  { %6644 = vmatpush3.msra.mxu1 %v5900_v37 }
0x1cb0   :  { %v4683_v3 = vpop.f32.mrf.mxu1  ;;  %6645 = vmatprep.subr.mxu1 %v5899_v26 }
0x1cb1   :  { %6626 = vmatprep.mubr.msk.f32.mxu1 %vm332_vm2, %v4683_v3  ;;  %6646 = vmatpush3.msra.mxu1 %v5899_v26  ;;  %v5892_v3 = vld [vmem:[%s8227_s6 + $0xb8] sm:$0xff] }
0x1cb2   :  { %6627 = vmatmul.mubr.msk.f32.gmra.mxu1 %vm332_vm2, %v6620_v43  ;;  %v5893_v43 = vld [vmem:[%s8227_s6 + $0xc0] sm:$0xff] }
0x1d6e   :  { %v6625_v5 = vpop.f32.mrf.mxu1 }
0x1d6f   :  { %v4790_v25 = vadd.f32 %v6625_v5, %v4289_v31  ;;  %v5879_v31 = vld [vmem:[%s8226_s5 + $0x30] sm:$0xff] }
0x1d70   :  { %v4770_v44 = vpop.f32.mrf.mxu1  ;;  %6631 = vmatprep.subr.mxu0 %v5879_v31  ;;  %v5891_v5 = vld [vmem:[%s8227_s6 + $0xb0] sm:$0xff] }
0x1d71   :  { %v4794_v49 = vadd.f32 %v4790_v25, %v7466_v7  ;;  %v4789_v28 = vadd.f32 %v4770_v44, %v4288_v35  ;;  %6632 = vmatpush3.msra.mxu0 %v5879_v31  ;;  %v5877_v35 = vld [vmem:[%s8226_s5 + $0x20] sm:$0xff]  ;;  %v5890_v25 = vld [vmem:[%s8227_s6 + $0xa8] sm:$0xff] }
0x1d72   :  { %v6628_v45 = vpop.f32.mrf.mxu1  ;;  %6633 = vmatprep.subr.mxu0 %v5878_v33 }
0x1d73   :  { %v7779_v52 = vadd.f32 %v4800_v13, %v4794_v49  ;;  %v4793_v47 = vadd.f32 %v4789_v28, %v7469_v8  ;;  %v4792_v48 = vadd.f32 %v6628_v45, %v4291_v40  ;;  %6634 = vmatpush3.msra.mxu0 %v5878_v33  ;;  %v5898_v40 = vld [vmem:[%s8227_s6 + $0xe8] sm:$0xff] }
0x1d74   :  { %v4780_v50 = vpop.f32.mrf.mxu1  ;;  %6635 = vmatprep.subr.mxu0 %v5877_v35  ;;  %6647 = vmatprep.subr.mxu1 %v5898_v40 }
0x1d75   :  { %v7782_v53 = vadd.f32 %v4800_v13, %v4793_v47  ;;  %v4791_v54 = vadd.f32 %v4780_v50, %v4290_v42  ;;  %v4808_v55 = vsel %vm159_vm1, %v7779_v52, 0.0  ;;  %v4796_v4 = vadd.f32 %v4792_v48, %v7492_v32  ;;  %6636 = vmatpush3.msra.mxu0 %v5877_v35  ;;  %6648 = vmatpush3.msra.mxu1 %v5898_v40  ;;  %v5896_v42 = vld [vmem:[%s8227_s6 + $0xd8] sm:$0xff] }
0x1d76   :  { %4809 = vadd.xlane.f32.xlu1 %v4808_v55  ;;  %6649 = vmatprep.subr.mxu1 %v5897_v41 }
0x1d77   :  { %v4795_v56 = vadd.f32 %v4791_v54, %v7495_v34  ;;  %v4805_v7 = vsel %vm159_vm1, %v7782_v53, 0.0  ;;  %v7792_v8 = vadd.f32 %v4800_v13, %v4796_v4  ;;  %6650 = vmatpush3.msra.mxu1 %v5897_v41 }
0x1d78   :  { %4806 = vadd.xlane.f32.xlu0 %v4805_v7  ;;  %6651 = vmatprep.subr.mxu1 %v5896_v42 }
0x1d79   :  { %v7790_v27 = vadd.f32 %v4800_v13, %v4795_v56  ;;  %v4814_v61 = vsel %vm159_vm1, %v7792_v8, 0.0  ;;  %6652 = vmatpush3.msra.mxu1 %v5896_v42 }
0x1d7a   :  { %6653 = vmatprep.subr.mxu1 %v5895_v36 }
0x1d7b   :  { %v4811_v60 = vsel %vm159_vm1, %v7790_v27, 0.0  ;;  %6654 = vmatpush3.msra.mxu1 %v5895_v36 }
0x1d7c   :  { %4812 = vadd.xlane.f32.xlu0 %v4811_v60  ;;  %6655 = vmatprep.subr.mxu1 %v5894_v22  ;;  %v4860_v60 = vrot.slane %v7774_v12, %v2326_v58 }
0x1d7d   :  { %6656 = vmatpush3.msra.mxu1 %v5894_v22 }
0x1d7e   :  { %6657 = vmatprep.subr.mxu1 %v5893_v43 }
0x1d7f   :  { %6658 = vmatpush3.msra.mxu1 %v5893_v43 }
0x1d80   :  { %4815 = vadd.xlane.f32.xlu0 %v4814_v61  ;;  %6659 = vmatprep.subr.mxu1 %v5892_v3 }
0x1d81   :  { %6660 = vmatpush3.msra.mxu1 %v5892_v3 }
0x1d82   :  { %6661 = vmatprep.subr.mxu1 %v5891_v5 }
0x1d83   :  { %6662 = vmatpush3.msra.mxu1 %v5891_v5 }
0x1d84   :  { %6663 = vmatprep.subr.mxu1 %v5890_v25 }
0x1d85   :  { %6664 = vmatpush3.msra.mxu1 %v5890_v25 }
0x1dff   :  { %v4810_v14 = vpop.xlane.xlu1 %4809 }
0x1e00   :  { %v4818_v32 = vmul.f32 0.03125, %v4810_v14 }
0x1e01   :  { %v4807_v63 = vpop.xlane.xlu0 %4806 }
0x1e02   :  { %v7799_v34 = vsub.f32 %v7779_v52, %v4818_v32  ;;  %v4817_v19 = vmul.f32 0.03125, %v4807_v63  ;;  %v4868_v63 = vrot.slane %v7774_v12, %v2386_v21 }
0x1e04   :  { %v7802_v24 = vsub.f32 %v7782_v53, %v4817_v19  ;;  %v4826_v29 = vmul.f32 %v7799_v34, %v7799_v34 }
0x1e05   :  { %v4813_v59 = vpop.xlane.xlu0 %4812 }
0x1e06   :  { %v4819_v6 = vmul.f32 0.03125, %v4813_v59  ;;  %v4832_v46 = vsel %vm159_vm1, %v4826_v29, 0.0  ;;  %v4825_v10 = vmul.f32 %v7802_v24, %v7802_v24 }
0x1e07   :  { %4833 = vadd.xlane.f32.xlu1 %v4832_v46 }
0x1e08   :  { %v7810_v11 = vsub.f32 %v7790_v27, %v4819_v6  ;;  %v4829_v1 = vsel %vm159_vm1, %v4825_v10, 0.0 }
0x1e09   :  { %4830 = vadd.xlane.f32.xlu0 %v4829_v1  ;;  %v4816_v17 = vpop.xlane.xlu0 %4815 }
0x1e0a   :  { %v4820_v15 = vmul.f32 0.03125, %v4816_v17  ;;  %v4827_v16 = vmul.f32 %v7810_v11, %v7810_v11 }
0x1e0c   :  { %v7816_v9 = vsub.f32 %v7792_v8, %v4820_v15  ;;  %v4835_v18 = vsel %vm159_vm1, %v4827_v16, 0.0  ;;  %v5888_v15 = vld [vmem:[%s8227_s6 + $0x98] sm:$0xff]  ;;  %v5887_v16 = vld [vmem:[%s8227_s6 + $0x90] sm:$0xff] }
0x1e0d   :  { %4836 = vadd.xlane.f32.xlu0 %v4835_v18  ;;  %v5885_v18 = vld [vmem:[%s8227_s6 + $0x80] sm:$0xff] }
0x1e0e   :  { %v4828_v20 = vmul.f32 %v7816_v9, %v7816_v9 }
0x1e10   :  { %v4838_v23 = vsel %vm159_vm1, %v4828_v20, 0.0  ;;  %v4881_v20 = vrot.slane %v7774_v12, %v2394_v51  ;;  %v5096_v51 = vrot.slane %v7774_v12, %v2406_v39 }
0x1e11   :  { %4839 = vadd.xlane.f32.xlu1 %v4838_v23 }
0x1e90   :  { %v4834_v13 = vpop.xlane.xlu1 %4833 }
0x1e91   :  { %v4842_v44 = vmul.f32 0.03125, %v4834_v13 }
0x1e92   :  { %v4831_v49 = vpop.xlane.xlu0 %4830 }
0x1e93   :  { %v4846_v28 = vadd.f32 1e-05, %v4842_v44  ;;  %v4841_v45 = vmul.f32 0.03125, %v4831_v49 }
0x1e95   :  { %6861 = vrsqrt.f32 %v4846_v28  ;;  %v4845_v47 = vadd.f32 1e-05, %v4841_v45 }
0x1e96   :  { %v4837_v48 = vpop.xlane.xlu0 %4836 }
0x1e97   :  { %6863 = vrsqrt.f32 %v4845_v47  ;;  %v4843_v50 = vmul.f32 0.03125, %v4837_v48 }
0x1e99   :  { %v4847_v54 = vadd.f32 1e-05, %v4843_v50 }
0x1e9a   :  { %v4840_v55 = vpop.xlane.xlu1 %4839 }
0x1e9b   :  { %6865 = vrsqrt.f32 %v4847_v54  ;;  %v4844_v4 = vmul.f32 0.03125, %v4840_v55 }
0x1e9d   :  { %v4848_v56 = vadd.f32 1e-05, %v4844_v4 }
0x1e9f   :  { %6867 = vrsqrt.f32 %v4848_v56 }
0x1ea2   :  { %v6862_v7 = vpop.eup %6861 }
0x1ea3   :  { %v4854_v61 = vmul.f32 %v6862_v7, %v7799_v34 }
0x1ea4   :  { %v6864_v14 = vpop.eup %6863 }
0x1ea5   :  { %v4853_v32 = vmul.f32 %v6864_v14, %v7802_v24  ;;  %v4862_v19 = vmul.f32 %v4860_v60, %v4854_v61 }
0x1ea7   :  { %v4861_v29 = vmul.f32 %v4860_v60, %v4853_v32  ;;  %v4870_v10 = vadd.f32 %v4868_v63, %v4862_v19 }
0x1ea8   :  { %v6866_v59 = vpop.eup %6865 }
0x1ea9   :  { %v4869_v6 = vadd.f32 %v4868_v63, %v4861_v29  ;;  %v4855_v46 = vmul.f32 %v6866_v59, %v7810_v11  ;;  %v5889_v11 = vld [vmem:[%s8227_s6 + $0xa0] sm:$0xff] }
0x1eaa   :  { %6665 = vmatprep.subr.mxu1 %v5889_v11 }
0x1eab   :  { %6637 = vmatprep.mubr.msk.f32.mxu0 %vm159_vm1, %v4869_v6  ;;  %v4863_v1 = vmul.f32 %v4860_v60, %v4855_v46  ;;  %6666 = vmatpush3.msra.mxu1 %v5889_v11 }
0x1eac   :  { %v6868_v58 = vpop.eup %6867  ;;  %6638 = vmatmul.mubr.msk.f32.vlgmr.msra.gmra.mxu0 %vm159_vm1, %v4870_v10  ;;  %6667 = vmatprep.subr.mxu1 %v5888_v15 }
0x1ead   :  { %v4871_v34 = vadd.f32 %v4868_v63, %v4863_v1  ;;  %v4856_v24 = vmul.f32 %v6868_v58, %v7816_v9  ;;  %6668 = vmatpush3.msra.mxu1 %v5888_v15  ;;  %v5886_v9 = vld [vmem:[%s8227_s6 + $0x88] sm:$0xff] }
0x1eae   :  { %6669 = vmatprep.subr.mxu1 %v5887_v16 }
0x1eaf   :  { %6640 = vmatprep.mubr.msk.f32.mxu0 %vm159_vm1, %v4871_v34  ;;  %v4864_v17 = vmul.f32 %v4860_v60, %v4856_v24  ;;  %6670 = vmatpush3.msra.mxu1 %v5887_v16 }
0x1eb0   :  { %6671 = vmatprep.subr.mxu1 %v5886_v9 }
0x1eb1   :  { %v4872_v21 = vadd.f32 %v4868_v63, %v4864_v17  ;;  %6672 = vmatpush3.msra.mxu1 %v5886_v9 }
0x1eb2   :  { %6673 = vmatprep.subr.mxu1 %v5885_v18 }
0x1eb3   :  { %6641 = vmatmul.mubr.msk.f32.gmra.mxu0 %vm159_vm1, %v4872_v21  ;;  %6674 = vmatpush3.msra.mxu1 %v5885_v18 }
0x1f6c   :  { %v6639_v23 = vpop.f32.mrf.mxu0 }
0x1f6d   :  { %v4966_v30 = vadd.f32 %v6639_v23, %v4881_v20 }
0x1f6e   :  { %v4960_v31 = vpop.f32.mrf.mxu0 }
0x1f6f   :  { %v4961_v33 = vadd.f32 %v4960_v31, %v4881_v20  ;;  %v4980_v35 = vmax.f32 %v4966_v30, 0.0 }
0x1f71   :  { %v4979_v37 = vmax.f32 %v4961_v33, 0.0  ;;  %v4984_v41 = vmin.f32 %v4980_v35, 6.0 }
0x1f73   :  { %v4983_v26 = vmin.f32 %v4979_v37, 6.0  ;;  %v6642_v40 = vpop.f32.mrf.mxu0 }
0x1f74   :  { %v4976_v42 = vadd.f32 %v6642_v40, %v4881_v20 }
0x1f75   :  { %v4970_v36 = vpop.f32.mrf.mxu0  ;;  %6675 = vmatprep.mubr.f32.mxu1 %v4983_v26  ;;  %v6913_v26 = vmov 1983009808  }
0x1f76   :  { %v4971_v22 = vadd.f32 %v4970_v36, %v4881_v20  ;;  %6676 = vmatmul.mubr.f32.vlgmr.msra.gmra.mxu1 %v4984_v41  ;;  %v4982_v43 = vmax.f32 %v4976_v42, 0.0  ;;  %v5173_v40 = vunpack.c.l.s4 %v6913_v26  ;;  %v6879_v41 = vld [vmem:[%s8228_s7] sm:$0xff]  ;;  %v5447_v26 = vld [vmem:[%s8229_s8 + $0x1e8] sm:$0xff] }
0x1f77   :  { %v5156_v42 = vrot.slane %v6879_v41, %v7456_v57 }
0x1f78   :  { %v4981_v3 = vmax.f32 %v4971_v22, 0.0  ;;  %v4986_v25 = vmin.f32 %v4982_v43, 6.0  ;;  %v5174_v36 = vunpack.c.0.s8 %v5173_v40  ;;  %v5398_v40 = vld [vmem:[%s8229_s8 + $0x60] sm:$0xff] }
0x1f7a   :  { %v4985_v5 = vmin.f32 %v4981_v3, 6.0  ;;  %v5164_v3 = vrot.slane %v6879_v41, %v7502_v38  ;;  %v5431_v41 = vld [vmem:[%s8229_s8 + $0x168] sm:$0xff] }
0x1f7c   :  { %6678 = vmatprep.mubr.f32.mxu1 %v4985_v5 }
0x1f7d   :  { %6679 = vmatmul.mubr.f32.gmra.mxu1 %v4986_v25 }
0x2036   :  { %v6677_v13 = vpop.f32.mrf.mxu1 }
0x2037   :  { %v5090_v44 = vadd.f32 %v6677_v13, %v7779_v52  ;;  %v7920_v13 = vsub.s32 %v5174_v36, %v7055_v62  ;;  %v5446_v36 = vld [vmem:[%s8229_s8 + $0x1e0] sm:$0xff] }
0x2038   :  { %v5070_v49 = vpop.f32.mrf.mxu1 }
0x2039   :  { %v5098_v28 = vadd.f32 %v5096_v51, %v5090_v44  ;;  %v5089_v45 = vadd.f32 %v5070_v49, %v7782_v53 }
0x203b   :  { %v5097_v47 = vadd.f32 %v5096_v51, %v5089_v45  ;;  %v5104_v48 = vsel %vm159_vm1, %v5098_v28, 0.0 }
0x203c   :  { %5105 = vadd.xlane.f32.xlu1 %v5104_v48 }
0x203d   :  { %v6680_v50 = vpop.f32.mrf.mxu1  ;;  %v5101_v54 = vsel %vm159_vm1, %v5097_v47, 0.0 }
0x203e   :  { %v5092_v55 = vadd.f32 %v6680_v50, %v7792_v8  ;;  %5102 = vadd.xlane.f32.xlu0 %v5101_v54 }
0x203f   :  { %v5080_v4 = vpop.f32.mrf.mxu1 }
0x2040   :  { %v5100_v56 = vadd.f32 %v5096_v51, %v5092_v55  ;;  %v5091_v39 = vadd.f32 %v5080_v4, %v7790_v27 }
0x2042   :  { %v5099_v12 = vadd.f32 %v5096_v51, %v5091_v39  ;;  %v5110_v52 = vsel %vm159_vm1, %v5100_v56, 0.0 }
0x2043   :  { %5111 = vadd.xlane.f32.xlu1 %v5110_v52 }
0x2044   :  { %v5107_v53 = vsel %vm159_vm1, %v5099_v12, 0.0 }
0x2045   :  { %5108 = vadd.xlane.f32.xlu0 %v5107_v53 }
0x20c5   :  { %v5106_v7 = vpop.xlane.xlu1 %5105 }
0x20c6   :  { %v5114_v60 = vmul.f32 0.03125, %v5106_v7 }
0x20c7   :  { %v5103_v61 = vpop.xlane.xlu0 %5102 }
0x20c8   :  { %v5118_v14 = vsub.f32 %v5098_v28, %v5114_v60  ;;  %v5113_v32 = vmul.f32 0.03125, %v5103_v61 }
0x20ca   :  { %v5117_v63 = vsub.f32 %v5097_v47, %v5113_v32  ;;  %v5122_v19 = vmul.f32 %v5118_v14, %v5118_v14 }
0x20cc   :  { %v5112_v8 = vpop.xlane.xlu1 %5111  ;;  %v5128_v29 = vsel %vm159_vm1, %v5122_v19, 0.0  ;;  %v5121_v59 = vmul.f32 %v5117_v63, %v5117_v63 }
0x20cd   :  { %v5116_v6 = vmul.f32 0.03125, %v5112_v8  ;;  %5129 = vadd.xlane.f32.xlu1 %v5128_v29 }
0x20ce   :  { %v5109_v27 = vpop.xlane.xlu0 %5108  ;;  %v5125_v46 = vsel %vm159_vm1, %v5121_v59, 0.0 }
0x20cf   :  { %v5120_v10 = vsub.f32 %v5100_v56, %v5116_v6  ;;  %v5115_v1 = vmul.f32 0.03125, %v5109_v27  ;;  %5126 = vadd.xlane.f32.xlu0 %v5125_v46 }
0x20d1   :  { %v5119_v58 = vsub.f32 %v5099_v12, %v5115_v1  ;;  %v5124_v34 = vmul.f32 %v5120_v10, %v5120_v10 }
0x20d3   :  { %v5134_v24 = vsel %vm159_vm1, %v5124_v34, 0.0  ;;  %v5123_v17 = vmul.f32 %v5119_v58, %v5119_v58  ;;  %v5417_v34 = vld [vmem:[%s8229_s8 + $0xf8] sm:$0xff] }
0x20d4   :  { %5135 = vadd.xlane.f32.xlu1 %v5134_v24  ;;  %v5401_v24 = vld [vmem:[%s8229_s8 + $0x78] sm:$0xff]  ;;  %6168 = vmatprep.subr.mxu0 %v5417_v34  ;;  %v5423_v34 = vld [vmem:[%s8229_s8 + $0x128] sm:$0xff] }
0x20d5   :  { %v5131_v21 = vsel %vm159_vm1, %v5123_v17, 0.0  ;;  %v5416_v17 = vld [vmem:[%s8229_s8 + $0xf0] sm:$0xff]  ;;  %6169 = vmatpush3.msra.mxu0 %v5401_v24  ;;  %v5405_v24 = vld [vmem:[%s8229_s8 + $0x98] sm:$0xff] }
0x20d6   :  { %5132 = vadd.xlane.f32.xlu0 %v5131_v21  ;;  %v5449_v21 = vld [vmem:[%s8229_s8 + $0x1f8] sm:$0xff]  ;;  %6170 = vmatprep.subr.mxu0 %v5416_v17  ;;  %v5438_v17 = vld [vmem:[%s8229_s8 + $0x1a0] sm:$0xff] }
0x20d7   :  { %6203 = vmatprep.subr.mxu1 %v5449_v21 }
0x2156   :  { %v5130_v11 = vpop.xlane.xlu1 %5129 }
0x2157   :  { %v5138_v15 = vmul.f32 0.03125, %v5130_v11 }
0x2158   :  { %v5127_v16 = vpop.xlane.xlu0 %5126 }
0x2159   :  { %v5142_v9 = vadd.f32 1e-05, %v5138_v15  ;;  %v5137_v18 = vmul.f32 0.03125, %v5127_v16  ;;  %v5400_v16 = vld [vmem:[%s8229_s8 + $0x70] sm:$0xff] }
0x215a   :  { %6171 = vmatpush3.msra.mxu0 %v5400_v16  ;;  %v5404_v16 = vld [vmem:[%s8229_s8 + $0x90] sm:$0xff] }
0x215b   :  { %6869 = vrsqrt.f32 %v5142_v9  ;;  %v5141_v20 = vadd.f32 1e-05, %v5137_v18  ;;  %v5433_v9 = vld [vmem:[%s8229_s8 + $0x178] sm:$0xff]  ;;  %v5415_v18 = vld [vmem:[%s8229_s8 + $0xe8] sm:$0xff] }
0x215c   :  { %6204 = vmatpush3.msra.mxu1 %v5433_v9  ;;  %6172 = vmatprep.subr.mxu0 %v5415_v18  ;;  %v5437_v9 = vld [vmem:[%s8229_s8 + $0x198] sm:$0xff]  ;;  %v5388_v18 = vld [vmem:[%s8229_s8 + $0x10] sm:$0xff] }
0x215d   :  { %6871 = vrsqrt.f32 %v5141_v20  ;;  %v5136_v23 = vpop.xlane.xlu1 %5135  ;;  %v5448_v20 = vld [vmem:[%s8229_s8 + $0x1f0] sm:$0xff] }
0x215e   :  { %v5140_v30 = vmul.f32 0.03125, %v5136_v23  ;;  %v5399_v23 = vld [vmem:[%s8229_s8 + $0x68] sm:$0xff]  ;;  %6205 = vmatprep.subr.mxu1 %v5448_v20  ;;  %v5421_v20 = vld [vmem:[%s8229_s8 + $0x118] sm:$0xff] }
0x215f   :  { %v5133_v31 = vpop.xlane.xlu0 %5132  ;;  %6173 = vmatpush3.msra.mxu0 %v5399_v23  ;;  %v5403_v23 = vld [vmem:[%s8229_s8 + $0x88] sm:$0xff] }
0x2160   :  { %v5144_v33 = vadd.f32 1e-05, %v5140_v30  ;;  %v5139_v35 = vmul.f32 0.03125, %v5133_v31  ;;  %v5432_v30 = vld [vmem:[%s8229_s8 + $0x170] sm:$0xff] }
0x2161   :  { %6206 = vmatpush3.msra.mxu1 %v5432_v30  ;;  %v5436_v30 = vld [vmem:[%s8229_s8 + $0x190] sm:$0xff] }
0x2162   :  { %6873 = vrsqrt.f32 %v5144_v33  ;;  %v5143_v37 = vadd.f32 1e-05, %v5139_v35  ;;  %6207 = vmatprep.subr.mxu1 %v5447_v26  ;;  %v5386_v26 = vld [vmem:[%s8229_s8] sm:$0xff] }
0x2163   :  { %6208 = vmatpush3.msra.mxu1 %v5431_v41  ;;  %v5434_v41 = vld [vmem:[%s8229_s8 + $0x180] sm:$0xff] }
0x2164   :  { %6875 = vrsqrt.f32 %v5143_v37  ;;  %v5414_v37 = vld [vmem:[%s8229_s8 + $0xe0] sm:$0xff]  ;;  %6209 = vmatprep.subr.mxu1 %v5446_v36 }
0x2165   :  { %6174 = vmatprep.subr.mxu0 %v5414_v37  ;;  %v5435_v37 = vld [vmem:[%s8229_s8 + $0x188] sm:$0xff] }
0x2166   :  { %6175 = vmatpush3.msra.mxu0 %v5398_v40  ;;  %v5419_v40 = vld [vmem:[%s8229_s8 + $0x108] sm:$0xff] }
0x2168   :  { %v6870_v22 = vpop.eup %6869 }
0x2169   :  { %v5150_v43 = vmul.f32 %v6870_v22, %v5118_v14 }
0x216a   :  { %v6872_v5 = vpop.eup %6871 }
0x216b   :  { %v5149_v25 = vmul.f32 %v6872_v5, %v5117_v63  ;;  %v5158_v51 = vmul.f32 %v5156_v42, %v5150_v43  ;;  %v5430_v5 = vld [vmem:[%s8229_s8 + $0x160] sm:$0xff] }
0x216c   :  { %6210 = vmatpush3.msra.mxu1 %v5430_v5 }
0x216d   :  { %v5166_v44 = vadd.f32 %v5164_v3, %v5158_v51  ;;  %v5157_v49 = vmul.f32 %v5156_v42, %v5149_v25  ;;  %v5412_v25 = vld [vmem:[%s8229_s8 + $0xd0] sm:$0xff]  ;;  %v5445_v51 = vld [vmem:[%s8229_s8 + $0x1d8] sm:$0xff] }
0x216e   :  { %6211 = vmatprep.subr.mxu1 %v5445_v51 }
0x216f   :  { %v6874_v28 = vpop.eup %6873  ;;  %v5234_v45 = vrot.slane %v5166_v44, %v7920_v13  ;;  %v5252_v47 = vcombine.high %v5166_v44, %v5166_v44  ;;  %v5165_v48 = vadd.f32 %v5164_v3, %v5157_v49  ;;  %5226 = vst.msk [vmem:[#allocation2 + $0x4] sm:$0x1] %vm5169_vm4, %v5166_v44  ;;  %v5396_v44 = vld [vmem:[%s8229_s8 + $0x50] sm:$0xff]  ;;  %v5429_v49 = vld [vmem:[%s8229_s8 + $0x158] sm:$0xff] }
0x2170   :  { %v5152_v50 = vmul.f32 %v6874_v28, %v5120_v10  ;;  %6212 = vmatpush3.msra.mxu1 %v5429_v49 }
0x2171   :  { %v6876_v54 = vpop.eup %6875  ;;  %v5905_v55 = vrot.slane %v5234_v45, 9  ;;  %v5241_v4 = vcombine.high %v5234_v45, %v5234_v45  ;;  %v5259_v56 = vrot.slane %v5252_v47, %v7920_v13  ;;  %v5178_v39 = vrot.slane %v5165_v48, %v7920_v13  ;;  %5170 = vst.msk [vmem:[#allocation2] sm:$0x1] %vm5169_vm4, %v5165_v48  ;;  %v5411_v47 = vld [vmem:[%s8229_s8 + $0xc8] sm:$0xff] }
0x2172   :  { %v5151_v62 = vmul.f32 %v6876_v54, %v5119_v58  ;;  %v5199_v12 = vcombine.high %v5165_v48, %v5165_v48  ;;  %v5160_v52 = vmul.f32 %v5156_v42, %v5152_v50  ;;  %v5444_v48 = vld [vmem:[%s8229_s8 + $0x1d0] sm:$0xff]  ;;  %v5395_v50 = vld [vmem:[%s8229_s8 + $0x48] sm:$0xff] }
0x2173   :  { %5237 = vrot.lane.b32.xlu1 %v5905_v55, %s6914_s12  ;;  %5242 = vrot.lane.b32.xlu0 %v5241_v4, %s6903_s29  ;;  %5261 = vst.msk [vmem:[#allocation2 + $0x6] sm:$0x1] %vm5169_vm4, %v5259_v56  ;;  %v5907_v61 = vrot.slane %v5259_v56, 9  ;;  %v5901_v14 = vrot.slane %v5178_v39, 9  ;;  %v5268_v8 = vcombine.high %v5259_v56, %v5259_v56  ;;  %v5186_v29 = vcombine.high %v5178_v39, %v5178_v39  ;;  %v5428_v54 = vld [vmem:[%s8229_s8 + $0x150] sm:$0xff]  ;;  %v5410_v55 = vld [vmem:[%s8229_s8 + $0xc0] sm:$0xff] }
0x2174   :  { %v5206_v53 = vrot.slane %v5199_v12, %v7920_v13  ;;  %v5168_v7 = vadd.f32 %v5164_v3, %v5160_v52  ;;  %v5159_v60 = vmul.f32 %v5156_v42, %v5151_v62  ;;  %v5906_v46 = vrot.slane %v5241_v4, 9  ;;  %v5413_v42 = vld [vmem:[%s8229_s8 + $0xd8] sm:$0xff]  ;;  %v5443_v4 = vld [vmem:[%s8229_s8 + $0x1c8] sm:$0xff]  ;;  %6213 = vmatprep.subr.mxu1 %v5444_v48  ;;  %v5394_v62 = vld [vmem:[%s8229_s8 + $0x40] sm:$0xff] }
0x2175   :  { %v5908_v11 = vrot.slane %v5268_v8, 9  ;;  %v5902_v33 = vrot.slane %v5186_v29, 9  ;;  %6176 = vmatprep.subr.mxu0 %v5413_v42  ;;  %6214 = vmatpush3.msra.mxu1 %v5428_v54  ;;  %v5427_v12 = vld [vmem:[%s8229_s8 + $0x148] sm:$0xff]  ;;  %v5409_v52 = vld [vmem:[%s8229_s8 + $0xb8] sm:$0xff]  ;;  %v5418_v42 = vld [vmem:[%s8229_s8 + $0x100] sm:$0xff] }
0x2176   :  { %v5358_v32 = vcombine.high %v5168_v7, %v5168_v7  ;;  %5208 = vst.msk [vmem:[#allocation2 + $0x2] sm:$0x1] %vm5169_vm4, %v5206_v53  ;;  %5332 = vst.msk [vmem:[#allocation2 + $0x5] sm:$0x1] %vm5169_vm4, %v5168_v7  ;;  %v5167_v63 = vadd.f32 %v5164_v3, %v5159_v60  ;;  %v5903_v27 = vrot.slane %v5206_v53, 9  ;;  %v5340_v10 = vrot.slane %v5168_v7, %v7920_v13  ;;  %v5397_v3 = vld [vmem:[%s8229_s8 + $0x58] sm:$0xff] }
0x2177   :  { %5264 = vrot.lane.b32.xlu1 %v5907_v61, %s6914_s12  ;;  %5181 = vrot.lane.b32.xlu0 %v5901_v14, %s6914_s12  ;;  %v7948_v1 = vcombine.high %v5206_v53, %v5206_v53  ;;  %v5442_v53 = vld [vmem:[%s8229_s8 + $0x1c0] sm:$0xff]  ;;  %v5393_v7 = vld [vmem:[%s8229_s8 + $0x38] sm:$0xff] }
0x2178   :  { %v5365_v19 = vrot.slane %v5358_v32, %v7920_v13  ;;  %v5305_v59 = vcombine.high %v5167_v63, %v5167_v63  ;;  %5279 = vst.msk [vmem:[#allocation2 + $0x1] sm:$0x1] %vm5169_vm4, %v5167_v63  ;;  %v5913_v58 = vrot.slane %v5340_v10, 9  ;;  %v7965_v15 = vcombine.high %v5340_v10, %v5340_v10  ;;  %6177 = vmatpush3.msra.mxu0 %v5397_v3  ;;  %v5426_v60 = vld [vmem:[%s8229_s8 + $0x140] sm:$0xff]  ;;  %v5408_v32 = vld [vmem:[%s8229_s8 + $0xb0] sm:$0xff] }
0x2179   :  { %v5287_v35 = vrot.slane %v5167_v63, %v7920_v13  ;;  %v5904_v28 = vrot.slane %v7948_v1, 9  ;;  %6178 = vmatprep.subr.mxu0 %v5412_v25  ;;  %6215 = vmatprep.subr.mxu1 %v5443_v4  ;;  %v5441_v63 = vld [vmem:[%s8229_s8 + $0x1b8] sm:$0xff]  ;;  %v5406_v10 = vld [vmem:[%s8229_s8 + $0xa0] sm:$0xff] }
0x217a   :  { %5367 = vst.msk [vmem:[#allocation2 + $0x7] sm:$0x1] %vm5169_vm4, %v5365_v19  ;;  %v7941_v6 = vrot.slane %v5305_v59, %v7920_v13  ;;  %v5915_v31 = vrot.slane %v5365_v19, 9  ;;  %v8009_v22 = vcombine.high %v5365_v19, %v5365_v19  ;;  %6179 = vmatpush3.msra.mxu0 %v5396_v44  ;;  %6216 = vmatpush3.msra.mxu1 %v5427_v12  ;;  %v5914_v14 = vrot.slane %v7965_v15, 9  ;;  %v5392_v19 = vld [vmem:[%s8229_s8 + $0x30] sm:$0xff] }
0x217b   :  { %5269 = vrot.lane.b32.xlu1 %v5268_v8, %s6903_s29  ;;  %5187 = vrot.lane.b32.xlu0 %v5186_v29, %s6903_s29  ;;  %v5909_v43 = vrot.slane %v5287_v35, 9  ;;  %v5294_v45 = vcombine.high %v5287_v35, %v5287_v35  ;;  %v5425_v8 = vld [vmem:[%s8229_s8 + $0x138] sm:$0xff]  ;;  %v5407_v29 = vld [vmem:[%s8229_s8 + $0xa8] sm:$0xff] }
0x217c   :  { %5314 = vst.msk [vmem:[#allocation2 + $0x3] sm:$0x1] %vm5169_vm4, %v7941_v6  ;;  %6180 = vmatprep.subr.mxu0 %v5411_v47  ;;  %v5911_v56 = vrot.slane %v7941_v6, 9  ;;  %v5321_v61 = vcombine.high %v7941_v6, %v7941_v6  ;;  %6217 = vmatprep.subr.mxu1 %v5442_v53  ;;  %v5440_v59 = vld [vmem:[%s8229_s8 + $0x1b0] sm:$0xff]  ;;  %v5391_v6 = vld [vmem:[%s8229_s8 + $0x28] sm:$0xff]  ;;  %v5916_v21 = vrot.slane %v8009_v22, 9 }
0x217d   :  { %v5910_v39 = vrot.slane %v5294_v45, 9  ;;  %6181 = vmatpush3.msra.mxu0 %v5395_v50  ;;  %6218 = vmatpush3.msra.mxu1 %v5426_v60  ;;  %v5402_v35 = vld [vmem:[%s8229_s8 + $0x80] sm:$0xff] }
0x217e   :  { %6182 = vmatprep.subr.mxu0 %v5410_v55  ;;  %6219 = vmatprep.subr.mxu1 %v5441_v63 }
0x217f   :  { %5211 = vrot.lane.b32.xlu1 %v5903_v27, %s6914_s12  ;;  %5248 = vrot.lane.b32.xlu0 %v5906_v46, %s6902_s28  ;;  %v5912_v27 = vrot.slane %v5321_v61, 9  ;;  %v5424_v46 = vld [vmem:[%s8229_s8 + $0x130] sm:$0xff] }
0x2180   :  { %6183 = vmatpush3.msra.mxu0 %v5394_v62  ;;  %6220 = vmatpush3.msra.mxu1 %v5425_v8  ;;  %v6915_v8 = vmov 0.0  }
0x2181   :  { %6184 = vmatprep.subr.mxu0 %v5409_v52  ;;  %6221 = vmatprep.subr.mxu1 %v5440_v59  ;;  %v5624_v59 = vld [vmem:[%s8230_s9 + $0x10] sm:$0xff] }
0x2182   :  { %6185 = vmatpush3.msra.mxu0 %v5393_v7  ;;  %6222 = vmatpush3.msra.mxu1 %v5424_v46 }
0x2183   :  { %5216 = vrot.lane.b32.xlu1 %v7948_v1, %s6903_s29  ;;  %5343 = vrot.lane.b32.xlu0 %v5913_v58, %s6914_s12  ;;  %v5439_v1 = vld [vmem:[%s8229_s8 + $0x1a8] sm:$0xff]  ;;  %v5390_v58 = vld [vmem:[%s8229_s8 + $0x20] sm:$0xff] }
0x2184   :  { %6186 = vmatprep.subr.mxu0 %v5408_v32  ;;  %6223 = vmatprep.subr.mxu1 %v5439_v1  ;;  %v38_v1 = vld [vmem:[%s8228_s7 + $0x10] sm:$0xf] }
0x2185   :  { %6187 = vmatpush3.msra.mxu0 %v5392_v19  ;;  %6224 = vmatpush3.msra.mxu1 %v5423_v34 }
0x2186   :  { %6188 = vmatprep.subr.mxu0 %v5407_v29  ;;  %6225 = vmatprep.subr.mxu1 %v5438_v17  ;;  %v5625_v29 = vld [vmem:[%s8230_s9 + $0x18] sm:$0xff]  ;;  %v5615_v17 = vrot.slane %v38_v1, %v7456_v57 }
0x2187   :  { %5275 = vrot.lane.b32.xlu1 %v5908_v11, %s6902_s28  ;;  %5348 = vrot.lane.b32.xlu0 %v7965_v15, %s6903_s29  ;;  %v5389_v11 = vld [vmem:[%s8229_s8 + $0x18] sm:$0xff]  ;;  %v5422_v15 = vld [vmem:[%s8229_s8 + $0x120] sm:$0xff] }
0x2188   :  { %6189 = vmatpush3.msra.mxu0 %v5391_v6  ;;  %6226 = vmatpush3.msra.mxu1 %v5422_v15  ;;  %v5622_v6 = vld [vmem:[%s8230_s9] sm:$0xff] }
0x2189   :  { %6190 = vmatprep.subr.mxu0 %v5406_v10  ;;  %6227 = vmatprep.subr.mxu1 %v5437_v9  ;;  %v5702_v9 = vrot.slane %v38_v1, %v7058_v0 }
0x218a   :  { %6191 = vmatpush3.msra.mxu0 %v5390_v58  ;;  %6228 = vmatpush3.msra.mxu1 %v5421_v20 }
0x218b   :  { %5370 = vrot.lane.b32.xlu1 %v5915_v31, %s6914_s12  ;;  %5194 = vrot.lane.b32.xlu0 %v5902_v33, %s6902_s28  ;;  %v5387_v31 = vld [vmem:[%s8229_s8 + $0x8] sm:$0xff]  ;;  %v5420_v33 = vld [vmem:[%s8229_s8 + $0x110] sm:$0xff] }
0x218c   :  { %6192 = vmatprep.subr.mxu0 %v5405_v24  ;;  %6229 = vmatprep.subr.mxu1 %v5436_v30 }
0x218d   :  { %6193 = vmatpush3.msra.mxu0 %v5389_v11  ;;  %6230 = vmatpush3.msra.mxu1 %v5420_v33  ;;  %v5620_v11 = vrot.slane %v38_v1, %v7502_v38 }
0x218e   :  { %6194 = vmatprep.subr.mxu0 %v5404_v16  ;;  %6231 = vmatprep.subr.mxu1 %v5435_v37 }
0x218f   :  { %5375 = vrot.lane.b32.xlu1 %v8009_v22, %s6903_s29  ;;  %5290 = vrot.lane.b32.xlu0 %v5909_v43, %s6914_s12 }
0x2190   :  { %6195 = vmatpush3.msra.mxu0 %v5388_v18  ;;  %6232 = vmatpush3.msra.mxu1 %v5419_v40  ;;  %v5707_v18 = vrot.slane %v38_v1, %v7064_v2 }
0x2191   :  { %6196 = vmatprep.subr.mxu0 %v5403_v23  ;;  %6233 = vmatprep.subr.mxu1 %v5434_v41 }
0x2192   :  { %6197 = vmatpush3.msra.mxu0 %v5387_v31  ;;  %6234 = vmatpush3.msra.mxu1 %v5418_v42 }
0x2193   :  { %5222 = vrot.lane.b32.xlu1 %v5904_v28, %s6902_s28  ;;  %5295 = vrot.lane.b32.xlu0 %v5294_v45, %s6903_s29 }
0x2194   :  { %6198 = vmatprep.subr.mxu0 %v5402_v35 }
0x2195   :  { %6199 = vmatpush3.msra.mxu0 %v5386_v26 }
0x2196   :  { %6681 = vmatprep.subr.mxu0 %v6915_v8 }
0x2197   :  { %5317 = vrot.lane.b32.xlu1 %v5911_v56, %s6914_s12  ;;  %5301 = vrot.lane.b32.xlu0 %v5910_v39, %s6902_s28 }
0x219b   :  { %5322 = vrot.lane.b32.xlu1 %v5321_v61, %s6903_s29  ;;  %5354 = vrot.lane.b32.xlu0 %v5914_v14, %s6902_s28 }
0x219f   :  { %5328 = vrot.lane.b32.xlu1 %v5912_v27, %s6902_s28 }
0x21a3   :  { %5381 = vrot.lane.b32.xlu1 %v5916_v21, %s6902_s28 }
0x21e5   :  { %v5238_v36 = vpop.permute.xlu1 %5237  ;;  %v5243_v22 = vpop.permute.xlu0 %5242 }
0x21e6   :  { %5240 = vst.msk [vmem:[#allocation2 + $0x4] sm:$0x1] %vm5184_vm5, %v5238_v36 }
0x21e7   :  { %5245 = vst.msk [vmem:[#allocation2 + $0x4] sm:$0x1] %vm5190_vm6, %v5243_v22 }
0x21e9   :  { %v5265_v43 = vpop.permute.xlu1 %5264  ;;  %v5182_v3 = vpop.permute.xlu0 %5181 }
0x21ea   :  { %5267 = vst.msk [vmem:[#allocation2 + $0x6] sm:$0x1] %vm5184_vm5, %v5265_v43  ;;  %5185 = vst.msk [vmem:[#allocation2] sm:$0x1] %vm5184_vm5, %v5182_v3 }
0x21ed   :  { %v5270_v5 = vpop.permute.xlu1 %5269  ;;  %v5188_v25 = vpop.permute.xlu0 %5187 }
0x21ee   :  { %5272 = vst.msk [vmem:[#allocation2 + $0x6] sm:$0x1] %vm5190_vm6, %v5270_v5  ;;  %5191 = vst.msk [vmem:[#allocation2] sm:$0x1] %vm5190_vm6, %v5188_v25 }
0x21f1   :  { %v5212_v51 = vpop.permute.xlu1 %5211  ;;  %v5249_v44 = vpop.permute.xlu0 %5248 }
0x21f2   :  { %5214 = vst.msk [vmem:[#allocation2 + $0x2] sm:$0x1] %vm5184_vm5, %v5212_v51 }
0x21f3   :  { %5251 = vst.msk [vmem:[#allocation2 + $0x4] sm:$0x1] %vm5197_vm7, %v5249_v44 }
0x21f5   :  { %v5217_v49 = vpop.permute.xlu1 %5216  ;;  %v5344_v28 = vpop.permute.xlu0 %5343 }
0x21f6   :  { %5219 = vst.msk [vmem:[#allocation2 + $0x2] sm:$0x1] %vm5190_vm6, %v5217_v49 }
0x21f7   :  { %5346 = vst.msk [vmem:[#allocation2 + $0x5] sm:$0x1] %vm5184_vm5, %v5344_v28 }
0x21f9   :  { %v5276_v45 = vpop.permute.xlu1 %5275  ;;  %v5349_v47 = vpop.permute.xlu0 %5348 }
0x21fa   :  { %5278 = vst.msk [vmem:[#allocation2 + $0x6] sm:$0x1] %vm5197_vm7, %v5276_v45 }
0x21fb   :  { %5351 = vst.msk [vmem:[#allocation2 + $0x5] sm:$0x1] %vm5190_vm6, %v5349_v47 }
0x21fd   :  { %v5371_v48 = vpop.permute.xlu1 %5370  ;;  %v5195_v50 = vpop.permute.xlu0 %5194 }
0x21fe   :  { %5373 = vst.msk [vmem:[#allocation2 + $0x7] sm:$0x1] %vm5184_vm5, %v5371_v48 }
0x21ff   :  { %5198 = vst.msk [vmem:[#allocation2] sm:$0x1] %vm5197_vm7, %v5195_v50 }
0x2201   :  { %v5376_v54 = vpop.permute.xlu1 %5375  ;;  %v5291_v55 = vpop.permute.xlu0 %5290 }
0x2202   :  { %5378 = vst.msk [vmem:[#allocation2 + $0x7] sm:$0x1] %vm5190_vm6, %v5376_v54 }
0x2203   :  { %5293 = vst.msk [vmem:[#allocation2 + $0x1] sm:$0x1] %vm5184_vm5, %v5291_v55 }
0x2205   :  { %v5223_v4 = vpop.permute.xlu1 %5222  ;;  %v5296_v56 = vpop.permute.xlu0 %5295 }
0x2206   :  { %5225 = vst.msk [vmem:[#allocation2 + $0x2] sm:$0x1] %vm5197_vm7, %v5223_v4 }
0x2207   :  { %5298 = vst.msk [vmem:[#allocation2 + $0x1] sm:$0x1] %vm5190_vm6, %v5296_v56 }
0x2209   :  { %v5318_v39 = vpop.permute.xlu1 %5317  ;;  %v5302_v62 = vpop.permute.xlu0 %5301 }
0x220a   :  { %5320 = vst.msk [vmem:[#allocation2 + $0x3] sm:$0x1] %vm5184_vm5, %v5318_v39 }
0x220b   :  { %5304 = vst.msk [vmem:[#allocation2 + $0x1] sm:$0x1] %vm5197_vm7, %v5302_v62 }
0x220d   :  { %v5323_v12 = vpop.permute.xlu1 %5322  ;;  %v5355_v52 = vpop.permute.xlu0 %5354 }
0x220e   :  { %5325 = vst.msk [vmem:[#allocation2 + $0x3] sm:$0x1] %vm5190_vm6, %v5323_v12 }
0x220f   :  { %5357 = vst.msk [vmem:[#allocation2 + $0x5] sm:$0x1] %vm5197_vm7, %v5355_v52 }
0x2211   :  { %v5329_v53 = vpop.permute.xlu1 %5328 }
0x2212   :  { %5331 = vst.msk [vmem:[#allocation2 + $0x3] sm:$0x1] %vm5197_vm7, %v5329_v53 }
0x2215   :  { %v5382_v7 = vpop.permute.xlu1 %5381 }
0x2216   :  { %5384 = vst.msk [vmem:[#allocation2 + $0x7] sm:$0x1] %vm5197_vm7, %v5382_v7 }
0x221d   :  { %v5385_v60 = vld [vmem:[#allocation2] sm:$0xff] }
0x221e   :  { %v5458_v61 = vrot.slane %v5385_v60, %v7920_v13  ;;  %v5451_v14 = vcombine.high %v5385_v60, %v5385_v60 }
0x2220   :  { %v5466_v32 = vcombine.high %v5458_v61, %v5458_v61  ;;  %v5465_v63 = vrot.slane %v5451_v14, %v7920_v13  ;;  %v5623_v13 = vld [vmem:[%s8230_s9 + $0x8] sm:$0xff]  ;;  %s6917_s9 = smov [#allocation3]  }
0x2221   :  { %s5717_s18 = sshll.u32 %s6917_s9, 4  ;;  %s5718_s18 = int_to_ptr.vmem [resolvable:$true] %s5717_s18 }
0x2222   :  { %5536 = vmatprep.mubr.f32.mxu0 %v5466_v32  ;;  %v5467_v19 = vcombine.high %v5465_v63, %v5465_v63  ;;  %s6880_s7 = scalar_lea.vmem %s5718_s18, 32  ;;  %p6885_p1 = scmp.lt.s32.totalorder %s5718_s18, %s5718_s18 }
0x2223   :  { %5537 = vmatmul.mubr.f32.vlgmr.msra.gmra.mxu0 %v5458_v61  ;;  %p6881_p0 = scmp.ne.s32.totalorder %s5718_s18, %s6880_s7  ;;  %p6886_p2 = scmp.lt.s32.totalorder %s6880_s7, %s6880_s7 }
0x2224   :  { %5606 = vmatprep.mubr.f32.mxu1 %v5467_v19  ;;  %6682 = vmatpush3.msra.mxu0 %v5625_v29 }
0x2225   :  { %5607 = vmatmul.mubr.f32.vlgmr.msra.gmra.mxu1 %v5465_v63  ;;  %6683 = vmatprep.subr.mxu0 %v6915_v8  ;;  %p6887_p3 = por %p6886_p2, %p6885_p1 }
0x2226   :  { %6684 = vmatpush3.msra.mxu0 %v5624_v59  ;;  %6689 = vmatprep.mubr.msk.f32.mxu0 %vm6916_vm8, %v6915_v8 }
0x2227   :  { %6685 = vmatprep.subr.mxu0 %v6915_v8  ;;  %p6888_p4 = pnand %p6887_p3, %p6881_p0 }
0x2228   :  { %6686 = vmatpush3.msra.mxu0 %v5623_v13 }
0x2229   :  { %6687 = vmatprep.subr.mxu0 %v6915_v8 }
0x222a   :  { %6688 = vmatpush3.msra.mxu0 %v5622_v6 }
0x22e3   :  { %v6200_v27 = vpop.f32.mrf.mxu0 }
0x22e5   :  { %v6201_v46 = vpop.f32.mrf.mxu0  ;;  %v6235_v10 = vpop.f32.mrf.mxu1 }
0x22e6   :  { %v6202_v34 = vadd.f32 %v6201_v46, %v6200_v27 }
0x22e7   :  { %v6236_v58 = vpop.f32.mrf.mxu1 }
0x22e8   :  { %v6237_v24 = vadd.f32 %v6236_v58, %v6235_v10 }
0x22ea   :  { %v5609_v21 = vadd.f32 %v6237_v24, %v6202_v34 }
0x22ec   :  { %v5616_v15 = vmul.f32 %v5615_v17, %v5609_v21 }
0x22ee   :  { %v5621_v16 = vadd.f32 %v5620_v11, %v5616_v15 }
0x22f0   :  { %6690 = vmatmul.mubr.msk.f32.vlgmr.msra.gmra.mxu0 %vm159_vm1, %v5621_v16 }
0x23b0   :  { %v5695_v20 = vpop.f32.mrf.mxu0 }
0x23b1   :  { %v5703_v23 = vmul.f32 %v5702_v9, %v5695_v20 }
0x23b2   :  { %v6691_v30 = vpop.f32.mrf.mxu0 }
0x23b3   :  { %v5708_v31 = vadd.f32 %v5707_v18, %v5703_v23 }
0x23b5   :  { %5710 = vst.msk [vmem:[#allocation3] sm:$0x3] %vm5709_vm9, %v5708_v31 }
0x23b6   :  { %6891 = shalt.err (!%p6888_p4)
}
0x23b7   :  { %5720 = dma.vmem_to_hbm [thread:$0]  %s5718_s18, 32, %s8231_s10, [#allocation4]  }
0x23b8   :  { %6900 = dma.done.wait [#allocation4], 32  }
0x23b9   :  { %6901 = vsyncadd [#allocation4], 4294967264 }
0x23ba   :  { %5724 = vsyncpa [#allocation4], 1 }

</bundles_post_ra>
